<compile_context>
chip_gen: v5e
topology: v5e:2x2
jax: 0.10.0
libtpu: 0.0.40
codegen_flags: <defaults>
</compile_context>

<pallas_src>
import functools

import jax
import jax.numpy as jnp
from jax.experimental import pallas as pl
from jax.experimental.pallas import tpu as pltpu

DH_PAD = 128  # hidden dimension padded to one full lane width


# ------------------------- Pallas kernel -------------------------

def _masked_layernorm(h, gamma, beta, mask, inv_n, eps=1e-5):
    """LayerNorm over the last axis, statistics restricted to the true features.

    h: (TM, DH_PAD); mask: (1, DH_PAD) with 1.0 on the first dim_hidden lanes.
    gamma/beta are zero on padded lanes, so padded lanes come out exactly 0.
    """
    hm = h * mask
    mean = jnp.sum(hm, axis=-1, keepdims=True) * inv_n
    diff = (h - mean) * mask
    var = jnp.sum(diff * diff, axis=-1, keepdims=True) * inv_n
    return (h - mean) * jax.lax.rsqrt(var + eps) * gamma + beta


def ff_kernel(x_ref,
              w1_ref, b1_ref, g1_ref, be1_ref,
              w2_ref, b2_ref, g2_ref, be2_ref,
              w3_ref, b3_ref,
              o_ref,
              *, dim_in, dim_hidden):
    inv_n = 1.0 / float(dim_hidden)
    lane = jax.lax.broadcasted_iota(jnp.int32, (1, DH_PAD), 1)
    mask = (lane < dim_hidden).astype(jnp.float32)

    # ---- Block 1: Linear(dim_in -> H) on the VPU (K=dim_in is tiny; skip the MXU) ----
    h = b1_ref[...]                                   # (1, DH_PAD), broadcasts on first add
    for d in range(dim_in):                           # static unroll, dim_in is tiny
        h = h + x_ref[:, d:d + 1] * w1_ref[d:d + 1, :]
    h = jnp.tanh(_masked_layernorm(h, g1_ref[...], be1_ref[...], mask, inv_n))
    # Dropout(0.3) is identity in eval-mode forward.

    # ---- Block 2: Linear(H -> H) as a lane-dense 128x128 MXU matmul ----
    h = jnp.dot(h, w2_ref[...], preferred_element_type=jnp.float32) + b2_ref[...]
    h = jnp.tanh(_masked_layernorm(h, g2_ref[...], be2_ref[...], mask, inv_n))

    # ---- Output head: (1,H) . (TM,H)^T -> (1, TM) lane-dense result ----
    y = jax.lax.dot_general(w3_ref[...], h, (((1,), (1,)), ((), ())),
                            preferred_element_type=jnp.float32)
    y = y + b3_ref[0, 0]
    # Softplus with PyTorch threshold=20 semantics.
    o_ref[...] = jnp.where(y > 20.0, y, jnp.log1p(jnp.exp(jnp.minimum(y, 20.0))))


# ------------------------- wrapper -------------------------

def ff_forward(x, kparams, *, dim_hidden=50, tm=256):
    """x: (B, dim_input) float32 -> (B, 1) float32."""
    B, dim_in = x.shape
    n_tiles = pl.cdiv(B, tm)
    Bp = n_tiles * tm
    if Bp != B:
        x = jnp.pad(x, ((0, Bp - B), (0, 0)))        # padded rows are sliced off below

    kernel = functools.partial(ff_kernel, dim_in=dim_in, dim_hidden=dim_hidden)

    def x_map(i):
        return (i, 0)

    def const2(i):                                    # weights resident across grid steps
        return (0, 0)

    def w_spec(shape):
        return pl.BlockSpec(shape, const2)

    grid_spec = pltpu.PrefetchScalarGridSpec(
        num_scalar_prefetch=0,
        grid=(n_tiles,),
        in_specs=[
            pl.BlockSpec((tm, dim_in), x_map),                           # x tile
            w_spec((dim_in, DH_PAD)),                                    # w1
            w_spec((1, DH_PAD)), w_spec((1, DH_PAD)), w_spec((1, DH_PAD)),  # b1, g1, be1
            w_spec((DH_PAD, DH_PAD)),                                    # w2
            w_spec((1, DH_PAD)), w_spec((1, DH_PAD)), w_spec((1, DH_PAD)),  # b2, g2, be2
            w_spec((1, DH_PAD)),                                         # w3 row
            pl.BlockSpec(memory_space=pltpu.MemorySpace.SMEM),           # b3 scalar
        ],
        out_specs=pl.BlockSpec((1, tm), lambda i: (0, i)),               # lane-dense slab
    )

    out = pl.pallas_call(
        kernel,
        out_shape=jax.ShapeDtypeStruct((1, Bp), jnp.float32),
        grid_spec=grid_spec,
        compiler_params=pltpu.CompilerParams(
            dimension_semantics=("parallel",),       # shards batch tiles across v7x's 2 TCs
            vmem_limit_bytes=32 * 1024 * 1024,       # generous; ~70 KiB actually used
        ),
    )(x,
      kparams["w1"], kparams["b1"], kparams["g1"], kparams["be1"],
      kparams["w2"], kparams["b2"], kparams["g2"], kparams["be2"],
      kparams["w3_row"], kparams["b3"])

    return out.reshape(Bp, 1)[:B]


# ------------------------- deterministic param init -------------------------

def init_params(key, dim_input=2, dim_hidden=50, dim_output=1):
    """PyTorch nn.Linear default init (uniform +/- 1/sqrt(fan_in)); LayerNorm gamma=1, beta=0.
    Weights stored as (in, out) so forward is x @ W + b."""
    ks = jax.random.split(key, 6)

    def lin_init(kw, kb, fan_in, fan_out):
        bound = 1.0 / jnp.sqrt(fan_in)
        w = jax.random.uniform(kw, (fan_in, fan_out), jnp.float32, -bound, bound)
        b = jax.random.uniform(kb, (1, fan_out), jnp.float32, -bound, bound)
        return w, b

    w1, b1 = lin_init(ks[0], ks[1], dim_input, dim_hidden)
    w2, b2 = lin_init(ks[2], ks[3], dim_hidden, dim_hidden)
    w3, b3 = lin_init(ks[4], ks[5], dim_hidden, dim_output)

    return {
        "w1": w1, "b1": b1,
        "g1": jnp.ones((1, dim_hidden), jnp.float32),
        "be1": jnp.zeros((1, dim_hidden), jnp.float32),
        "w2": w2, "b2": b2,
        "g2": jnp.ones((1, dim_hidden), jnp.float32),
        "be2": jnp.zeros((1, dim_hidden), jnp.float32),
        "w3": w3, "b3": b3,
    }


def prepare_params(p, dim_hidden=50):
    """Zero-pad the hidden dimension to DH_PAD lanes and reshape the output head.

    Zero padding of weights/bias/gamma/beta guarantees padded lanes stay exactly 0 through
    LayerNorm/tanh, so they contribute nothing to the next matmul.
    """
    assert p["w3"].shape[1] == 1, "kernel output head is specialized to dim_output == 1"
    pad = DH_PAD - dim_hidden

    def pad_cols(a):
        return jnp.pad(a, ((0, 0), (0, pad)))

    return {
        "w1": pad_cols(p["w1"]),
        "b1": pad_cols(p["b1"]), "g1": pad_cols(p["g1"]), "be1": pad_cols(p["be1"]),
        "w2": jnp.pad(p["w2"], ((0, pad), (0, pad))),
        "b2": pad_cols(p["b2"]), "g2": pad_cols(p["g2"]), "be2": pad_cols(p["be2"]),
        "w3_row": pad_cols(p["w3"].T),          # (H, 1) -> (1, DH_PAD)
        "b3": p["b3"].reshape(1, 1),            # scalar, lives in SMEM
    }


# ------------------------- pure-JAX reference -------------------------

def ff_reference(x, p):
    def ln(h, g, b, eps=1e-5):
        m = jnp.mean(h, axis=-1, keepdims=True)
        v = jnp.mean((h - m) ** 2, axis=-1, keepdims=True)
        return (h - m) / jnp.sqrt(v + eps) * g + b

    h = jnp.tanh(ln(x @ p["w1"] + p["b1"], p["g1"], p["be1"]))
    h = jnp.tanh(ln(h @ p["w2"] + p["b2"], p["g2"], p["be2"]))
    y = h @ p["w3"] + p["b3"]
    return jnp.where(y > 20.0, y, jnp.log1p(jnp.exp(jnp.minimum(y, 20.0))))


# ------------------------- main -------------------------

if __name__ == "__main__":
    key = jax.random.PRNGKey(0)
    k_x, k_p = jax.random.split(key)

    B, DIM_IN, DIM_HID, DIM_OUT = 512, 2, 50, 1   # 2 batch tiles of 256 -> exercises the grid
    x = jax.random.normal(k_x, (B, DIM_IN), jnp.float32)
    params = init_params(k_p, DIM_IN, DIM_HID, DIM_OUT)
    kparams = prepare_params(params, DIM_HID)

    # TODO(synk): training-mode Dropout(0.3) (pltpu PRNG masking) not implemented; eval forward only.
    out = ff_forward(x, kparams, dim_hidden=DIM_HID, tm=256)
    out = jax.block_until_ready(out)

    ref = ff_reference(x, params)
    assert out.shape == (B, DIM_OUT), out.shape
    assert jnp.allclose(out, ref, atol=1e-4, rtol=1e-4), float(jnp.max(jnp.abs(out - ref)))

    print("KERNEL_OK")
</pallas_src>

<mosaic_0001>
module attributes {stable_mosaic.version = 11 : i64} {
  func.func @ff_kernel(%arg0: i32, %arg1: memref<256x2xf32, #tpu.memory_space<vmem>>, %arg2: memref<2x128xf32, #tpu.memory_space<vmem>>, %arg3: memref<1x128xf32, #tpu.memory_space<vmem>>, %arg4: memref<1x128xf32, #tpu.memory_space<vmem>>, %arg5: memref<1x128xf32, #tpu.memory_space<vmem>>, %arg6: memref<128x128xf32, #tpu.memory_space<vmem>>, %arg7: memref<1x128xf32, #tpu.memory_space<vmem>>, %arg8: memref<1x128xf32, #tpu.memory_space<vmem>>, %arg9: memref<1x128xf32, #tpu.memory_space<vmem>>, %arg10: memref<1x128xf32, #tpu.memory_space<vmem>>, %arg11: memref<1x1xf32, #tpu.memory_space<smem>>, %arg12: memref<1x256xf32, #tpu.memory_space<vmem>>) attributes {dimension_semantics = [#tpu.dimension_semantics<parallel>], iteration_bounds = array<i64: 2>, scalar_prefetch = 0 : i64, scratch_operands = 0 : i64, tpu.core_type = #tpu.core_type<tc>, window_params = [{transform_indices = @transform_0, window_bounds = array<i64: 256, 2>}, {pipeline_mode = #tpu.pipeline_mode<synchronous>, transform_indices = @transform_1, window_bounds = array<i64: 2, 128>}, {pipeline_mode = #tpu.pipeline_mode<synchronous>, transform_indices = @transform_2, window_bounds = array<i64: 1, 128>}, {pipeline_mode = #tpu.pipeline_mode<synchronous>, transform_indices = @transform_3, window_bounds = array<i64: 1, 128>}, {pipeline_mode = #tpu.pipeline_mode<synchronous>, transform_indices = @transform_4, window_bounds = array<i64: 1, 128>}, {pipeline_mode = #tpu.pipeline_mode<synchronous>, transform_indices = @transform_5, window_bounds = array<i64: 128, 128>}, {pipeline_mode = #tpu.pipeline_mode<synchronous>, transform_indices = @transform_6, window_bounds = array<i64: 1, 128>}, {pipeline_mode = #tpu.pipeline_mode<synchronous>, transform_indices = @transform_7, window_bounds = array<i64: 1, 128>}, {pipeline_mode = #tpu.pipeline_mode<synchronous>, transform_indices = @transform_8, window_bounds = array<i64: 1, 128>}, {pipeline_mode = #tpu.pipeline_mode<synchronous>, transform_indices = @transform_9, window_bounds = array<i64: 1, 128>}, {transform_indices = @transform_10, window_bounds = array<i64: 1, 1>}, {transform_indices = @transform_11, window_bounds = array<i64: 1, 256>}]} {
    %0 = tpu.iota {dimensions = array<i32: 1>} : vector<1x128xi32>
    %c50_i32 = arith.constant 50 : i32
    %1 = vector.broadcast %c50_i32 : i32 to vector<1x128xi32>
    %2 = arith.cmpi slt, %0, %1 : vector<1x128xi32>
    %3 = arith.extui %2 : vector<1x128xi1> to vector<1x128xi32>
    %4 = arith.sitofp %3 : vector<1x128xi32> to vector<1x128xf32>
    %c0 = arith.constant 0 : index
    %c0_0 = arith.constant 0 : index
    %5 = vector.load %arg3[%c0, %c0_0] : memref<1x128xf32, #tpu.memory_space<vmem>>, vector<1x128xf32>
    %c0_1 = arith.constant 0 : index
    %c0_2 = arith.constant 0 : index
    %6 = vector.load %arg1[%c0_1, %c0_2] : memref<256x2xf32, #tpu.memory_space<vmem>>, vector<256x1xf32>
    %c0_3 = arith.constant 0 : index
    %c0_4 = arith.constant 0 : index
    %7 = vector.load %arg2[%c0_3, %c0_4] : memref<2x128xf32, #tpu.memory_space<vmem>>, vector<1x128xf32>
    %8 = vector.broadcast %6 : vector<256x1xf32> to vector<256x128xf32>
    %9 = vector.broadcast %7 : vector<1x128xf32> to vector<256x128xf32>
    %10 = arith.mulf %8, %9 : vector<256x128xf32>
    %11 = vector.broadcast %5 : vector<1x128xf32> to vector<256x128xf32>
    %12 = arith.addf %11, %10 : vector<256x128xf32>
    %c0_5 = arith.constant 0 : index
    %c1 = arith.constant 1 : index
    %13 = vector.load %arg1[%c0_5, %c1] : memref<256x2xf32, #tpu.memory_space<vmem>>, vector<256x1xf32>
    %c1_6 = arith.constant 1 : index
    %c0_7 = arith.constant 0 : index
    %14 = vector.load %arg2[%c1_6, %c0_7] : memref<2x128xf32, #tpu.memory_space<vmem>>, vector<1x128xf32>
    %15 = vector.broadcast %13 : vector<256x1xf32> to vector<256x128xf32>
    %16 = vector.broadcast %14 : vector<1x128xf32> to vector<256x128xf32>
    %17 = arith.mulf %15, %16 : vector<256x128xf32>
    %18 = arith.addf %12, %17 : vector<256x128xf32>
    %c0_8 = arith.constant 0 : index
    %c0_9 = arith.constant 0 : index
    %19 = vector.load %arg4[%c0_8, %c0_9] : memref<1x128xf32, #tpu.memory_space<vmem>>, vector<1x128xf32>
    %c0_10 = arith.constant 0 : index
    %c0_11 = arith.constant 0 : index
    %20 = vector.load %arg5[%c0_10, %c0_11] : memref<1x128xf32, #tpu.memory_space<vmem>>, vector<1x128xf32>
    %21 = vector.broadcast %4 : vector<1x128xf32> to vector<256x128xf32>
    %22 = arith.mulf %18, %21 : vector<256x128xf32>
    %cst = arith.constant dense<0.000000e+00> : vector<256xf32>
    %23 = vector.multi_reduction <add>, %22, %cst [1] : vector<256x128xf32> to vector<256xf32>
    %24 = vector.shape_cast %23 : vector<256xf32> to vector<256x1xf32>
    %cst_12 = arith.constant 2.000000e-02 : f32
    %25 = vector.broadcast %cst_12 : f32 to vector<256x1xf32>
    %26 = arith.mulf %24, %25 : vector<256x1xf32>
    %27 = vector.broadcast %26 : vector<256x1xf32> to vector<256x128xf32>
    %28 = arith.subf %18, %27 : vector<256x128xf32>
    %29 = vector.broadcast %4 : vector<1x128xf32> to vector<256x128xf32>
    %30 = arith.mulf %28, %29 : vector<256x128xf32>
    %31 = arith.mulf %30, %30 : vector<256x128xf32>
    %cst_13 = arith.constant dense<0.000000e+00> : vector<256xf32>
    %32 = vector.multi_reduction <add>, %31, %cst_13 [1] : vector<256x128xf32> to vector<256xf32>
    %33 = vector.shape_cast %32 : vector<256xf32> to vector<256x1xf32>
    %cst_14 = arith.constant 2.000000e-02 : f32
    %34 = vector.broadcast %cst_14 : f32 to vector<256x1xf32>
    %35 = arith.mulf %33, %34 : vector<256x1xf32>
    %36 = vector.broadcast %26 : vector<256x1xf32> to vector<256x128xf32>
    %37 = arith.subf %18, %36 : vector<256x128xf32>
    %cst_15 = arith.constant 9.99999974E-6 : f32
    %38 = vector.broadcast %cst_15 : f32 to vector<256x1xf32>
    %39 = arith.addf %35, %38 : vector<256x1xf32>
    %40 = math.rsqrt %39 : vector<256x1xf32>
    %41 = vector.broadcast %40 : vector<256x1xf32> to vector<256x128xf32>
    %42 = arith.mulf %37, %41 : vector<256x128xf32>
    %43 = vector.broadcast %19 : vector<1x128xf32> to vector<256x128xf32>
    %44 = arith.mulf %42, %43 : vector<256x128xf32>
    %45 = vector.broadcast %20 : vector<1x128xf32> to vector<256x128xf32>
    %46 = arith.addf %44, %45 : vector<256x128xf32>
    %47 = math.tanh %46 : vector<256x128xf32>
    %c0_16 = arith.constant 0 : index
    %c0_17 = arith.constant 0 : index
    %48 = vector.load %arg6[%c0_16, %c0_17] : memref<128x128xf32, #tpu.memory_space<vmem>>, vector<128x128xf32>
    %cst_18 = arith.constant dense<0.000000e+00> : vector<256x128xf32>
    %49 = tpu.matmul %47, %48, %cst_18 {dimension_numbers = #tpu.dot_dimension_numbers<[1], [0], [0], [1], [0, 0, 1, 1], [], []>} : vector<256x128xf32>, vector<128x128xf32>, vector<256x128xf32> -> vector<256x128xf32>
    %c0_19 = arith.constant 0 : index
    %c0_20 = arith.constant 0 : index
    %50 = vector.load %arg7[%c0_19, %c0_20] : memref<1x128xf32, #tpu.memory_space<vmem>>, vector<1x128xf32>
    %51 = vector.broadcast %50 : vector<1x128xf32> to vector<256x128xf32>
    %52 = arith.addf %49, %51 : vector<256x128xf32>
    %c0_21 = arith.constant 0 : index
    %c0_22 = arith.constant 0 : index
    %53 = vector.load %arg8[%c0_21, %c0_22] : memref<1x128xf32, #tpu.memory_space<vmem>>, vector<1x128xf32>
    %c0_23 = arith.constant 0 : index
    %c0_24 = arith.constant 0 : index
    %54 = vector.load %arg9[%c0_23, %c0_24] : memref<1x128xf32, #tpu.memory_space<vmem>>, vector<1x128xf32>
    %55 = vector.broadcast %4 : vector<1x128xf32> to vector<256x128xf32>
    %56 = arith.mulf %52, %55 : vector<256x128xf32>
    %cst_25 = arith.constant dense<0.000000e+00> : vector<256xf32>
    %57 = vector.multi_reduction <add>, %56, %cst_25 [1] : vector<256x128xf32> to vector<256xf32>
    %58 = vector.shape_cast %57 : vector<256xf32> to vector<256x1xf32>
    %cst_26 = arith.constant 2.000000e-02 : f32
    %59 = vector.broadcast %cst_26 : f32 to vector<256x1xf32>
    %60 = arith.mulf %58, %59 : vector<256x1xf32>
    %61 = vector.broadcast %60 : vector<256x1xf32> to vector<256x128xf32>
    %62 = arith.subf %52, %61 : vector<256x128xf32>
    %63 = vector.broadcast %4 : vector<1x128xf32> to vector<256x128xf32>
    %64 = arith.mulf %62, %63 : vector<256x128xf32>
    %65 = arith.mulf %64, %64 : vector<256x128xf32>
    %cst_27 = arith.constant dense<0.000000e+00> : vector<256xf32>
    %66 = vector.multi_reduction <add>, %65, %cst_27 [1] : vector<256x128xf32> to vector<256xf32>
    %67 = vector.shape_cast %66 : vector<256xf32> to vector<256x1xf32>
    %cst_28 = arith.constant 2.000000e-02 : f32
    %68 = vector.broadcast %cst_28 : f32 to vector<256x1xf32>
    %69 = arith.mulf %67, %68 : vector<256x1xf32>
    %70 = vector.broadcast %60 : vector<256x1xf32> to vector<256x128xf32>
    %71 = arith.subf %52, %70 : vector<256x128xf32>
    %cst_29 = arith.constant 9.99999974E-6 : f32
    %72 = vector.broadcast %cst_29 : f32 to vector<256x1xf32>
    %73 = arith.addf %69, %72 : vector<256x1xf32>
    %74 = math.rsqrt %73 : vector<256x1xf32>
    %75 = vector.broadcast %74 : vector<256x1xf32> to vector<256x128xf32>
    %76 = arith.mulf %71, %75 : vector<256x128xf32>
    %77 = vector.broadcast %53 : vector<1x128xf32> to vector<256x128xf32>
    %78 = arith.mulf %76, %77 : vector<256x128xf32>
    %79 = vector.broadcast %54 : vector<1x128xf32> to vector<256x128xf32>
    %80 = arith.addf %78, %79 : vector<256x128xf32>
    %81 = math.tanh %80 : vector<256x128xf32>
    %c0_30 = arith.constant 0 : index
    %c0_31 = arith.constant 0 : index
    %82 = vector.load %arg10[%c0_30, %c0_31] : memref<1x128xf32, #tpu.memory_space<vmem>>, vector<1x128xf32>
    %cst_32 = arith.constant dense<0.000000e+00> : vector<1x256xf32>
    %83 = tpu.matmul %82, %81, %cst_32 {dimension_numbers = #tpu.dot_dimension_numbers<[1], [1], [0], [0], [0, 0, 1, 0], [], []>} : vector<1x128xf32>, vector<256x128xf32>, vector<1x256xf32> -> vector<1x256xf32>
    %c0_33 = arith.constant 0 : index
    %c0_34 = arith.constant 0 : index
    %84 = memref.load %arg11[%c0_33, %c0_34] : memref<1x1xf32, #tpu.memory_space<smem>>
    %85 = vector.broadcast %84 : f32 to vector<1x256xf32>
    %86 = arith.addf %83, %85 : vector<1x256xf32>
    %cst_35 = arith.constant 2.000000e+01 : f32
    %87 = vector.broadcast %cst_35 : f32 to vector<1x256xf32>
    %88 = arith.cmpf ogt, %86, %87 : vector<1x256xf32>
    %cst_36 = arith.constant 2.000000e+01 : f32
    %89 = vector.broadcast %cst_36 : f32 to vector<1x256xf32>
    %90 = arith.minimumf %86, %89 : vector<1x256xf32>
    %91 = math.exp %90 : vector<1x256xf32>
    %92 = math.log1p %91 : vector<1x256xf32>
    %93 = arith.select %88, %86, %92 : vector<1x256xi1>, vector<1x256xf32>
    %c0_37 = arith.constant 0 : index
    %c0_38 = arith.constant 0 : index
    %94 = vector.load %arg12[%c0_37, %c0_38] : memref<1x256xf32, #tpu.memory_space<vmem>>, vector<1x256xf32>
    tpu.vector_store %arg12[%c0_37, %c0_38], %93 {strides = array<i32>} : memref<1x256xf32, #tpu.memory_space<vmem>>, vector<1x256xf32>,
    return
  }
  func.func @transform_0(%arg0: i32) -> (i32, i32) {
    %c0_i32 = arith.constant 0 : i32
    %c0_i32_0 = arith.constant 0 : i32
    return %arg0, %c0_i32 : i32, i32
  }
  func.func @transform_1(%arg0: i32) -> (i32, i32) {
    %c0_i32 = arith.constant 0 : i32
    %c0_i32_0 = arith.constant 0 : i32
    %c0_i32_1 = arith.constant 0 : i32
    return %c0_i32, %c0_i32_0 : i32, i32
  }
  func.func @transform_2(%arg0: i32) -> (i32, i32) {
    %c0_i32 = arith.constant 0 : i32
    %c0_i32_0 = arith.constant 0 : i32
    %c0_i32_1 = arith.constant 0 : i32
    return %c0_i32, %c0_i32_0 : i32, i32
  }
  func.func @transform_3(%arg0: i32) -> (i32, i32) {
    %c0_i32 = arith.constant 0 : i32
    %c0_i32_0 = arith.constant 0 : i32
    %c0_i32_1 = arith.constant 0 : i32
    return %c0_i32, %c0_i32_0 : i32, i32
  }
  func.func @transform_4(%arg0: i32) -> (i32, i32) {
    %c0_i32 = arith.constant 0 : i32
    %c0_i32_0 = arith.constant 0 : i32
    %c0_i32_1 = arith.constant 0 : i32
    return %c0_i32, %c0_i32_0 : i32, i32
  }
  func.func @transform_5(%arg0: i32) -> (i32, i32) {
    %c0_i32 = arith.constant 0 : i32
    %c0_i32_0 = arith.constant 0 : i32
    %c0_i32_1 = arith.constant 0 : i32
    return %c0_i32, %c0_i32_0 : i32, i32
  }
  func.func @transform_6(%arg0: i32) -> (i32, i32) {
    %c0_i32 = arith.constant 0 : i32
    %c0_i32_0 = arith.constant 0 : i32
    %c0_i32_1 = arith.constant 0 : i32
    return %c0_i32, %c0_i32_0 : i32, i32
  }
  func.func @transform_7(%arg0: i32) -> (i32, i32) {
    %c0_i32 = arith.constant 0 : i32
    %c0_i32_0 = arith.constant 0 : i32
    %c0_i32_1 = arith.constant 0 : i32
    return %c0_i32, %c0_i32_0 : i32, i32
  }
  func.func @transform_8(%arg0: i32) -> (i32, i32) {
    %c0_i32 = arith.constant 0 : i32
    %c0_i32_0 = arith.constant 0 : i32
    %c0_i32_1 = arith.constant 0 : i32
    return %c0_i32, %c0_i32_0 : i32, i32
  }
  func.func @transform_9(%arg0: i32) -> (i32, i32) {
    %c0_i32 = arith.constant 0 : i32
    %c0_i32_0 = arith.constant 0 : i32
    %c0_i32_1 = arith.constant 0 : i32
    return %c0_i32, %c0_i32_0 : i32, i32
  }
  func.func @transform_10(%arg0: i32) -> (i32, i32) {
    %c0_i32 = arith.constant 0 : i32
    %c0_i32_0 = arith.constant 0 : i32
    %c0_i32_1 = arith.constant 0 : i32
    return %c0_i32, %c0_i32_0 : i32, i32
  }
  func.func @transform_11(%arg0: i32) -> (i32, i32) {
    %c0_i32 = arith.constant 0 : i32
    %c0_i32_0 = arith.constant 0 : i32
    return %c0_i32, %arg0 : i32, i32
  }
}

</mosaic_0001>

<bundles_post_ra>
// kernel: tpu_custom_call.1
= control target key start
LH: loop header
LB: loop body
LE: loop exit
PB: predicated region body
PF: predicated region fallthrough
CT: control target
= control target key end

     0   :  { %s5298_s0 = inlined_call_operand.vmem [shape: f32[512,2], index: 0, kind: input, shape index: {}]   ;;  %s5299_s1 = inlined_call_operand.vmem [shape: f32[2,128], index: 1, kind: input, shape index: {}]   ;;  %s5300_s2 = inlined_call_operand.vmem [shape: f32[1,128], index: 2, kind: input, shape index: {}]   ;;  %s5301_s3 = inlined_call_operand.vmem [shape: f32[1,128], index: 3, kind: input, shape index: {}]   ;;  %s5302_s4 = inlined_call_operand.vmem [shape: f32[1,128], index: 4, kind: input, shape index: {}]   ;;  %s5303_s5 = inlined_call_operand.vmem [shape: f32[128,128], index: 5, kind: input, shape index: {}]   ;;  %s5304_s6 = inlined_call_operand.vmem [shape: f32[1,128], index: 6, kind: input, shape index: {}]   ;;  %s5305_s7 = inlined_call_operand.vmem [shape: f32[1,128], index: 7, kind: input, shape index: {}]   ;;  %s5306_s8 = inlined_call_operand.vmem [shape: f32[1,128], index: 8, kind: input, shape index: {}]   ;;  %s5307_s9 = inlined_call_operand.vmem [shape: f32[1,128], index: 9, kind: input, shape index: {}]   ;;  %s5308_s10 = inlined_call_operand.<no memory space> [shape: f32[1,1], index: 10, kind: input, shape index: {}]   ;;  %s5309_s11 = inlined_call_operand.hbm [shape: f32[1,512], index: 11, kind: output, shape index: {}]  }
   0x1   :  { %16 = sst [smem:[#allocation2]] %s5308_s10 }
   0x2   :  { %17 = vsyncpa [#allocation4], 0 }
   0x3   :  { %19 = vsyncpa [#allocation4 + $0x1], 0  ;;  %s3287_s19 = smov 0   ;;  %s3289_s20 = smov 0  }
   0x4   :  { %s3291_s21 = smov 0   ;;  %s3293_s22 = smov 0  }
   0x5 LB: > { %s3308_s10 = sadd.s32 4294967295, %s3219_s22   ;;  %s2756_s23 = sadd.s32 4294967294, %s3219_s22   ;;  %s3219_s22 = sphi %s3293_s22, %s5365_s22   ;;  %s3215_s21 = sphi %s3291_s21, %s5364_s21   ;;  %s3211_s20 = sphi %s3289_s20, %s5363_s20   ;;  %s3207_s19 = sphi %s3287_s19, %s5362_s19  }
   0x6   : > { %s3312_s24 = sadd.s32 1, %s3219_s22   ;;  %s268_s25 = sadd.s32 1, %s3215_s21 }
   0x7   : > { %s265_s26 = ssub.s32 %s3219_s22, %s3312_s24  ;;  %p278_p0 = scmp.ne.s32.totalorder %s3215_s21, %s3211_s20 }
   0x8   : > { %p266_p1 = scmp.eq.s32.totalorder %s265_s26, 0  ;;  %p279_p2 = scmp.eq.s32.totalorder %s3308_s10, 1 }
   0x9   : > { %p284_p3 = scmp.ne.s32.totalorder %s3211_s20, %s3207_s19  ;;  %p285_p4 = scmp.eq.s32.totalorder %s2756_s23, 1 }
   0xa   : > { %s3323_s27 = scalar_select %p266_p1, %s3215_s21, %s268_s25  }
   0xb   : > { %p3325_p5 = por %p279_p2, %p278_p0  ;;  %p3329_p6 = por %p285_p4, %p284_p3 }
   0xc   : > { %p2759_p7 = scmp.ge.s32.totalorder %s3219_s22, 1  ;;  %p342_p8 = scmp.lt.s32.totalorder %s3219_s22, 3 }
   0xe   : > { %p343_p9 = pnand %p2759_p7, %p342_p8 }
   0xf   : > { %s2761_s30 = sshll.u32 (!%p343_p9), %s3308_s10, 5  ;;  %s379_s18 = sand.u32 (!%p343_p9), 1, %s3211_s20  }
  0x10   : > { %346 = sbr.rel (%p343_p9) target bundleno = 1821 (0x71d), region = 64  ;;  %p383_p10 = scmp.lt.s32.totalorder (!%p343_p9), %s2761_s30, 63 }
  0x11   : > { %s2760_s23 = sshll.u32 (!%p343_p9), %s379_s18, 1  ;;  %s2765_s25 = sshll.u32 (!%p343_p9), %s3308_s10, 1 }
  0x12   : > { %s381_s13 = scalar_lea.vmem (!%p343_p9), [#allocation3], %s2760_s23  ;;  %s2682_s10 = scalar_lea.sflag (!%p343_p9), [#allocation4], %s379_s18 }
  0x13   : > { %s2694_s14 = sshll.u32 (!%p343_p9), %s381_s13, 4  ;;  %s3177_s26 = scalar_lea.hbm (!%p343_p9), %s5309_s11, 4  ;;  %s2695_s14 = int_to_ptr.vmem [resolvable:$true] %s2694_s14 }
  0x15   : > { %v3221_v0 = vmov 1   ;;  %v3222_v1 = vmov 0   ;;  %s5367_s30 = smov (!%p383_p10, %s2761_s30), 63  ;;  %v389_v23 = vlaneseq  ;;  %v3392_v24 = vld [vmem:[%s5299_s1] ss:$0 sm:$0xff]  ;;  %v3223_v34 = vmov 0.0  }
  0x16   : > { %2861 = vset.pattern.permute.xlu0 %v3221_v0  ;;  %2859 = vset.pattern.permute.xlu2 %v3222_v1  ;;  %s2762_s12 = sshll.u32 %s5367_s30, 3  ;;  %v3398_v26 = vld [vmem:[%s5300_s2] ss:$0 sm:$0xff]  ;;  %v3403_v27 = vld [vmem:[%s5299_s1 + $0x1] ss:$0 sm:$0xff] }
  0x17   : > { %2858 = vset.pattern.permute.xlu1 %v3222_v1  ;;  %s3342_s15 = scalar_lea.vmem %s5298_s0, %s2762_s12  ;;  %v390_v25 = vand.u32 127, %v389_v23  ;;  %s2692_s12 = scalar_lea.hbm %s5309_s11, %s2765_s25 }
  0x18   : > { %v418_v2 = vld [vmem:[%s3342_s15 + $0xb8] sm:$0xff]  ;;  %v399_v3 = vld [vmem:[%s3342_s15 + $0x20] sm:$0xff]  ;;  %v397_v4 = vld [vmem:[%s3342_s15 + $0x10] sm:$0xff]  ;;  %s2696_s16 = sshll.u32 %s2692_s12, 4  ;;  %s2697_s16 = int_to_ptr.hbm [resolvable:$true] %s2696_s16 }
  0x19   : > { %750 = vperm.xlu0 %2861, %v418_v2   ;;  %450 = vperm.xlu2 %2859, %v399_v3   ;;  %v3348_v5 = vld [vmem:[%s3342_s15 + $0x28] sm:$0xff]  ;;  %v395_v6 = vld [vmem:[%s3342_s15] sm:$0xff]  ;;  %v398_v7 = vld [vmem:[%s3342_s15 + $0x18] sm:$0xff]  ;;  %vm391_vm0 = vcmp.lt.s32.totalorder %v390_v25, 50  ;;  %s3171_s17 = sshra.s32 %s2697_s16, 4  ;;  %s3172_s17 = int_to_ptr.hbm [resolvable:$true] %s3171_s17 }
  0x1a   : > { %440 = vperm.xlu1 %2858, %v397_v4   ;;  %v3354_v8 = vld [vmem:[%s3342_s15 + $0x40] sm:$0xff]  ;;  %v396_v9 = vld [vmem:[%s3342_s15 + $0x8] sm:$0xff]  ;;  %v3358_v10 = vld [vmem:[%s3342_s15 + $0x38] sm:$0xff]  ;;  %v3408_v35 = vsel %vm391_vm0, 1.0, %v3223_v34  ;;  %p3178_p0 = scmp.lt.s32.totalorder %s3172_s17, %s5309_s11 }
  0x1b   : > { %v417_v11 = vld [vmem:[%s3342_s15 + $0xb0] sm:$0xff]  ;;  %v423_v12 = vld [vmem:[%s3342_s15 + $0xe0] sm:$0xff]  ;;  %v406_v14 = vld [vmem:[%s3342_s15 + $0x58] sm:$0xff] }
  0x1c   : > { %v419_v13 = vld [vmem:[%s3342_s15 + $0xc0] sm:$0xff]  ;;  %v420_v15 = vld [vmem:[%s3342_s15 + $0xc8] sm:$0xff]  ;;  %v421_v16 = vld [vmem:[%s3342_s15 + $0xd0] sm:$0xff] }
  0x1d   : > { %v422_v17 = vld [vmem:[%s3342_s15 + $0xd8] sm:$0xff]  ;;  %v424_v18 = vld [vmem:[%s3342_s15 + $0xe8] sm:$0xff]  ;;  %v3377_v19 = vld [vmem:[%s3342_s15 + $0x30] sm:$0xff] }
  0x1e   : > { %v3419_v44 = vld [vmem:[%s3342_s15 + $0x60] sm:$0xff]  ;;  %v425_v51 = vld [vmem:[%s3342_s15 + $0xf0] sm:$0xff]  ;;  %v408_v56 = vld [vmem:[%s3342_s15 + $0x68] sm:$0xff] }
  0x1f   : > { %v426_v57 = vld [vmem:[%s3342_s15 + $0xf8] sm:$0xff] }
  0x21   : > { %455 = vperm.xlu2 %2859, %v3348_v5   ;;  %658 = vperm.xlu0 %2861, %v395_v6  }
  0x22   : > { %445 = vperm.xlu1 %2858, %v398_v7  }
  0x29   : > { %470 = vperm.xlu2 %2859, %v3354_v8   ;;  %662 = vperm.xlu0 %2861, %v396_v9  }
  0x2a   : > { %465 = vperm.xlu1 %2858, %v3358_v10  }
  0x31   : > { %545 = vperm.xlu2 %2859, %v418_v2   ;;  %666 = vperm.xlu0 %2861, %v397_v4  }
  0x32   : > { %2860 = vset.pattern.permute.xlu1 %v3221_v0 }
  0x33   : > { %746 = vperm.xlu1 %2860, %v417_v11  }
  0x39   : > { %2863 = vset.pattern.permute.xlu2 %v3221_v0  ;;  %770 = vperm.xlu0 %2861, %v423_v12  }
  0x3a   : > { %754 = vperm.xlu2 %2863, %v419_v13  }
  0x3b   : > { %2862 = vset.pattern.permute.xlu1 %v3222_v1 }
  0x3c   : > { %550 = vperm.xlu1 %2862, %v419_v13  }
  0x41   : > { %702 = vperm.xlu0 %2861, %v406_v14  }
  0x42   : > { %758 = vperm.xlu2 %2863, %v420_v15  }
  0x44   : > { %555 = vperm.xlu1 %2862, %v420_v15  }
  0x49   : > { %674 = vperm.xlu0 %2861, %v399_v3  }
  0x4a   : > { %762 = vperm.xlu2 %2863, %v421_v16  }
  0x4c   : > { %560 = vperm.xlu1 %2862, %v421_v16  }
  0x51   : > { %2867 = vset.pattern.permute.xlu0 %v3222_v1 }
  0x52   : > { %766 = vperm.xlu2 %2863, %v422_v17   ;;  %430 = vperm.xlu0 %2867, %v395_v6  }
  0x54   : > { %565 = vperm.xlu1 %2862, %v422_v17  }
  0x5a   : > { %2864 = vset.pattern.permute.xlu2 %v3222_v1  ;;  %435 = vperm.xlu0 %2867, %v396_v9  }
  0x5b   : > { %570 = vperm.xlu2 %2864, %v423_v12  }
  0x5c   : > { %2866 = vset.pattern.permute.xlu1 %v3221_v0 }
  0x5d   : > { %774 = vperm.xlu1 %2866, %v424_v18  }
  0x62   : > { %460 = vperm.xlu0 %2867, %v3377_v19  }
  0x63   : > { %2865 = vset.pattern.permute.xlu2 %v3221_v0 }
  0x64   : > { %670 = vperm.xlu2 %2865, %v398_v7  }
  0x65   : > { %2869 = vset.pattern.permute.xlu1 %v3222_v1 }
  0x6a   : > { %540 = vperm.xlu0 %2867, %v417_v11  }
  0x6c   : > { %2868 = vset.pattern.permute.xlu2 %v3222_v1 }
  0x72   : > { %485 = vperm.xlu0 %2867, %v406_v14  }
  0x73   : > { %v3383_v20 = vpop.permute.xlu2 %450 }
  0x7a   : > { %575 = vperm.xlu0 %2867, %v424_v18  }
  0x7b   : > { %v3385_v21 = vpop.permute.xlu2 %455 }
  0x83   : > { %v3387_v22 = vpop.permute.xlu2 %470 }
  0x8b   : > { %v751_v28 = vpop.permute.xlu0 %750  ;;  %v546_v29 = vpop.permute.xlu2 %545 }
  0x8c   : > { %v612_v30 = vmul.f32 %v3392_v24, %v546_v29  ;;  %v441_v31 = vpop.permute.xlu1 %440  ;;  %v809_v32 = vmul.f32 %v3403_v27, %v751_v28  ;;  %v3467_v28 = vld [vmem:[%s3342_s15 + $0x70] sm:$0xff] }
  0x8d   : > { %v591_v4 = vmul.f32 %v3392_v24, %v441_v31 }
  0x8e   : > { %v647_v33 = vadd.f32 %v3398_v26, %v612_v30 }
  0x8f   : > { %v626_v11 = vadd.f32 %v3398_v26, %v591_v4 }
  0x90   : > { %v3410_v36 = vadd.f32 %v809_v32, %v647_v33 }
  0x92   : > { %v875_v37 = vmul.f32 %v3408_v35, %v3410_v36 }
  0x93   : > { %v659_v38 = vpop.permute.xlu0 %658 }
  0x94   : > { %930 = vadd.xlane.f32.xlu2 %v875_v37  ;;  %v3414_v39 = vpop.permute.xlu1 %445  ;;  %v755_v46 = vpop.permute.xlu2 %754  ;;  %v786_v60 = vmul.f32 %v3403_v27, %v659_v38 }
  0x95   : > { %v810_v48 = vmul.f32 %v3403_v27, %v755_v46 }
  0x9b   : > { %v663_v40 = vpop.permute.xlu0 %662 }
  0x9c   : > { %v3416_v41 = vpop.permute.xlu1 %465  ;;  %v787_v6 = vmul.f32 %v3403_v27, %v663_v40  ;;  %v759_v31 = vpop.permute.xlu2 %758 }
  0xa3   : > { %v667_v42 = vpop.permute.xlu0 %666 }
  0xa4   : > { %v788_v12 = vmul.f32 %v3403_v27, %v667_v42  ;;  %v763_v33 = vpop.permute.xlu2 %762 }
  0xa5   : > { %v747_v43 = vpop.permute.xlu1 %746  ;;  %v812_v42 = vmul.f32 %v3403_v27, %v763_v33 }
  0xa6   : > { %v3460_v15 = vadd.f32 %v788_v12, %v626_v11  ;;  %v808_v18 = vmul.f32 %v3403_v27, %v747_v43  ;;  %v811_v12 = vmul.f32 %v3403_v27, %v759_v31 }
  0xa8   : > { %v854_v16 = vmul.f32 %v3408_v35, %v3460_v15 }
  0xab   : > { %v3421_v45 = vpop.permute.xlu0 %770 }
  0xac   : > { %490 = vperm.xlu2 %2868, %v3419_v44   ;;  %v767_v37 = vpop.permute.xlu2 %766 }
  0xae   : > { %v551_v47 = vpop.permute.xlu1 %550 }
  0xaf   : > { %v613_v49 = vmul.f32 %v3392_v24, %v551_v47 }
  0xb1   : > { %v648_v50 = vadd.f32 %v3398_v26, %v613_v49 }
  0xb3   : > { %v3428_v52 = vpop.permute.xlu0 %702  ;;  %v3430_v53 = vadd.f32 %v810_v48, %v648_v50 }
  0xb4   : > { %2870 = vset.pattern.permute.xlu2 %v3221_v0 }
  0xb5   : > { %778 = vperm.xlu2 %2870, %v425_v51   ;;  %v876_v54 = vmul.f32 %v3408_v35, %v3430_v53  ;;  %v571_v46 = vpop.permute.xlu2 %570 }
  0xb6   : > { %v556_v34 = vpop.permute.xlu1 %555 }
  0xb7   : > { %932 = vadd.xlane.f32.xlu0 %v876_v54  ;;  %v813_v54 = vmul.f32 %v3403_v27, %v767_v37 }
  0xbb   : > { %v3435_v55 = vpop.permute.xlu0 %674 }
  0xbd   : > { %2871 = vset.pattern.permute.xlu2 %v3222_v1 }
  0xbe   : > { %495 = vperm.xlu2 %2871, %v408_v56   ;;  %v561_v38 = vpop.permute.xlu1 %560 }
  0xbf   : > { %v615_v40 = vmul.f32 %v3392_v24, %v561_v38 }
  0xc1   : > { %v650_v43 = vadd.f32 %v3398_v26, %v615_v40 }
  0xc3   : > { %v3480_v47 = vadd.f32 %v812_v42, %v650_v43 }
  0xc4   : > { %v431_v58 = vpop.permute.xlu0 %430 }
  0xc5   : > { %v589_v59 = vmul.f32 %v3392_v24, %v431_v58  ;;  %v878_v50 = vmul.f32 %v3408_v35, %v3480_v47 }
  0xc6   : > { %585 = vperm.xlu2 %2871, %v426_v57   ;;  %v566_v48 = vpop.permute.xlu1 %565 }
  0xc7   : > { %v624_v61 = vadd.f32 %v3398_v26, %v589_v59  ;;  %v616_v49 = vmul.f32 %v3392_v24, %v566_v48 }
  0xc9   : > { %v3443_v62 = vadd.f32 %v786_v60, %v624_v61 }
  0xcb   : > { %v852_v63 = vmul.f32 %v3408_v35, %v3443_v62 }
  0xcc   : > { %v436_v2 = vpop.permute.xlu0 %435 }
  0xcd   : > { %v590_v3 = vmul.f32 %v3392_v24, %v436_v2  ;;  %884 = vadd.xlane.f32.xlu0 %v852_v63 }
  0xce   : > { %2872 = vset.pattern.permute.xlu2 %v3221_v0 }
  0xcf   : > { %v625_v7 = vadd.f32 %v3398_v26, %v590_v3  ;;  %710 = vperm.xlu2 %2872, %v408_v56   ;;  %v651_v56 = vadd.f32 %v3398_v26, %v616_v49  ;;  %v775_v37 = vpop.permute.xlu1 %774  ;;  %v593_v49 = vmul.f32 %v3392_v24, %v3383_v20 }
  0xd0   : > { %v815_v43 = vmul.f32 %v3403_v27, %v775_v37 }
  0xd1   : > { %v3452_v9 = vadd.f32 %v787_v6, %v625_v7  ;;  %v3490_v58 = vadd.f32 %v813_v54, %v651_v56  ;;  %v614_v7 = vmul.f32 %v3392_v24, %v556_v34  ;;  %v790_v54 = vmul.f32 %v3403_v27, %v3435_v55 }
  0xd3   : > { %v853_v13 = vmul.f32 %v3408_v35, %v3452_v9  ;;  %v879_v61 = vmul.f32 %v3408_v35, %v3490_v58 }
  0xd4   : > { %v3458_v14 = vpop.permute.xlu0 %460 }
  0xd5   : > { %886 = vadd.xlane.f32.xlu0 %v853_v13  ;;  %v649_v13 = vadd.f32 %v3398_v26, %v614_v7  ;;  %v797_v7 = vmul.f32 %v3403_v27, %v3428_v52 }
  0xd7   : > { %782 = vperm.xlu2 %2872, %v426_v57   ;;  %v671_v57 = vpop.permute.xlu2 %670 }
  0xd8   : > { %v789_v60 = vmul.f32 %v3403_v27, %v671_v57 }
  0xdc   : > { %v541_v17 = vpop.permute.xlu0 %540 }
  0xdd   : > { %v611_v25 = vmul.f32 %v3392_v24, %v541_v17  ;;  %888 = vadd.xlane.f32.xlu0 %v854_v16  ;;  %v617_v17 = vmul.f32 %v3392_v24, %v571_v46 }
  0xdf   : > { %v646_v29 = vadd.f32 %v3398_v26, %v611_v25  ;;  %2873 = vset.pattern.permute.xlu2 %v3222_v1  ;;  %v652_v25 = vadd.f32 %v3398_v26, %v617_v17 }
  0xe0   : > { %500 = vperm.xlu2 %2873, %v3467_v28  }
  0xe1   : > { %v3472_v30 = vadd.f32 %v808_v18, %v646_v29  ;;  %v3509_v18 = vadd.f32 %v811_v12, %v649_v13  ;;  %v3563_v12 = vld [vmem:[%s3342_s15 + $0x78] sm:$0xff] }
  0xe3   : > { %v874_v32 = vmul.f32 %v3408_v35, %v3472_v30  ;;  %v877_v29 = vmul.f32 %v3408_v35, %v3509_v18 }
  0xe4   : > { %v486_v6 = vpop.permute.xlu0 %485 }
  0xe5   : > { %928 = vadd.xlane.f32.xlu1 %v874_v32  ;;  %v814_v32 = vmul.f32 %v3403_v27, %v3421_v45 }
  0xe7   : > { %v3517_v34 = vadd.f32 %v814_v32, %v652_v25 }
  0xe8   : > { %2877 = vset.pattern.permute.xlu2 %v3221_v0 }
  0xe9   : > { %v880_v46 = vmul.f32 %v3408_v35, %v3517_v34 }
  0xfe   : > { %580 = vperm.xlu1 %2869, %v425_v51   ;;  %v592_v51 = vmul.f32 %v3392_v24, %v3414_v39 }
 0x100   : > { %v627_v59 = vadd.f32 %v3398_v26, %v592_v51 }
 0x102   : > { %v3496_v3 = vadd.f32 %v789_v60, %v627_v59  ;;  %v600_v60 = vmul.f32 %v3392_v24, %v486_v6 }
 0x104   : > { %v855_v39 = vmul.f32 %v3408_v35, %v3496_v3 }
 0x106   : > { %2874 = vset.pattern.permute.xlu1 %v3221_v0 }
 0x107   : > { %v931_v63 = vpop.xlane.xlu2 %930 }
 0x108   : > { %v971_v2 = vmul.f32 0.02, %v931_v63 }
 0x109   : > { %936 = vadd.xlane.f32.xlu2 %v878_v50 }
 0x10a   : > { %v3499_v4 = vsub.f32 %v3410_v36, %v971_v2  ;;  %v576_v36 = vpop.permute.xlu0 %575  ;;  %v635_v2 = vadd.f32 %v3398_v26, %v600_v60  ;;  %v1667_v60 = vld [vmem:[%s5303_s5 + $0x48] sm:$0xff] }
 0x10b   : > { %v618_v31 = vmul.f32 %v3392_v24, %v576_v36 }
 0x10c   : > { %v1035_v11 = vmul.f32 %v3408_v35, %v3499_v4 }
 0x10d   : > { %v653_v42 = vadd.f32 %v3398_v26, %v618_v31 }
 0x10e   : > { %v1067_v16 = vmul.f32 %v1035_v11, %v1035_v11 }
 0x10f   : > { %v3530_v50 = vadd.f32 %v815_v43, %v653_v42  ;;  %v3546_v55 = vpop.permute.xlu2 %490 }
 0x111   : > { %938 = vadd.xlane.f32.xlu2 %v879_v61  ;;  %v881_v56 = vmul.f32 %v3408_v35, %v3530_v50 }
 0x117   : > { %v779_v6 = vpop.permute.xlu2 %778 }
 0x118   : > { %v816_v36 = vmul.f32 %v3403_v27, %v779_v6 }
 0x119   : > { %890 = vadd.xlane.f32.xlu2 %v855_v39 }
 0x11f   : > { %v3559_v11 = vpop.permute.xlu2 %495 }
 0x121   : > { %1122 = vadd.xlane.f32.xlu2 %v1067_v16 }
 0x127   : > { %v3566_v52 = vpop.permute.xlu2 %585 }
 0x128   : > { %934 = vadd.xlane.f32.xlu1 %v877_v29 }
 0x12a   : > { %v933_v33 = vpop.xlane.xlu0 %932 }
 0x12b   : > { %v972_v38 = vmul.f32 0.02, %v933_v33 }
 0x12d   : > { %v3520_v40 = vsub.f32 %v3430_v53, %v972_v38  ;;  %v628_v53 = vadd.f32 %v3398_v26, %v593_v49  ;;  %v1670_v49 = vld [vmem:[%s5303_s5 + $0x60] sm:$0xff] }
 0x12f   : > { %v1036_v45 = vmul.f32 %v3408_v35, %v3520_v40  ;;  %v3537_v57 = vadd.f32 %v790_v54, %v628_v53  ;;  %v3572_v13 = vpop.permute.xlu2 %710  ;;  %v1669_v54 = vld [vmem:[%s5303_s5 + $0x58] sm:$0xff] }
 0x130   : > { %940 = vadd.xlane.f32.xlu1 %v880_v46  ;;  %v1673_v46 = vld [vmem:[%s5303_s5 + $0x78] sm:$0xff] }
 0x131   : > { %v1068_v48 = vmul.f32 %v1036_v45, %v1036_v45  ;;  %v856_v51 = vmul.f32 %v3408_v35, %v3537_v57  ;;  %2770 = vmatpush.msra.mxu3 %v1673_v46  ;;  %1678 = vmatpush.msra.mxu0 %v1673_v46  ;;  %v1672_v45 = vld [vmem:[%s5303_s5 + $0x70] sm:$0xff] }
 0x132   : > { %2768 = vmatpush.msra.mxu1 %v1673_v46  ;;  %2769 = vmatpush.msra.mxu2 %v1673_v46 }
 0x133   : > { %1124 = vadd.xlane.f32.xlu2 %v1068_v48  ;;  %2773 = vmatpush.msra.mxu3 %v1672_v45  ;;  %v1671_v48 = vld [vmem:[%s5303_s5 + $0x68] sm:$0xff] }
 0x134   : > { %1679 = vmatpush.msra.mxu0 %v1672_v45  ;;  %2771 = vmatpush.msra.mxu1 %v1672_v45 }
 0x135   : > { %2772 = vmatpush.msra.mxu2 %v1672_v45  ;;  %2776 = vmatpush.msra.mxu3 %v1671_v48  ;;  %v1662_v45 = vld [vmem:[%s5303_s5 + $0x20] sm:$0xff] }
 0x136   : > { %1680 = vmatpush.msra.mxu0 %v1671_v48  ;;  %2774 = vmatpush.msra.mxu1 %v1671_v48 }
 0x137   : > { %v3575_v16 = vpop.permute.xlu2 %782  ;;  %2775 = vmatpush.msra.mxu2 %v1671_v48  ;;  %2779 = vmatpush.msra.mxu3 %v1670_v49  ;;  %v1661_v48 = vld [vmem:[%s5303_s5 + $0x18] sm:$0xff] }
 0x138   : > { %942 = vadd.xlane.f32.xlu1 %v881_v56  ;;  %1681 = vmatpush.msra.mxu0 %v1670_v49 }
 0x139   : > { %2777 = vmatpush.msra.mxu1 %v1670_v49  ;;  %2778 = vmatpush.msra.mxu2 %v1670_v49  ;;  %v594_v49 = vmul.f32 %v3392_v24, %v3385_v21  ;;  %v1660_v21 = vld [vmem:[%s5303_s5 + $0x10] sm:$0xff] }
 0x13a   : > { %2782 = vmatpush.msra.mxu3 %v1669_v54  ;;  %1682 = vmatpush.msra.mxu0 %v1669_v54 }
 0x13b   : > { %2780 = vmatpush.msra.mxu1 %v1669_v54  ;;  %2781 = vmatpush.msra.mxu2 %v1669_v54 }
 0x140   : > { %892 = vadd.xlane.f32.xlu1 %v856_v51  ;;  %v3596_v42 = vpop.xlane.xlu0 %884 }
 0x148   : > { %v3615_v56 = vpop.xlane.xlu0 %886 }
 0x158   : > { %v929_v59 = vpop.xlane.xlu1 %928 }
 0x159   : > { %v970_v20 = vmul.f32 0.02, %v929_v59  ;;  %706 = vperm.xlu1 %2874, %v3419_v44   ;;  %v3554_v44 = vadd.f32 %v797_v7, %v635_v2  ;;  %v1668_v59 = vld [vmem:[%s5303_s5 + $0x50] sm:$0xff]  ;;  %v1666_v2 = vld [vmem:[%s5303_s5 + $0x40] sm:$0xff]  ;;  %v1665_v7 = vld [vmem:[%s5303_s5 + $0x38] sm:$0xff] }
 0x15a   : > { %2785 = vmatpush.msra.mxu3 %v1668_v59  ;;  %1683 = vmatpush.msra.mxu0 %v1668_v59 }
 0x15b   : > { %v3544_v61 = vsub.f32 %v3472_v30, %v970_v20  ;;  %v863_v30 = vmul.f32 %v3408_v35, %v3554_v44  ;;  %2783 = vmatpush.msra.mxu1 %v1668_v59  ;;  %2784 = vmatpush.msra.mxu2 %v1668_v59 }
 0x15c   : > { %2788 = vmatpush.msra.mxu3 %v1667_v60  ;;  %1684 = vmatpush.msra.mxu0 %v1667_v60 }
 0x15d   : > { %v1034_v63 = vmul.f32 %v3408_v35, %v3544_v61  ;;  %2786 = vmatpush.msra.mxu1 %v1667_v60  ;;  %2787 = vmatpush.msra.mxu2 %v1667_v60 }
 0x15e   : > { %2791 = vmatpush.msra.mxu3 %v1666_v2  ;;  %1685 = vmatpush.msra.mxu0 %v1666_v2 }
 0x15f   : > { %v1066_v39 = vmul.f32 %v1034_v63, %v1034_v63  ;;  %v601_v63 = vmul.f32 %v3392_v24, %v3546_v55  ;;  %2789 = vmatpush.msra.mxu1 %v1666_v2  ;;  %2790 = vmatpush.msra.mxu2 %v1666_v2 }
 0x160   : > { %2794 = vmatpush.msra.mxu3 %v1665_v7  ;;  %1686 = vmatpush.msra.mxu0 %v1665_v7 }
 0x161   : > { %1120 = vadd.xlane.f32.xlu0 %v1066_v39  ;;  %678 = vperm.xlu1 %2874, %v3348_v5   ;;  %v3569_v5 = vld [vmem:[%s3342_s15 + $0x50] sm:$0xff]  ;;  %v636_v55 = vadd.f32 %v3398_v26, %v601_v63  ;;  %v629_v63 = vadd.f32 %v3398_v26, %v594_v49 }
 0x162   : > { %2792 = vmatpush.msra.mxu1 %v1665_v7  ;;  %2793 = vmatpush.msra.mxu2 %v1665_v7 }
 0x169   : > { %906 = vadd.xlane.f32.xlu0 %v863_v30  ;;  %714 = vperm.xlu1 %2874, %v3467_v28   ;;  %v3577_v28 = vpop.permute.xlu2 %500 }
 0x170   : > { %v581_v17 = vpop.permute.xlu1 %580 }
 0x171   : > { %686 = vperm.xlu1 %2874, %v3358_v10   ;;  %v619_v10 = vmul.f32 %v3392_v24, %v581_v17  ;;  %v1664_v17 = vld [vmem:[%s5303_s5 + $0x30] sm:$0xff] }
 0x172   : > { %2797 = vmatpush.msra.mxu3 %v1664_v17  ;;  %1687 = vmatpush.msra.mxu0 %v1664_v17 }
 0x173   : > { %v654_v25 = vadd.f32 %v3398_v26, %v619_v10  ;;  %v3639_v10 = vpop.xlane.xlu0 %888  ;;  %2795 = vmatpush.msra.mxu1 %v1664_v17  ;;  %2796 = vmatpush.msra.mxu2 %v1664_v17  ;;  %v817_v17 = vmul.f32 %v3403_v27, %v3575_v16 }
 0x175   : > { %v3586_v31 = vadd.f32 %v816_v36, %v654_v25  ;;  %v1663_v25 = vld [vmem:[%s5303_s5 + $0x28] sm:$0xff] }
 0x176   : > { %2800 = vmatpush.msra.mxu3 %v1663_v25  ;;  %1688 = vmatpush.msra.mxu0 %v1663_v25 }
 0x177   : > { %2798 = vmatpush.msra.mxu1 %v1663_v25  ;;  %2799 = vmatpush.msra.mxu2 %v1663_v25  ;;  %v1658_v25 = vld [vmem:[%s5303_s5] sm:$0xff] }
 0x178   : > { %2803 = vmatpush.msra.mxu3 %v1662_v45  ;;  %1689 = vmatpush.msra.mxu0 %v1662_v45 }
 0x179   : > { %718 = vperm.xlu1 %2874, %v3563_v12   ;;  %2801 = vmatpush.msra.mxu1 %v1662_v45 }
 0x17a   : > { %2802 = vmatpush.msra.mxu2 %v1662_v45  ;;  %2806 = vmatpush.msra.mxu3 %v1661_v48 }
 0x17b   : > { %1690 = vmatpush.msra.mxu0 %v1661_v48  ;;  %2804 = vmatpush.msra.mxu1 %v1661_v48 }
 0x17c   : > { %v3582_v29 = vpop.xlane.xlu2 %936  ;;  %2809 = vmatpush.msra.mxu3 %v1660_v21  ;;  %2805 = vmatpush.msra.mxu2 %v1661_v48 }
 0x17d   : > { %1691 = vmatpush.msra.mxu0 %v1660_v21  ;;  %2807 = vmatpush.msra.mxu1 %v1660_v21 }
 0x17e   : > { %2808 = vmatpush.msra.mxu2 %v1660_v21  ;;  %v602_v21 = vmul.f32 %v3392_v24, %v3559_v11 }
 0x181   : > { %698 = vperm.xlu1 %2874, %v3569_v5  }
 0x184   : > { %v3590_v33 = vpop.xlane.xlu2 %938 }
 0x189   : > { %2876 = vset.pattern.permute.xlu1 %v3222_v1  ;;  %v882_v1 = vmul.f32 %v3408_v35, %v3586_v31 }
 0x18c   : > { %v3594_v38 = vpop.xlane.xlu2 %890 }
 0x194   : > { %v1123_v53 = vpop.xlane.xlu2 %1122 }
 0x195   : > { %v1163_v20 = vmul.f32 0.02, %v1123_v53 }
 0x197   : > { %v3630_v39 = vadd.f32 1e-05, %v1163_v20  ;;  %v620_v20 = vmul.f32 %v3392_v24, %v3566_v52 }
 0x199   : > { %2886 = vrsqrt.f32 %v3630_v39  ;;  %vm1440_vm3 = vweird.f32 %v3630_v39 }
 0x19b   : > { %v3584_v32 = vpop.xlane.xlu1 %934 }
 0x19f   : > { %v3660_v59 = vpop.eup %2886 }
 0x1a0   : > { %v1435_v52 = vmul.f32 %v3660_v59, %v3630_v39  ;;  %vm1441_vm1 = vweird.f32 %v3660_v59 }
 0x1a1   : > { %vm3718_vm4 = vmor %vm1440_vm3, %vm1441_vm1 }
 0x1a2   : > { %v1436_v48 = vmul.f32 %v3660_v59, %v1435_v52 }
 0x1a3   : > { %v3592_v37 = vpop.xlane.xlu1 %940 }
 0x1a6   : > { %v1125_v6 = vpop.xlane.xlu2 %1124 }
 0x1ab   : > { %944 = vadd.xlane.f32.xlu1 %v882_v1  ;;  %v3598_v43 = vpop.xlane.xlu1 %942  ;;  %v1164_v1 = vmul.f32 0.02, %v1125_v6 }
 0x1ad   : > { %v3658_v54 = vadd.f32 1e-05, %v1164_v1 }
 0x1af   : > { %2888 = vrsqrt.f32 %v3658_v54  ;;  %vm1450_vm8 = vweird.f32 %v3658_v54 }
 0x1b3   : > { %v3617_v51 = vpop.xlane.xlu1 %892 }
 0x1b5   : > { %v3688_v49 = vpop.eup %2888 }
 0x1b6   : > { %vm1451_vm7 = vweird.f32 %v3688_v49 }
 0x1b7   : > { %vm1452_vm9 = vmor %vm1450_vm8, %vm1451_vm7 }
 0x1cb   : > { %v707_v30 = vpop.permute.xlu1 %706 }
 0x1cc   : > { %v798_v36 = vmul.f32 %v3403_v27, %v707_v30  ;;  %v655_v30 = vadd.f32 %v3398_v26, %v620_v20  ;;  %v1437_v20 = vmul.f32 0.5, %v1436_v48 }
 0x1ce   : > { %v3646_v46 = vadd.f32 %v798_v36, %v636_v55  ;;  %v1659_v55 = vld [vmem:[%s5303_s5 + $0x8] sm:$0xff]  ;;  %v3686_v16 = vadd.f32 %v817_v17, %v655_v30  ;;  %v1438_v52 = vsub.f32 1.5, %v1437_v20  ;;  %v603_v17 = vmul.f32 %v3392_v24, %v3577_v28 }
 0x1cf   : > { %2812 = vmatpush.msra.mxu3 %v1659_v55  ;;  %1692 = vmatpush.msra.mxu0 %v1659_v55 }
 0x1d0   : > { %v864_v53 = vmul.f32 %v3408_v35, %v3646_v46  ;;  %2810 = vmatpush.msra.mxu1 %v1659_v55  ;;  %2811 = vmatpush.msra.mxu2 %v1659_v55  ;;  %v1439_v48 = vmul.f32 %v3660_v59, %v1438_v52  ;;  %v638_v28 = vadd.f32 %v3398_v26, %v603_v17  ;;  %v415_v17 = vld [vmem:[%s3342_s15 + $0xa0] sm:$0xff] }
 0x1d1   : > { %2815 = vmatpush.msra.mxu3 %v1658_v25  ;;  %1693 = vmatpush.msra.mxu0 %v1658_v25 }
 0x1d2   : > { %908 = vadd.xlane.f32.xlu0 %v864_v53  ;;  %2813 = vmatpush.msra.mxu1 %v1658_v25  ;;  %v948_v53 = vmul.f32 0.02, %v3596_v42  ;;  %v799_v42 = vmul.f32 %v3403_v27, %v3572_v13 }
 0x1d3   : > { %v679_v60 = vpop.permute.xlu1 %678  ;;  %2814 = vmatpush.msra.mxu2 %v1658_v25  ;;  %v3707_v25 = vld [vmem:[%s3342_s15 + $0x98] sm:$0xff] }
 0x1d4   : > { %v791_v2 = vmul.f32 %v3403_v27, %v679_v60  ;;  %v1121_v7 = vpop.xlane.xlu0 %1120  ;;  %v1445_v60 = vmul.f32 %v3688_v49, %v3658_v54 }
 0x1d5   : > { %v1162_v6 = vmul.f32 0.02, %v1121_v7  ;;  %v3698_v7 = vsub.f32 %v3443_v62, %v948_v53 }
 0x1d6   : > { %v3678_v36 = vadd.f32 %v791_v2, %v629_v63  ;;  %v883_v63 = vmul.f32 %v3408_v35, %v3686_v16  ;;  %v1446_v30 = vmul.f32 %v3688_v49, %v1445_v60 }
 0x1d7   : > { %v1194_v1 = vadd.f32 1e-05, %v1162_v6  ;;  %v637_v6 = vadd.f32 %v3398_v26, %v602_v21  ;;  %v1012_v62 = vmul.f32 %v3408_v35, %v3698_v7 }
 0x1d8   : > { %v857_v45 = vmul.f32 %v3408_v35, %v3678_v36  ;;  %v1447_v20 = vmul.f32 0.5, %v1446_v30 }
 0x1d9   : > { %2890 = vrsqrt.f32 %v1194_v1  ;;  %v3714_v21 = vadd.f32 %v799_v42, %v637_v6  ;;  %v1044_v60 = vmul.f32 %v1012_v62, %v1012_v62  ;;  %vm1430_vm5 = vweird.f32 %v1194_v1 }
 0x1da   : > { %894 = vadd.xlane.f32.xlu2 %v857_v45  ;;  %v1443_v6 = vsel %vm3718_vm4, %v3660_v59, %v1439_v48  ;;  %v1448_v42 = vsub.f32 1.5, %v1447_v20  ;;  %v974_v62 = vmul.f32 0.02, %v3582_v29 }
 0x1db   : > { %v715_v53 = vpop.permute.xlu1 %714  ;;  %v865_v30 = vmul.f32 %v3408_v35, %v3714_v21 }
 0x1dc   : > { %v800_v52 = vmul.f32 %v3403_v27, %v715_v53  ;;  %v1547_v53 = vmul.f32 %v1443_v6, %v3499_v4  ;;  %v3749_v29 = vsub.f32 %v3480_v47, %v974_v62 }
 0x1dd   : > { %910 = vadd.xlane.f32.xlu1 %v865_v30 }
 0x1df   : > { %v2891_v2 = vpop.eup %2890 }
 0x1e0   : > { %v1425_v55 = vmul.f32 %v2891_v2, %v1194_v1  ;;  %vm1431_vm2 = vweird.f32 %v2891_v2  ;;  %v3733_v1 = vld [vmem:[%s5301_s3] ss:$0 sm:$0xff] }
 0x1e1   : > { %vm1432_vm6 = vmor %vm1430_vm5, %vm1431_vm2  ;;  %v1582_v20 = vmul.f32 %v3733_v1, %v1547_v53  ;;  %v3778_v53 = vld [vmem:[%s3342_s15 + $0x48] sm:$0xff] }
 0x1e2   : > { %v1426_v11 = vmul.f32 %v2891_v2, %v1425_v55  ;;  %946 = vadd.xlane.f32.xlu2 %v883_v63  ;;  %v1038_v63 = vmul.f32 %v3408_v35, %v3749_v29 }
 0x1e4   : > { %v1427_v45 = vmul.f32 0.5, %v1426_v11  ;;  %v1070_v30 = vmul.f32 %v1038_v63, %v1038_v63 }
 0x1e6   : > { %v1428_v13 = vsub.f32 1.5, %v1427_v45  ;;  %525 = vperm.xlu0 %2867, %v3707_v25   ;;  %v3736_v45 = vadd.f32 %v800_v52, %v638_v28  ;;  %v416_v28 = vld [vmem:[%s3342_s15 + $0xa8] sm:$0xff] }
 0x1e8   : > { %v1429_v55 = vmul.f32 %v2891_v2, %v1428_v13  ;;  %v866_v4 = vmul.f32 %v3408_v35, %v3736_v45 }
 0x1ea   : > { %v1433_v11 = vsel %vm1432_vm6, %v2891_v2, %v1429_v55  ;;  %1076 = vadd.xlane.f32.xlu2 %v1044_v60  ;;  %v3743_v2 = vld [vmem:[%s5302_s4] ss:$0 sm:$0xff]  ;;  %v949_v60 = vmul.f32 0.02, %v3615_v56 }
 0x1eb   : > { %v1546_v39 = vmul.f32 %v1433_v11, %v3544_v61  ;;  %v1449_v61 = vmul.f32 %v3688_v49, %v1448_v42  ;;  %v1617_v54 = vadd.f32 %v3743_v2, %v1582_v20  ;;  %v973_v11 = vmul.f32 0.02, %v3584_v32  ;;  %v3783_v32 = vld [vmem:[%s3342_s15 + $0x90] sm:$0xff] }
 0x1ec   : > { %v3763_v52 = vsub.f32 %v3452_v9, %v949_v60  ;;  %v3807_v60 = vpop.xlane.xlu0 %906 }
 0x1ed   : > { %v1581_v59 = vmul.f32 %v3733_v1, %v1546_v39  ;;  %v1453_v13 = vsel %vm1452_vm9, %v3688_v49, %v1449_v61  ;;  %v3772_v39 = vsub.f32 %v3509_v18, %v973_v11  ;;  %v3792_v18 = vld [vmem:[%s3342_s15 + $0x88] sm:$0xff] }
 0x1ee   : > { %530 = vperm.xlu0 %2867, %v415_v17   ;;  %v1548_v47 = vmul.f32 %v1453_v13, %v3520_v40  ;;  %v1013_v56 = vmul.f32 %v3408_v35, %v3763_v52 }
 0x1ef   : > { %v1616_v48 = vadd.f32 %v3743_v2, %v1581_v59 }
 0x1f0   : > { %v1583_v49 = vmul.f32 %v3733_v1, %v1548_v47  ;;  %v1045_v42 = vmul.f32 %v1013_v56, %v1013_v56 }
 0x1f1   : > { %2892 = vtanh.f32 %v1616_v48 }
 0x1f2   : > { %912 = vadd.xlane.f32.xlu2 %v866_v4  ;;  %2894 = vtanh.f32 %v1617_v54  ;;  %v1618_v6 = vadd.f32 %v3743_v2, %v1583_v49 }
 0x1f4   : > { %2896 = vtanh.f32 %v1618_v6 }
 0x1f6   : > { %535 = vperm.xlu0 %2867, %v416_v28  }
 0x1f7   : > { %v2893_v55 = vpop.eup %2892 }
 0x1f8   : > { %1760 = vmatmul.f32.vlgmr.msra.gmra.mxu3 %v2893_v55  ;;  %v2895_v40 = vpop.eup %2894 }
 0x1fa   : > { %1128 = vadd.xlane.f32.xlu2 %v1070_v30  ;;  %v2897_v9 = vpop.eup %2896 }
 0x1fe   : > { %2875 = vset.pattern.permute.xlu0 %v3221_v0  ;;  %v1037_v0 = vmul.f32 %v3408_v35, %v3772_v39 }
 0x200   : > { %1763 = vmatmul.f32.gmra.mxu3 %v2895_v40  ;;  %v1069_v62 = vmul.f32 %v1037_v0, %v1037_v0 }
 0x202   : > { %1078 = vadd.xlane.f32.xlu2 %v1045_v42 }
 0x208   : > { %1766 = vmatmul.f32.gmra.mxu3 %v2897_v9 }
 0x21a   : > { %690 = vperm.xlu2 %2877, %v3354_v8   ;;  %v3788_v8 = vld [vmem:[%s3342_s15 + $0x80] sm:$0xff]  ;;  %s2600_s15 = sld [smem:[#allocation2]] }
 0x220   : > { %1126 = vadd.xlane.f32.xlu0 %v1069_v62 }
 0x222   : > { %694 = vperm.xlu2 %2877, %v3778_v53  }
 0x22a   : > { %738 = vperm.xlu2 %2877, %v415_v17   ;;  %v975_v17 = vmul.f32 0.02, %v3590_v33  ;;  %v687_v33 = vpop.permute.xlu1 %686 }
 0x22b   : > { %v793_v55 = vmul.f32 %v3403_v27, %v687_v33  ;;  %v950_v33 = vmul.f32 0.02, %v3639_v10 }
 0x232   : > { %742 = vperm.xlu2 %2877, %v416_v28  }
 0x234   : > { %682 = vperm.xlu0 %2875, %v3377_v19   ;;  %v3801_v19 = vsub.f32 %v3490_v58, %v975_v17  ;;  %v596_v58 = vmul.f32 %v3392_v24, %v3416_v41 }
 0x236   : > { %v631_v56 = vadd.f32 %v3398_v26, %v596_v58 }
 0x238   : > { %v3815_v42 = vadd.f32 %v793_v55, %v631_v56 }
 0x23a   : > { %730 = vperm.xlu2 %2877, %v3783_v32   ;;  %v859_v41 = vmul.f32 %v3408_v35, %v3815_v42 }
 0x23c   : > { %734 = vperm.xlu0 %2875, %v3707_v25   ;;  %v1039_v25 = vmul.f32 %v3408_v35, %v3801_v19 }
 0x23e   : > { %v1071_v13 = vmul.f32 %v1039_v25, %v1039_v25 }
 0x244   : > { %722 = vperm.xlu0 %2875, %v3788_v8  }
 0x245   : > { %v3813_v6 = vpop.xlane.xlu0 %908 }
 0x24c   : > { %726 = vperm.xlu0 %2875, %v3792_v18  }
 0x24d   : > { %v3795_v59 = vpop.xlane.xlu2 %894 }
 0x255   : > { %v3798_v61 = vpop.xlane.xlu2 %946 }
 0x258   : > { %v3821_v25 = vpop.permute.xlu0 %525 }
 0x25d   : > { %v1077_v48 = vpop.xlane.xlu2 %1076 }
 0x25e   : > { %v1140_v4 = vmul.f32 0.02, %v1077_v48 }
 0x260   : > { %v1172_v20 = vadd.f32 1e-05, %v1140_v4  ;;  %v531_v56 = vpop.permute.xlu0 %530 }
 0x262   : > { %2898 = vrsqrt.f32 %v1172_v20  ;;  %vm1210_vm11 = vweird.f32 %v1172_v20 }
 0x263   : > { %1130 = vadd.xlane.f32.xlu2 %v1071_v13 }
 0x265   : > { %v3805_v28 = vpop.xlane.xlu2 %912 }
 0x268   : > { %v2899_v63 = vpop.eup %2898 }
 0x269   : > { %v1205_v47 = vmul.f32 %v2899_v63, %v1172_v20  ;;  %vm1211_vm10 = vweird.f32 %v2899_v63  ;;  %v597_v20 = vmul.f32 %v3392_v24, %v3387_v22 }
 0x26a   : > { %vm1212_vm12 = vmor %vm1210_vm11, %vm1211_vm10 }
 0x26b   : > { %v1206_v54 = vmul.f32 %v2899_v63, %v1205_v47 }
 0x26d   : > { %v1207_v30 = vmul.f32 0.5, %v1206_v54  ;;  %v1129_v49 = vpop.xlane.xlu2 %1128 }
 0x26f   : > { %v1208_v40 = vsub.f32 1.5, %v1207_v30  ;;  %v3831_v30 = vpop.permute.xlu1 %718 }
 0x271   : > { %v1209_v9 = vmul.f32 %v2899_v63, %v1208_v40 }
 0x273   : > { %v1213_v11 = vsel %vm1212_vm12, %v2899_v63, %v1209_v9  ;;  %v3834_v9 = vsub.f32 %v3460_v15, %v950_v33  ;;  %v536_v33 = vpop.permute.xlu0 %535 }
 0x274   : > { %v1524_v0 = vmul.f32 %v1213_v11, %v3698_v7  ;;  %v632_v7 = vadd.f32 %v3398_v26, %v597_v20 }
 0x275   : > { %v1079_v62 = vpop.xlane.xlu2 %1078 }
 0x276   : > { %v1141_v17 = vmul.f32 0.02, %v1079_v62  ;;  %898 = vadd.xlane.f32.xlu0 %v859_v41  ;;  %v1559_v48 = vmul.f32 %v3733_v1, %v1524_v0  ;;  %v1166_v0 = vmul.f32 0.02, %v1129_v49  ;;  %v976_v62 = vmul.f32 0.02, %v3592_v37 }
 0x277   : > { %v609_v49 = vmul.f32 %v3392_v24, %v531_v56 }
 0x278   : > { %v1173_v4 = vadd.f32 1e-05, %v1141_v17  ;;  %v1594_v13 = vadd.f32 %v3743_v2, %v1559_v48  ;;  %v1014_v17 = vmul.f32 %v3408_v35, %v3834_v9  ;;  %v3846_v20 = vsub.f32 %v3517_v34, %v976_v62 }
 0x279   : > { %v644_v34 = vadd.f32 %v3398_v26, %v609_v49 }
 0x27a   : > { %2900 = vrsqrt.f32 %v1173_v4  ;;  %vm1220_vm14 = vweird.f32 %v1173_v4 }
 0x27b   : > { %2902 = vtanh.f32 %v1594_v13  ;;  %v3843_v13 = vadd.f32 1e-05, %v1166_v0 }
 0x27d   : > { %v691_v63 = vpop.permute.xlu2 %690  ;;  %2904 = vrsqrt.f32 %v3843_v13  ;;  %vm1470_vm2 = vweird.f32 %v3843_v13 }
 0x27e   : > { %v794_v47 = vmul.f32 %v3403_v27, %v691_v63  ;;  %v1046_v63 = vmul.f32 %v1014_v17, %v1014_v17 }
 0x280   : > { %v2901_v58 = vpop.eup %2900  ;;  %v3829_v54 = vadd.f32 %v794_v47, %v632_v7  ;;  %v3849_v7 = vpop.permute.xlu1 %698 }
 0x281   : > { %v2903_v55 = vpop.eup %2902  ;;  %v1215_v40 = vmul.f32 %v2901_v58, %v1173_v4  ;;  %vm1221_vm13 = vweird.f32 %v2901_v58  ;;  %v952_v4 = vmul.f32 0.02, %v3617_v51 }
 0x282   : > { %1694 = vmatmul.f32.vlgmr.msra.gmra.mxu0 %v2903_v55  ;;  %v860_v22 = vmul.f32 %v3408_v35, %v3829_v54  ;;  %vm1222_vm15 = vmor %vm1220_vm14, %vm1221_vm13  ;;  %v951_v55 = vmul.f32 0.02, %v3594_v38 }
 0x283   : > { %v1216_v11 = vmul.f32 %v2901_v58, %v1215_v40  ;;  %v3867_v38 = vsub.f32 %v3537_v57, %v952_v4  ;;  %v3869_v51 = vpop.eup %2904 }
 0x284   : > { %900 = vadd.xlane.f32.xlu0 %v860_v22  ;;  %v1040_v22 = vmul.f32 %v3408_v35, %v3846_v20  ;;  %v1465_v57 = vmul.f32 %v3869_v51, %v3843_v13  ;;  %vm1471_vm0 = vweird.f32 %v3869_v51  ;;  %v3926_v13 = vld [vmem:[%s5299_s1 + $0x1] ss:$0 sm:$0xff] }
 0x285   : > { %v1217_v10 = vmul.f32 0.5, %v1216_v11  ;;  %v3838_v41 = vpop.permute.xlu2 %694  ;;  %vm1472_vm3 = vmor %vm1470_vm2, %vm1471_vm0 }
 0x286   : > { %v1072_v62 = vmul.f32 %v1040_v22, %v1040_v22 }
 0x287   : > { %v1218_v48 = vsub.f32 1.5, %v1217_v10  ;;  %v610_v10 = vmul.f32 %v3392_v24, %v536_v33  ;;  %v1016_v24 = vmul.f32 %v3408_v35, %v3867_v38 }
 0x289   : > { %v1219_v15 = vmul.f32 %v2901_v58, %v1218_v48  ;;  %v945_v48 = vpop.xlane.xlu1 %944 }
 0x28a   : > { %v978_v33 = vmul.f32 0.02, %v945_v48 }
 0x28b   : > { %v1223_v37 = vsel %vm1222_vm15, %v2901_v58, %v1219_v15 }
 0x28c   : > { %v1525_v47 = vmul.f32 %v1223_v37, %v3763_v52  ;;  %1080 = vadd.xlane.f32.xlu0 %v1046_v63  ;;  %v3864_v52 = vsub.f32 %v3496_v3, %v951_v55  ;;  %v977_v3 = vmul.f32 0.02, %v3598_v43  ;;  %v1466_v43 = vmul.f32 %v3869_v51, %v1465_v57 }
 0x28d   : > { %v739_v40 = vpop.permute.xlu2 %738  ;;  %v3890_v22 = vsub.f32 %v3586_v31, %v978_v33 }
 0x28e   : > { %v806_v56 = vmul.f32 %v3403_v27, %v739_v40  ;;  %v1560_v11 = vmul.f32 %v3733_v1, %v1525_v47  ;;  %v1015_v37 = vmul.f32 %v3408_v35, %v3864_v52  ;;  %v645_v47 = vadd.f32 %v3398_v26, %v610_v10 }
 0x28f   : > { %v1467_v26 = vmul.f32 0.5, %v1466_v43  ;;  %v960_v10 = vmul.f32 0.02, %v3813_v6  ;;  %v3906_v6 = vld [vmem:[%s5299_s1] ss:$0 sm:$0xff] }
 0x290   : > { %v3860_v58 = vadd.f32 %v806_v56, %v644_v34  ;;  %v1595_v0 = vadd.f32 %v3743_v2, %v1560_v11  ;;  %v3887_v56 = vsub.f32 %v3530_v50, %v977_v3  ;;  %v1047_v11 = vmul.f32 %v1015_v37, %v1015_v37 }
 0x291   : > { %v1042_v50 = vmul.f32 %v3408_v35, %v3890_v22  ;;  %v3898_v3 = vsub.f32 %v3646_v46, %v960_v10 }
 0x292   : > { %v872_v17 = vmul.f32 %v3408_v35, %v3860_v58  ;;  %2906 = vtanh.f32 %v1595_v0  ;;  %v1048_v0 = vmul.f32 %v1016_v24, %v1016_v24  ;;  %v1041_v48 = vmul.f32 %v3408_v35, %v3887_v56 }
 0x293   : > { %v1127_v15 = vpop.xlane.xlu0 %1126  ;;  %v1074_v37 = vmul.f32 %v1042_v50, %v1042_v50  ;;  %v595_v24 = vmul.f32 %v3906_v6, %v3458_v14  ;;  %v3920_v14 = vld [vmem:[%s5300_s2] ss:$0 sm:$0xff] }
 0x294   : > { %v1165_v49 = vmul.f32 0.02, %v1127_v15  ;;  %1132 = vadd.xlane.f32.xlu0 %v1072_v62  ;;  %924 = vadd.xlane.f32.xlu2 %v872_v17  ;;  %v911_v62 = vpop.xlane.xlu1 %910 }
 0x295   : > { %v743_v63 = vpop.permute.xlu2 %742  ;;  %v961_v17 = vmul.f32 0.02, %v911_v62  ;;  %v630_v43 = vadd.f32 %v3920_v14, %v595_v24 }
 0x296   : > { %v1197_v55 = vadd.f32 1e-05, %v1165_v49  ;;  %v807_v4 = vmul.f32 %v3403_v27, %v743_v63  ;;  %v1468_v49 = vsub.f32 1.5, %v1467_v26  ;;  %v1073_v63 = vmul.f32 %v1041_v48, %v1041_v48 }
 0x297   : > { %v3901_v57 = vsub.f32 %v3714_v21, %v961_v17 }
 0x298   : > { %v2907_v40 = vpop.eup %2906  ;;  %2908 = vrsqrt.f32 %v1197_v55  ;;  %v3883_v34 = vadd.f32 %v807_v4, %v645_v47  ;;  %v1469_v46 = vmul.f32 %v3869_v51, %v1468_v49  ;;  %v1024_v4 = vmul.f32 %v3408_v35, %v3898_v3 }
 0x299   : > { %1697 = vmatmul.f32.gmra.mxu0 %v2907_v40  ;;  %v1025_v40 = vmul.f32 %v3408_v35, %v3901_v57  ;;  %vm1460_vm4 = vweird.f32 %v1197_v55 }
 0x29a   : > { %v1473_v62 = vsel %vm1472_vm3, %v3869_v51, %v1469_v46  ;;  %v1056_v48 = vmul.f32 %v1024_v4, %v1024_v4 }
 0x29b   : > { %v1057_v50 = vmul.f32 %v1025_v40, %v1025_v40  ;;  %v1550_v49 = vmul.f32 %v1473_v62, %v3749_v29 }
 0x29c   : > { %1082 = vadd.xlane.f32.xlu0 %v1047_v11  ;;  %1084 = vadd.xlane.f32.xlu2 %v1048_v0 }
 0x29d   : > { %v3947_v46 = vpop.permute.xlu2 %730 }
 0x29e   : > { %v2909_v27 = vpop.eup %2908 }
 0x29f   : > { %v1455_v15 = vmul.f32 %v2909_v27, %v1197_v55  ;;  %vm1461_vm1 = vweird.f32 %v2909_v27  ;;  %v608_v55 = vmul.f32 %v3906_v6, %v3821_v25  ;;  %v1585_v25 = vmul.f32 %v3733_v1, %v1550_v49 }
 0x2a0   : > { %vm1462_vm5 = vmor %vm1460_vm4, %vm1461_vm1 }
 0x2a1   : > { %v1456_v31 = vmul.f32 %v2909_v27, %v1455_v15  ;;  %v1620_v24 = vadd.f32 %v3743_v2, %v1585_v25 }
 0x2a3   : > { %v1457_v33 = vmul.f32 0.5, %v1456_v31 }
 0x2a4   : > { %1134 = vadd.xlane.f32.xlu0 %v1073_v63  ;;  %1136 = vadd.xlane.f32.xlu2 %v1074_v37 }
 0x2a5   : > { %v1458_v47 = vsub.f32 1.5, %v1457_v33 }
 0x2a6   : > { %v683_v21 = vpop.permute.xlu0 %682 }
 0x2a7   : > { %v1459_v11 = vmul.f32 %v2909_v27, %v1458_v47  ;;  %v792_v0 = vmul.f32 %v3926_v13, %v683_v21 }
 0x2a9   : > { %v1463_v26 = vsel %vm1462_vm5, %v2909_v27, %v1459_v11  ;;  %v3930_v10 = vadd.f32 %v792_v0, %v630_v43 }
 0x2aa   : > { %v1549_v17 = vmul.f32 %v1463_v26, %v3772_v39  ;;  %v643_v39 = vadd.f32 %v3920_v14, %v608_v55 }
 0x2ab   : > { %v858_v15 = vmul.f32 %v3408_v35, %v3930_v10 }
 0x2ac   : > { %1100 = vadd.xlane.f32.xlu0 %v1056_v48  ;;  %1102 = vadd.xlane.f32.xlu2 %v1057_v50  ;;  %v1584_v31 = vmul.f32 %v3733_v1, %v1549_v17 }
 0x2ad   : > { %896 = vadd.xlane.f32.xlu1 %v858_v15 }
 0x2ae   : > { %v735_v51 = vpop.permute.xlu0 %734  ;;  %v1619_v27 = vadd.f32 %v3743_v2, %v1584_v31 }
 0x2af   : > { %v805_v63 = vmul.f32 %v3926_v13, %v735_v51 }
 0x2b0   : > { %2910 = vtanh.f32 %v1619_v27 }
 0x2b1   : > { %v3943_v37 = vadd.f32 %v805_v63, %v643_v39  ;;  %2912 = vtanh.f32 %v1620_v24 }
 0x2b6   : > { %v2911_v29 = vpop.eup %2910  ;;  %v3951_v40 = vpop.permute.xlu0 %722 }
 0x2b7   : > { %1769 = vmatmul.f32.gmra.mxu3 %v2911_v29  ;;  %v2913_v33 = vpop.eup %2912 }
 0x2bf   : > { %1772 = vmatmul.f32.gmra.mxu3 %v2913_v33 }
 0x2c6   : > { %505 = vperm.xlu1 %2876, %v3563_v12   ;;  %v3955_v12 = vpop.permute.xlu0 %726 }
 0x2ce   : > { %475 = vperm.xlu1 %2876, %v3778_v53  }
 0x2d6   : > { %v1131_v47 = vpop.xlane.xlu2 %1130  ;;  %480 = vperm.xlu1 %2876, %v3569_v5  }
 0x2d7   : > { %v1167_v21 = vmul.f32 0.02, %v1131_v47 }
 0x2d9   : > { %v1199_v4 = vadd.f32 1e-05, %v1167_v21 }
 0x2db   : > { %2914 = vrsqrt.f32 %v1199_v4  ;;  %vm1480_vm7 = vweird.f32 %v1199_v4 }
 0x2de   : > { %510 = vperm.xlu1 %2876, %v3788_v8  }
 0x2e1   : > { %v2915_v43 = vpop.eup %2914 }
 0x2e2   : > { %v1475_v11 = vmul.f32 %v2915_v43, %v1199_v4  ;;  %vm1481_vm6 = vweird.f32 %v2915_v43 }
 0x2e3   : > { %vm1482_vm8 = vmor %vm1480_vm7, %vm1481_vm6 }
 0x2e4   : > { %v1476_v0 = vmul.f32 %v2915_v43, %v1475_v11 }
 0x2e6   : > { %v1477_v62 = vmul.f32 0.5, %v1476_v0  ;;  %515 = vperm.xlu1 %2876, %v3792_v18  }
 0x2e8   : > { %v1478_v26 = vsub.f32 1.5, %v1477_v62 }
 0x2e9   : > { %v3959_v48 = vpop.xlane.xlu0 %898 }
 0x2ea   : > { %v1479_v53 = vmul.f32 %v2915_v43, %v1478_v26 }
 0x2ec   : > { %v1483_v5 = vsel %vm1482_vm8, %v2915_v43, %v1479_v53 }
 0x2ed   : > { %v1551_v17 = vmul.f32 %v1483_v5, %v3801_v19 }
 0x2ee   : > { %520 = vperm.xlu1 %2876, %v3783_v32  }
 0x2ef   : > { %v1586_v8 = vmul.f32 %v3733_v1, %v1551_v17 }
 0x2f1   : > { %v1621_v50 = vadd.f32 %v3743_v2, %v1586_v8 }
 0x2f3   : > { %2916 = vtanh.f32 %v1621_v50 }
 0x2f7   : > { %v3963_v18 = vpop.xlane.xlu0 %900 }
 0x2f9   : > { %v2917_v55 = vpop.eup %2916 }
 0x2fa   : > { %1775 = vmatmul.f32.gmra.mxu3 %v2917_v55 }
 0x2ff   : > { %v1081_v15 = vpop.xlane.xlu0 %1080 }
 0x300   : > { %v1142_v49 = vmul.f32 0.02, %v1081_v15 }
 0x302   : > { %v1174_v31 = vadd.f32 1e-05, %v1142_v49 }
 0x304   : > { %2918 = vrsqrt.f32 %v1174_v31  ;;  %vm1230_vm10 = vweird.f32 %v1174_v31 }
 0x307   : > { %v3965_v51 = vpop.xlane.xlu2 %924  ;;  %v1133_v19 = vpop.xlane.xlu0 %1132 }
 0x308   : > { %v1168_v27 = vmul.f32 0.02, %v1133_v19 }
 0x30a   : > { %v2919_v32 = vpop.eup %2918  ;;  %v1200_v39 = vadd.f32 1e-05, %v1168_v27 }
 0x30b   : > { %v1225_v63 = vmul.f32 %v2919_v32, %v1174_v31  ;;  %vm1231_vm9 = vweird.f32 %v2919_v32 }
 0x30c   : > { %2920 = vrsqrt.f32 %v1200_v39  ;;  %vm1232_vm11 = vmor %vm1230_vm10, %vm1231_vm9  ;;  %vm1490_vm13 = vweird.f32 %v1200_v39 }
 0x30d   : > { %v1226_v25 = vmul.f32 %v2919_v32, %v1225_v63 }
 0x30f   : > { %v1227_v24 = vmul.f32 0.5, %v1226_v25  ;;  %v1085_v29 = vpop.xlane.xlu2 %1084  ;;  %v1083_v33 = vpop.xlane.xlu0 %1082 }
 0x310   : > { %v1144_v47 = vmul.f32 0.02, %v1085_v29  ;;  %v1143_v21 = vmul.f32 0.02, %v1083_v33 }
 0x311   : > { %v1228_v4 = vsub.f32 1.5, %v1227_v24 }
 0x312   : > { %v2921_v43 = vpop.eup %2920  ;;  %v1176_v11 = vadd.f32 1e-05, %v1144_v47  ;;  %v1175_v0 = vadd.f32 1e-05, %v1143_v21 }
 0x313   : > { %v1229_v62 = vmul.f32 %v2919_v32, %v1228_v4  ;;  %v1485_v26 = vmul.f32 %v2921_v43, %v1200_v39  ;;  %vm1491_vm12 = vweird.f32 %v2921_v43 }
 0x314   : > { %2922 = vrsqrt.f32 %v1176_v11  ;;  %vm1492_vm14 = vmor %vm1490_vm13, %vm1491_vm12  ;;  %vm1250_vm0 = vweird.f32 %v1176_v11  ;;  %vm1240_vm3 = vweird.f32 %v1175_v0 }
 0x315   : > { %v1233_v53 = vsel %vm1232_vm11, %v2919_v32, %v1229_v62  ;;  %v1486_v5 = vmul.f32 %v2921_v43, %v1485_v26  ;;  %2924 = vrsqrt.f32 %v1175_v0 }
 0x316   : > { %v1526_v17 = vmul.f32 %v1233_v53, %v3834_v9 }
 0x317   : > { %v1487_v8 = vmul.f32 0.5, %v1486_v5  ;;  %v1137_v50 = vpop.xlane.xlu2 %1136  ;;  %v1135_v55 = vpop.xlane.xlu0 %1134 }
 0x318   : > { %v1170_v15 = vmul.f32 0.02, %v1137_v50  ;;  %v1169_v49 = vmul.f32 0.02, %v1135_v55  ;;  %v1561_v19 = vmul.f32 %v3733_v1, %v1526_v17 }
 0x319   : > { %v1488_v27 = vsub.f32 1.5, %v1487_v8 }
 0x31a   : > { %v2923_v63 = vpop.eup %2922  ;;  %v1202_v25 = vadd.f32 1e-05, %v1170_v15  ;;  %v3969_v31 = vadd.f32 1e-05, %v1169_v49  ;;  %v1596_v24 = vadd.f32 %v3743_v2, %v1561_v19 }
 0x31b   : > { %v2925_v32 = vpop.eup %2924  ;;  %v1489_v29 = vmul.f32 %v2921_v43, %v1488_v27  ;;  %v1245_v33 = vmul.f32 %v2923_v63, %v1176_v11  ;;  %vm1251_vm15 = vweird.f32 %v2923_v63 }
 0x31c   : > { %v1235_v9 = vmul.f32 %v2925_v32, %v1175_v0  ;;  %2926 = vrsqrt.f32 %v1202_v25  ;;  %vm1241_vm1 = vweird.f32 %v2925_v32  ;;  %vm1252_vm2 = vmor %vm1250_vm0, %vm1251_vm15  ;;  %vm1510_vm7 = vweird.f32 %v1202_v25 }
 0x31d   : > { %v1493_v47 = vsel %vm1492_vm14, %v2921_v43, %v1489_v29  ;;  %v1246_v21 = vmul.f32 %v2923_v63, %v1245_v33  ;;  %2928 = vrsqrt.f32 %v3969_v31  ;;  %vm1242_vm4 = vmor %vm1240_vm3, %vm1241_vm1  ;;  %vm1500_vm9 = vweird.f32 %v3969_v31 }
 0x31e   : > { %v1552_v4 = vmul.f32 %v1493_v47, %v3846_v20  ;;  %v1236_v62 = vmul.f32 %v2925_v32, %v1235_v9  ;;  %2930 = vtanh.f32 %v1596_v24  ;;  %v955_v24 = vmul.f32 0.02, %v3959_v48 }
 0x31f   : > { %v1247_v26 = vmul.f32 0.5, %v1246_v21 }
 0x320   : > { %v1237_v53 = vmul.f32 0.5, %v1236_v62  ;;  %v897_v5 = vpop.xlane.xlu1 %896  ;;  %v1587_v17 = vmul.f32 %v3733_v1, %v1552_v4  ;;  %v3985_v48 = vsub.f32 %v3815_v42, %v955_v24 }
 0x321   : > { %v1248_v8 = vsub.f32 1.5, %v1247_v26  ;;  %v954_v39 = vmul.f32 0.02, %v897_v5 }
 0x322   : > { %v2927_v50 = vpop.eup %2926  ;;  %v1238_v55 = vsub.f32 1.5, %v1237_v53  ;;  %v1622_v20 = vadd.f32 %v3743_v2, %v1587_v17 }
 0x323   : > { %v2929_v43 = vpop.eup %2928  ;;  %v1249_v15 = vmul.f32 %v2923_v63, %v1248_v8  ;;  %v1505_v49 = vmul.f32 %v2927_v50, %v1202_v25  ;;  %v3976_v19 = vsub.f32 %v3930_v10, %v954_v39  ;;  %vm1511_vm5 = vweird.f32 %v2927_v50 }
 0x324   : > { %v2931_v27 = vpop.eup %2930  ;;  %v1239_v29 = vmul.f32 %v2925_v32, %v1238_v55  ;;  %v1495_v33 = vmul.f32 %v2929_v43, %v3969_v31  ;;  %2932 = vtanh.f32 %v1622_v20  ;;  %vm1501_vm6 = vweird.f32 %v2929_v43  ;;  %vm1512_vm8 = vmor %vm1510_vm7, %vm1511_vm5 }
 0x325   : > { %v1253_v9 = vsel %vm1252_vm2, %v2923_v63, %v1249_v15  ;;  %v1506_v11 = vmul.f32 %v2927_v50, %v1505_v49  ;;  %1700 = vmatmul.f32.gmra.mxu0 %v2931_v27  ;;  %v1018_v62 = vmul.f32 %v3408_v35, %v3976_v19  ;;  %vm1502_vm10 = vmor %vm1500_vm9, %vm1501_vm6  ;;  %v1019_v39 = vmul.f32 %v3408_v35, %v3985_v48 }
 0x326   : > { %v1243_v47 = vsel %vm1242_vm4, %v2925_v32, %v1239_v29  ;;  %v1496_v21 = vmul.f32 %v2929_v43, %v1495_v33  ;;  %v1528_v0 = vmul.f32 %v1253_v9, %v3867_v38 }
 0x327   : > { %v1527_v4 = vmul.f32 %v1243_v47, %v3864_v52  ;;  %v1507_v10 = vmul.f32 0.5, %v1506_v11  ;;  %v1050_v63 = vmul.f32 %v1018_v62, %v1018_v62  ;;  %v1051_v27 = vmul.f32 %v1019_v39, %v1019_v39 }
 0x328   : > { %v1497_v26 = vmul.f32 0.5, %v1496_v21  ;;  %v1563_v42 = vmul.f32 %v3733_v1, %v1528_v0  ;;  %v795_v62 = vmul.f32 %v3926_v13, %v3838_v41  ;;  %v871_v0 = vmul.f32 %v3408_v35, %v3943_v37 }
 0x329   : > { %v1508_v53 = vsub.f32 1.5, %v1507_v10  ;;  %v1562_v5 = vmul.f32 %v3733_v1, %v1527_v4  ;;  %1088 = vadd.xlane.f32.xlu2 %v1050_v63 }
 0x32a   : > { %v1498_v32 = vsub.f32 1.5, %v1497_v26  ;;  %v2933_v38 = vpop.eup %2932  ;;  %v1598_v49 = vadd.f32 %v3743_v2, %v1563_v42 }
 0x32b   : > { %v1509_v17 = vmul.f32 %v2927_v50, %v1508_v53  ;;  %v1597_v52 = vadd.f32 %v3743_v2, %v1562_v5  ;;  %1778 = vmatmul.f32.gmra.mxu3 %v2933_v38  ;;  %v959_v53 = vmul.f32 0.02, %v3807_v60  ;;  %v802_v60 = vmul.f32 %v3926_v13, %v3951_v40 }
 0x32c   : > { %v1499_v8 = vmul.f32 %v2929_v43, %v1498_v32  ;;  %v962_v40 = vmul.f32 0.02, %v3805_v28 }
 0x32d   : > { %2934 = vtanh.f32 %v1597_v52  ;;  %v1513_v55 = vsel %vm1512_vm8, %v2927_v50, %v1509_v17  ;;  %v4019_v5 = vsub.f32 %v3554_v44, %v959_v53 }
 0x32e   : > { %v1503_v15 = vsel %vm1502_vm10, %v2929_v43, %v1499_v8  ;;  %v1554_v20 = vmul.f32 %v1513_v55, %v3890_v22  ;;  %2936 = vtanh.f32 %v1598_v49  ;;  %v801_v22 = vmul.f32 %v3926_v13, %v3831_v30 }
 0x32f   : > { %v1553_v25 = vmul.f32 %v1503_v15, %v3887_v56  ;;  %v1023_v52 = vmul.f32 %v3408_v35, %v4019_v5  ;;  %v979_v8 = vmul.f32 0.02, %v3798_v61  ;;  %v796_v61 = vmul.f32 %v3926_v13, %v3849_v7 }
 0x330   : > { %v1589_v50 = vmul.f32 %v3733_v1, %v1554_v20  ;;  %v953_v7 = vmul.f32 0.02, %v3795_v59 }
 0x331   : > { %v1588_v31 = vmul.f32 %v3733_v1, %v1553_v25  ;;  %1090 = vadd.xlane.f32.xlu2 %v1051_v27  ;;  %v4034_v39 = vsub.f32 %v3686_v16, %v979_v8  ;;  %v1055_v15 = vmul.f32 %v1023_v52, %v1023_v52  ;;  %v4047_v16 = vsub.f32 %v3736_v45, %v962_v40 }
 0x332   : > { %v1624_v56 = vadd.f32 %v3743_v2, %v1589_v50  ;;  %v873_v50 = vmul.f32 %v3408_v35, %v3883_v34 }
 0x333   : > { %v2935_v24 = vpop.eup %2934  ;;  %v1623_v29 = vadd.f32 %v3743_v2, %v1588_v31  ;;  %v1043_v20 = vmul.f32 %v3408_v35, %v4034_v39 }
 0x334   : > { %1703 = vmatmul.f32.gmra.mxu0 %v2935_v24  ;;  %v2937_v9 = vpop.eup %2936  ;;  %v1026_v24 = vmul.f32 %v3408_v35, %v4047_v16 }
 0x335   : > { %2938 = vtanh.f32 %v1623_v29  ;;  %v1075_v31 = vmul.f32 %v1043_v20, %v1043_v20  ;;  %v4055_v29 = vsub.f32 %v3678_v36, %v953_v7 }
 0x336   : > { %2940 = vtanh.f32 %v1624_v56  ;;  %v1058_v45 = vmul.f32 %v1026_v24, %v1026_v24 }
 0x338   : > { %v506_v43 = vpop.permute.xlu1 %505 }
 0x339   : > { %v604_v33 = vmul.f32 %v3906_v6, %v506_v43 }
 0x33b   : > { %v2939_v11 = vpop.eup %2938  ;;  %v639_v47 = vadd.f32 %v3920_v14, %v604_v33  ;;  %v1017_v33 = vmul.f32 %v3408_v35, %v4055_v29 }
 0x33c   : > { %1706 = vmatmul.f32.gmra.mxu0 %v2937_v9  ;;  %1781 = vmatmul.f32.gmra.mxu3 %v2939_v11  ;;  %v2941_v10 = vpop.eup %2940  ;;  %v803_v11 = vmul.f32 %v3926_v13, %v3955_v12 }
 0x33d   : > { %v4005_v21 = vadd.f32 %v801_v22, %v639_v47  ;;  %v1049_v56 = vmul.f32 %v1017_v33, %v1017_v33  ;;  %v804_v47 = vmul.f32 %v3926_v13, %v3947_v46 }
 0x33f   : > { %v867_v1 = vmul.f32 %v3408_v35, %v4005_v21 }
 0x340   : > { %v476_v4 = vpop.permute.xlu1 %475 }
 0x341   : > { %914 = vadd.xlane.f32.xlu1 %v867_v1  ;;  %v598_v2 = vmul.f32 %v3906_v6, %v476_v4 }
 0x343   : > { %v633_v30 = vadd.f32 %v3920_v14, %v598_v2 }
 0x344   : > { %1784 = vmatmul.f32.gmra.mxu3 %v2941_v10  ;;  %v956_v10 = vmul.f32 0.02, %v3963_v18 }
 0x345   : > { %v4016_v63 = vadd.f32 %v795_v62, %v633_v30  ;;  %v968_v62 = vmul.f32 0.02, %v3965_v51 }
 0x346   : > { %v4077_v12 = vsub.f32 %v3829_v54, %v956_v10  ;;  %v4089_v54 = vpop.f32.mrf.mxu3 }
 0x347   : > { %v861_v32 = vmul.f32 %v3408_v35, %v4016_v63  ;;  %v4085_v13 = vsub.f32 %v3860_v58, %v968_v62 }
 0x348   : > { %v481_v26 = vpop.permute.xlu1 %480 }
 0x349   : > { %922 = vadd.xlane.f32.xlu1 %v871_v0  ;;  %v599_v42 = vmul.f32 %v3906_v6, %v481_v26  ;;  %v1032_v18 = vmul.f32 %v3408_v35, %v4085_v13 }
 0x34b   : > { %v634_v55 = vadd.f32 %v3920_v14, %v599_v42  ;;  %v1064_v30 = vmul.f32 %v1032_v18, %v1032_v18 }
 0x34d   : > { %v4042_v49 = vadd.f32 %v796_v61, %v634_v55 }
 0x34e   : > { %v4091_v53 = vpop.f32.mrf.mxu3 }
 0x34f   : > { %v862_v27 = vmul.f32 %v3408_v35, %v4042_v49 }
 0x350   : > { %v511_v17 = vpop.permute.xlu1 %510 }
 0x351   : > { %v605_v41 = vmul.f32 %v3906_v6, %v511_v17  ;;  %902 = vadd.xlane.f32.xlu1 %v861_v32  ;;  %v1101_v32 = vpop.xlane.xlu0 %1100 }
 0x352   : > { %v1152_v52 = vmul.f32 0.02, %v1101_v32 }
 0x353   : > { %v640_v44 = vadd.f32 %v3920_v14, %v605_v41 }
 0x354   : > { %v4103_v55 = vadd.f32 1e-05, %v1152_v52 }
 0x355   : > { %v4031_v38 = vadd.f32 %v802_v60, %v640_v44  ;;  %v1103_v44 = vpop.xlane.xlu2 %1102 }
 0x356   : > { %v4101_v42 = vpop.f32.mrf.mxu3  ;;  %2942 = vrsqrt.f32 %v4103_v55  ;;  %vm1330_vm13 = vweird.f32 %v4103_v55 }
 0x357   : > { %v868_v25 = vmul.f32 %v3408_v35, %v4031_v38 }
 0x358   : > { %v516_v28 = vpop.permute.xlu1 %515 }
 0x359   : > { %1098 = vadd.xlane.f32.xlu1 %v1055_v15  ;;  %916 = vadd.xlane.f32.xlu0 %v868_v25  ;;  %v606_v43 = vmul.f32 %v3906_v6, %v516_v28  ;;  %v1153_v25 = vmul.f32 0.02, %v1103_v44 }
 0x35b   : > { %v641_v59 = vadd.f32 %v3920_v14, %v606_v43 }
 0x35c   : > { %v4117_v7 = vpop.eup %2942 }
 0x35d   : > { %v4066_v22 = vadd.f32 %v803_v11, %v641_v59  ;;  %vm1331_vm11 = vweird.f32 %v4117_v7 }
 0x35e   : > { %vm4158_vm14 = vmor %vm1330_vm13, %vm1331_vm11 }
 0x35f   : > { %v869_v4 = vmul.f32 %v3408_v35, %v4066_v22 }
 0x360   : > { %v521_v9 = vpop.permute.xlu1 %520 }
 0x361   : > { %904 = vadd.xlane.f32.xlu1 %v862_v27  ;;  %1138 = vadd.xlane.f32.xlu0 %v1075_v31  ;;  %v607_v36 = vmul.f32 %v3906_v6, %v521_v9  ;;  %v4113_v27 = vpop.f32.mrf.mxu3 }
 0x363   : > { %v642_v1 = vadd.f32 %v3920_v14, %v607_v36  ;;  %v1020_v14 = vmul.f32 %v3408_v35, %v4077_v12 }
 0x365   : > { %v4074_v2 = vadd.f32 %v804_v47, %v642_v1  ;;  %v1052_v46 = vmul.f32 %v1020_v14, %v1020_v14 }
 0x367   : > { %v870_v6 = vmul.f32 %v3408_v35, %v4074_v2 }
 0x369   : > { %926 = vadd.xlane.f32.xlu1 %v873_v50  ;;  %1104 = vadd.xlane.f32.xlu0 %v1058_v45  ;;  %v4130_v47 = vpop.f32.mrf.mxu3 }
 0x371   : > { %1086 = vadd.xlane.f32.xlu1 %v1049_v56 }
 0x379   : > { %918 = vadd.xlane.f32.xlu1 %v869_v4 }
 0x37d   : > { %v4145_v52 = vpop.f32.mrf.mxu3 }
 0x381   : > { %920 = vadd.xlane.f32.xlu1 %v870_v6 }
 0x389   : > { %1092 = vadd.xlane.f32.xlu1 %v1052_v46 }
 0x391   : > { %1116 = vadd.xlane.f32.xlu1 %v1064_v30 }
 0x39c   : > { %v1089_v56 = vpop.xlane.xlu2 %1088 }
 0x39d   : > { %v1146_v62 = vmul.f32 0.02, %v1089_v56 }
 0x39f   : > { %v4140_v32 = vadd.f32 1e-05, %v1146_v62 }
 0x3a4   : > { %v1091_v44 = vpop.xlane.xlu2 %1090 }
 0x3b4   : > { %v915_v0 = vpop.xlane.xlu1 %914 }
 0x3b5   : > { %v963_v26 = vmul.f32 0.02, %v915_v0 }
 0x3b7   : > { %v4094_v51 = vsub.f32 %v4005_v21, %v963_v26 }
 0x3b9   : > { %v1027_v58 = vmul.f32 %v3408_v35, %v4094_v51 }
 0x3bb   : > { %v1059_v17 = vmul.f32 %v1027_v58, %v1027_v58 }
 0x3bc   : > { %v923_v41 = vpop.xlane.xlu1 %922 }
 0x3bd   : > { %v967_v8 = vmul.f32 0.02, %v923_v41  ;;  %1106 = vadd.xlane.f32.xlu0 %v1059_v17 }
 0x3bf   : > { %v4099_v60 = vsub.f32 %v3943_v37, %v967_v8  ;;  %v4111_v37 = vadd.f32 1e-05, %v1153_v25 }
 0x3c1   : > { %v1031_v21 = vmul.f32 %v3408_v35, %v4099_v60  ;;  %2944 = vrsqrt.f32 %v4111_v37  ;;  %vm1340_vm3 = vweird.f32 %v4111_v37 }
 0x3c3   : > { %v1063_v15 = vmul.f32 %v1031_v21, %v1031_v21 }
 0x3c4   : > { %v903_v61 = vpop.xlane.xlu1 %902 }
 0x3c5   : > { %v957_v40 = vmul.f32 0.02, %v903_v61  ;;  %1114 = vadd.xlane.f32.xlu2 %v1063_v15 }
 0x3c7   : > { %v4109_v20 = vsub.f32 %v4016_v63, %v957_v40  ;;  %v1325_v63 = vmul.f32 %v4117_v7, %v4103_v55  ;;  %v4127_v11 = vpop.eup %2944 }
 0x3c8   : > { %v1335_v6 = vmul.f32 %v4127_v11, %v4111_v37  ;;  %vm1341_vm1 = vweird.f32 %v4127_v11 }
 0x3c9   : > { %v1021_v31 = vmul.f32 %v3408_v35, %v4109_v20  ;;  %v1326_v36 = vmul.f32 %v4117_v7, %v1325_v63  ;;  %vm4199_vm4 = vmor %vm1340_vm3, %vm1341_vm1 }
 0x3ca   : > { %v1336_v58 = vmul.f32 %v4127_v11, %v1335_v6 }
 0x3cb   : > { %v1053_v24 = vmul.f32 %v1021_v31, %v1021_v31  ;;  %v1327_v46 = vmul.f32 0.5, %v1326_v36 }
 0x3cc   : > { %v1099_v28 = vpop.xlane.xlu1 %1098  ;;  %v917_v50 = vpop.xlane.xlu0 %916  ;;  %v1337_v61 = vmul.f32 0.5, %v1336_v58 }
 0x3cd   : > { %v1151_v45 = vmul.f32 0.02, %v1099_v28  ;;  %v964_v43 = vmul.f32 0.02, %v917_v50  ;;  %1094 = vadd.xlane.f32.xlu0 %v1053_v24  ;;  %v1328_v41 = vsub.f32 1.5, %v1327_v46 }
 0x3ce   : > { %v1147_v28 = vmul.f32 0.02, %v1091_v44 }
 0x3cf   : > { %v1183_v33 = vadd.f32 1e-05, %v1151_v45  ;;  %v4123_v59 = vsub.f32 %v4031_v38, %v964_v43  ;;  %v1329_v24 = vmul.f32 %v4117_v7, %v1328_v41 }
 0x3d1   : > { %2946 = vrsqrt.f32 %v1183_v33  ;;  %v1028_v9 = vmul.f32 %v3408_v35, %v4123_v59  ;;  %vm1320_vm15 = vweird.f32 %v1183_v33  ;;  %v1333_v55 = vsel %vm4158_vm14, %v4117_v7, %v1329_v24 }
 0x3d3   : > { %v1060_v1 = vmul.f32 %v1028_v9, %v1028_v9 }
 0x3d4   : > { %v905_v4 = vpop.xlane.xlu1 %904  ;;  %v1139_v10 = vpop.xlane.xlu0 %1138 }
 0x3d5   : > { %v958_v38 = vmul.f32 0.02, %v905_v4  ;;  %v1171_v14 = vmul.f32 0.02, %v1139_v10  ;;  %1108 = vadd.xlane.f32.xlu1 %v1060_v1  ;;  %v1338_v1 = vsub.f32 1.5, %v1337_v61  ;;  %v4171_v10 = vpop.f32.mrf.mxu3 }
 0x3d6   : > { %v4169_v4 = vadd.f32 1e-05, %v1147_v28 }
 0x3d7   : > { %v2947_v18 = vpop.eup %2946  ;;  %v4135_v30 = vsub.f32 %v4042_v49, %v958_v38  ;;  %v4137_v0 = vadd.f32 1e-05, %v1171_v14  ;;  %v1339_v58 = vmul.f32 %v4127_v11, %v1338_v1 }
 0x3d8   : > { %v1315_v26 = vmul.f32 %v2947_v18, %v1183_v33  ;;  %vm1321_vm12 = vweird.f32 %v2947_v18  ;;  %vm1280_vm1 = vweird.f32 %v4169_v4 }
 0x3d9   : > { %2948 = vrsqrt.f32 %v4137_v0  ;;  %v1022_v17 = vmul.f32 %v3408_v35, %v4135_v30  ;;  %vm1322_vm0 = vmor %vm1320_vm15, %vm1321_vm12  ;;  %vm1520_vm5 = vweird.f32 %v4137_v0  ;;  %v1343_v61 = vsel %vm4199_vm4, %v4127_v11, %v1339_v58 }
 0x3da   : > { %v1316_v8 = vmul.f32 %v2947_v18, %v1315_v26  ;;  %2950 = vrsqrt.f32 %v4140_v32  ;;  %v1537_v11 = vmul.f32 %v1343_v61, %v3901_v57  ;;  %vm1270_vm12 = vweird.f32 %v4140_v32 }
 0x3db   : > { %v1054_v21 = vmul.f32 %v1022_v17, %v1022_v17  ;;  %v1536_v17 = vmul.f32 %v1333_v55, %v3898_v3 }
 0x3dc   : > { %v1317_v49 = vmul.f32 0.5, %v1316_v8  ;;  %v927_v15 = vpop.xlane.xlu1 %926  ;;  %v1105_v25 = vpop.xlane.xlu0 %1104 }
 0x3dd   : > { %v969_v40 = vmul.f32 0.02, %v927_v15  ;;  %v1154_v31 = vmul.f32 0.02, %v1105_v25  ;;  %1096 = vadd.xlane.f32.xlu2 %v1054_v21  ;;  %v4194_v21 = vld [vmem:[%s5302_s4] ss:$0 sm:$0xff]  ;;  %v4211_v24 = vpop.f32.mrf.mxu3 }
 0x3de   : > { %v1318_v50 = vsub.f32 1.5, %v1317_v49 }
 0x3df   : > { %v2949_v45 = vpop.eup %2948  ;;  %v4152_v43 = vsub.f32 %v3883_v34, %v969_v40  ;;  %v4154_v63 = vadd.f32 1e-05, %v1154_v31 }
 0x3e0   : > { %v1319_v9 = vmul.f32 %v2947_v18, %v1318_v50  ;;  %v1515_v36 = vmul.f32 %v2949_v45, %v4137_v0  ;;  %v4173_v33 = vpop.eup %2950  ;;  %vm1521_vm2 = vweird.f32 %v2949_v45 }
 0x3e1   : > { %2952 = vrsqrt.f32 %v4154_v63  ;;  %v1033_v34 = vmul.f32 %v3408_v35, %v4152_v43  ;;  %vm1522_vm6 = vmor %vm1520_vm5, %vm1521_vm2  ;;  %vm1350_vm8 = vweird.f32 %v4154_v63  ;;  %vm1271_vm10 = vweird.f32 %v4173_v33 }
 0x3e2   : > { %v1323_v6 = vsel %vm1322_vm0, %v2947_v18, %v1319_v9  ;;  %v1516_v62 = vmul.f32 %v2949_v45, %v1515_v36  ;;  %v4182_v18 = vld [vmem:[%s5301_s3] ss:$0 sm:$0xff]  ;;  %2954 = vrsqrt.f32 %v4169_v4  ;;  %vm4247_vm13 = vmor %vm1270_vm12, %vm1271_vm10 }
 0x3e3   : > { %v1535_v38 = vmul.f32 %v1323_v6, %v4019_v5  ;;  %v1065_v14 = vmul.f32 %v1033_v34, %v1033_v34  ;;  %v1265_v5 = vmul.f32 %v4173_v33, %v4140_v32  ;;  %v1571_v40 = vmul.f32 %v4182_v18, %v1536_v17 }
 0x3e4   : > { %v1517_v46 = vmul.f32 0.5, %v1516_v62  ;;  %v1087_v26 = vpop.xlane.xlu1 %1086  ;;  %v1572_v17 = vmul.f32 %v4182_v18, %v1537_v11 }
 0x3e5   : > { %v1145_v7 = vmul.f32 0.02, %v1087_v26  ;;  %1118 = vadd.xlane.f32.xlu0 %v1065_v14  ;;  %v1570_v41 = vmul.f32 %v4182_v18, %v1535_v38  ;;  %v1266_v31 = vmul.f32 %v4173_v33, %v1265_v5  ;;  %v1606_v62 = vadd.f32 %v4194_v21, %v1571_v40 }
 0x3e6   : > { %v1518_v8 = vsub.f32 1.5, %v1517_v46 }
 0x3e7   : > { %v2953_v44 = vpop.eup %2952  ;;  %v4189_v3 = vadd.f32 1e-05, %v1145_v7  ;;  %v1605_v49 = vadd.f32 %v4194_v21, %v1570_v41  ;;  %v1267_v55 = vmul.f32 0.5, %v1266_v31  ;;  %v1607_v31 = vadd.f32 %v4194_v21, %v1572_v17 }
 0x3e8   : > { %v1519_v25 = vmul.f32 %v2949_v45, %v1518_v8  ;;  %v1345_v37 = vmul.f32 %v2953_v44, %v4154_v63  ;;  %v4214_v56 = vpop.eup %2954  ;;  %vm1351_vm7 = vweird.f32 %v2953_v44 }
 0x3e9   : > { %2956 = vrsqrt.f32 %v4189_v3  ;;  %vm1352_vm9 = vmor %vm1350_vm8, %vm1351_vm7  ;;  %v1268_v7 = vsub.f32 1.5, %v1267_v55  ;;  %vm1260_vm14 = vweird.f32 %v4189_v3  ;;  %vm1281_vm0 = vweird.f32 %v4214_v56 }
 0x3ea   : > { %v1523_v28 = vsel %vm1522_vm6, %v2949_v45, %v1519_v25  ;;  %v1346_v50 = vmul.f32 %v2953_v44, %v1345_v37  ;;  %2958 = vtanh.f32 %v1605_v49  ;;  %v1275_v45 = vmul.f32 %v4214_v56, %v4169_v4  ;;  %v1785_v49 = vpop.f32.mrf.mxu3  ;;  %v4235_v37 = vld [vmem:[%s5304_s6] ss:$0 sm:$0xff]  ;;  %vm1282_vm2 = vmor %vm1280_vm1, %vm1281_vm0 }
 0x3eb   : > { %v1555_v0 = vmul.f32 %v1523_v28, %v4034_v39 }
 0x3ec   : > { %v1347_v9 = vmul.f32 0.5, %v1346_v50  ;;  %v919_v36 = vpop.xlane.xlu1 %918  ;;  %v1276_v5 = vmul.f32 %v4214_v56, %v1275_v45  ;;  %v4242_v50 = vadd.f32 %v4235_v37, %v1785_v49 }
 0x3ed   : > { %v965_v1 = vmul.f32 0.02, %v919_v36  ;;  %v1590_v34 = vmul.f32 %v4182_v18, %v1555_v0 }
 0x3ee   : > { %v1348_v6 = vsub.f32 1.5, %v1347_v9 }
 0x3ef   : > { %v2957_v38 = vpop.eup %2956  ;;  %v4222_v39 = vsub.f32 %v4066_v22, %v965_v1  ;;  %v1625_v14 = vadd.f32 %v4194_v21, %v1590_v34 }
 0x3f0   : > { %v2959_v46 = vpop.eup %2958  ;;  %v1349_v26 = vmul.f32 %v2953_v44, %v1348_v6  ;;  %v1255_v57 = vmul.f32 %v2957_v38, %v4189_v3  ;;  %vm1261_vm11 = vweird.f32 %v2957_v38  ;;  %v1823_v3 = vmul.f32 %v3408_v35, %v4242_v50 }
 0x3f1   : > { %1727 = vmatmul.f32.vlgmr.msra.gmra.mxu1 %v2959_v46  ;;  %v1029_v58 = vmul.f32 %v3408_v35, %v4222_v39  ;;  %2960 = vtanh.f32 %v1625_v14  ;;  %vm1262_vm15 = vmor %vm1260_vm14, %vm1261_vm11 }
 0x3f2   : > { %v1353_v41 = vsel %vm1352_vm9, %v2953_v44, %v1349_v26  ;;  %v1256_v22 = vmul.f32 %v2957_v38, %v1255_v57  ;;  %2962 = vtanh.f32 %v1606_v62  ;;  %v1269_v44 = vmul.f32 %v4173_v33, %v1268_v7 }
 0x3f3   : > { %v1061_v8 = vmul.f32 %v1029_v58, %v1029_v58  ;;  %v1538_v63 = vmul.f32 %v1353_v41, %v4047_v16  ;;  %v1277_v16 = vmul.f32 0.5, %v1276_v5  ;;  %2964 = vtanh.f32 %v1607_v31 }
 0x3f4   : > { %v1257_v15 = vmul.f32 0.5, %v1256_v22  ;;  %v921_v25 = vpop.xlane.xlu1 %920 }
 0x3f5   : > { %v966_v61 = vmul.f32 0.02, %v921_v25  ;;  %1110 = vadd.xlane.f32.xlu2 %v1061_v8  ;;  %v1573_v1 = vmul.f32 %v4182_v18, %v1538_v63  ;;  %v1278_v55 = vsub.f32 1.5, %v1277_v16 }
 0x3f6   : > { %v1258_v40 = vsub.f32 1.5, %v1257_v15 }
 0x3f7   : > { %v2961_v28 = vpop.eup %2960  ;;  %v4245_v0 = vsub.f32 %v4074_v2, %v966_v61  ;;  %v1273_v2 = vsel %vm4247_vm13, %v4173_v33, %v1269_v44  ;;  %v1608_v14 = vadd.f32 %v4194_v21, %v1573_v1  ;;  %v1279_v33 = vmul.f32 %v4214_v56, %v1278_v55 }
 0x3f8   : > { %v2963_v9 = vpop.eup %2962  ;;  %v1259_v11 = vmul.f32 %v2957_v38, %v1258_v40  ;;  %1787 = vmatmul.f32.gmra.mxu3 %v2961_v28  ;;  %v1530_v57 = vmul.f32 %v1273_v2, %v3976_v19 }
 0x3f9   : > { %1730 = vmatmul.f32.gmra.mxu1 %v2963_v9  ;;  %v1030_v32 = vmul.f32 %v3408_v35, %v4245_v0  ;;  %v2965_v58 = vpop.eup %2964  ;;  %2966 = vtanh.f32 %v1608_v14  ;;  %v1283_v7 = vsel %vm1282_vm2, %v4214_v56, %v1279_v33 }
 0x3fa   : > { %v1263_v34 = vsel %vm1262_vm15, %v2957_v38, %v1259_v11  ;;  %v1565_v17 = vmul.f32 %v4182_v18, %v1530_v57  ;;  %v1531_v41 = vmul.f32 %v1283_v7, %v3985_v48 }
 0x3fb   : > { %v1529_v6 = vmul.f32 %v1263_v34, %v4055_v29  ;;  %v1062_v62 = vmul.f32 %v1030_v32, %v1030_v32 }
 0x3fc   : > { %v1093_v45 = vpop.xlane.xlu1 %1092  ;;  %v1600_v22 = vadd.f32 %v4194_v21, %v1565_v17  ;;  %v1566_v4 = vmul.f32 %v4182_v18, %v1531_v41 }
 0x3fd   : > { %v1148_v46 = vmul.f32 0.02, %v1093_v45  ;;  %1112 = vadd.xlane.f32.xlu0 %v1062_v62  ;;  %1885 = vadd.xlane.f32.xlu2 %v1823_v3  ;;  %v1564_v26 = vmul.f32 %v4182_v18, %v1529_v6 }
 0x3fe   : > { %v1601_v61 = vadd.f32 %v4194_v21, %v1566_v4 }
 0x3ff   : > { %v1180_v38 = vadd.f32 1e-05, %v1148_v46  ;;  %v1599_v29 = vadd.f32 %v4194_v21, %v1564_v26  ;;  %v2967_v19 = vpop.eup %2966 }
 0x401   : > { %2968 = vrsqrt.f32 %v1180_v38  ;;  %1733 = vmatmul.f32.gmra.mxu1 %v2965_v58  ;;  %vm1290_vm4 = vweird.f32 %v1180_v38 }
 0x402   : > { %2970 = vtanh.f32 %v1599_v29 }
 0x403   : > { %2972 = vtanh.f32 %v1600_v22 }
 0x404   : > { %2974 = vtanh.f32 %v1601_v61  ;;  %v1117_v36 = vpop.xlane.xlu1 %1116 }
 0x405   : > { %v1160_v11 = vmul.f32 0.02, %v1117_v36 }
 0x407   : > { %v2969_v5 = vpop.eup %2968  ;;  %v1192_v1 = vadd.f32 1e-05, %v1160_v11 }
 0x408   : > { %v2971_v8 = vpop.eup %2970  ;;  %v1285_v49 = vmul.f32 %v2969_v5, %v1180_v38  ;;  %vm1291_vm3 = vweird.f32 %v2969_v5 }
 0x409   : > { %1709 = vmatmul.f32.gmra.mxu0 %v2971_v8  ;;  %1736 = vmatmul.f32.gmra.mxu1 %v2967_v19  ;;  %v2973_v56 = vpop.eup %2972  ;;  %vm1292_vm5 = vmor %vm1290_vm4, %vm1291_vm3  ;;  %vm1410_vm11 = vweird.f32 %v1192_v1 }
 0x40a   : > { %v1286_v63 = vmul.f32 %v2969_v5, %v1285_v49  ;;  %v2975_v16 = vpop.eup %2974 }
 0x40c   : > { %v1287_v15 = vmul.f32 0.5, %v1286_v63 }
 0x40e   : > { %v1288_v25 = vsub.f32 1.5, %v1287_v15 }
 0x410   : > { %v1289_v44 = vmul.f32 %v2969_v5, %v1288_v25 }
 0x411   : > { %1712 = vmatmul.f32.gmra.mxu0 %v2973_v56 }
 0x412   : > { %v1293_v48 = vsel %vm1292_vm5, %v2969_v5, %v1289_v44 }
 0x413   : > { %v1532_v40 = vmul.f32 %v1293_v48, %v4077_v12 }
 0x415   : > { %v1567_v31 = vmul.f32 %v4182_v18, %v1532_v40 }
 0x417   : > { %v1602_v28 = vadd.f32 %v4194_v21, %v1567_v31 }
 0x419   : > { %1715 = vmatmul.f32.gmra.mxu0 %v2975_v16  ;;  %2976 = vtanh.f32 %v1602_v28 }
 0x41a   : > { %2978 = vrsqrt.f32 %v1192_v1 }
 0x41f   : > { %v2977_v9 = vpop.eup %2976 }
 0x420   : > { %v2979_v55 = vpop.eup %2978 }
 0x421   : > { %1718 = vmatmul.f32.gmra.mxu0 %v2977_v9  ;;  %v1405_v12 = vmul.f32 %v2979_v55, %v1192_v1  ;;  %vm1411_vm9 = vweird.f32 %v2979_v55 }
 0x422   : > { %vm1412_vm12 = vmor %vm1410_vm11, %vm1411_vm9 }
 0x423   : > { %v1406_v46 = vmul.f32 %v2979_v55, %v1405_v12 }
 0x425   : > { %v1407_v38 = vmul.f32 0.5, %v1406_v46 }
 0x427   : > { %v1408_v22 = vsub.f32 1.5, %v1407_v38 }
 0x429   : > { %v1409_v15 = vmul.f32 %v2979_v55, %v1408_v22 }
 0x42b   : > { %v1413_v16 = vsel %vm1412_vm12, %v2979_v55, %v1409_v15 }
 0x42c   : > { %v1544_v11 = vmul.f32 %v1413_v16, %v4085_v13 }
 0x42e   : > { %v1579_v46 = vmul.f32 %v4182_v18, %v1544_v11 }
 0x430   : > { %v1107_v32 = vpop.xlane.xlu0 %1106  ;;  %v1614_v38 = vadd.f32 %v4194_v21, %v1579_v46 }
 0x431   : > { %v1155_v2 = vmul.f32 0.02, %v1107_v32 }
 0x433   : > { %v1187_v34 = vadd.f32 1e-05, %v1155_v2 }
 0x435   : > { %2980 = vrsqrt.f32 %v1187_v34  ;;  %vm1360_vm7 = vweird.f32 %v1187_v34 }
 0x438   : > { %v1115_v6 = vpop.xlane.xlu2 %1114 }
 0x439   : > { %v1159_v62 = vmul.f32 0.02, %v1115_v6 }
 0x43b   : > { %v2981_v3 = vpop.eup %2980  ;;  %v1191_v45 = vadd.f32 1e-05, %v1159_v62 }
 0x43c   : > { %v1355_v14 = vmul.f32 %v2981_v3, %v1187_v34  ;;  %vm1361_vm6 = vweird.f32 %v2981_v3 }
 0x43d   : > { %2982 = vrsqrt.f32 %v1191_v45  ;;  %vm1362_vm8 = vmor %vm1360_vm7, %vm1361_vm6  ;;  %vm1400_vm13 = vweird.f32 %v1191_v45 }
 0x43e   : > { %v1356_v26 = vmul.f32 %v2981_v3, %v1355_v14 }
 0x440   : > { %v1357_v57 = vmul.f32 0.5, %v1356_v26  ;;  %v1095_v33 = vpop.xlane.xlu0 %1094 }
 0x441   : > { %v1149_v29 = vmul.f32 0.02, %v1095_v33 }
 0x442   : > { %v1358_v58 = vsub.f32 1.5, %v1357_v57 }
 0x443   : > { %v2983_v17 = vpop.eup %2982  ;;  %v1181_v7 = vadd.f32 1e-05, %v1149_v29 }
 0x444   : > { %v1359_v19 = vmul.f32 %v2981_v3, %v1358_v58  ;;  %v1395_v41 = vmul.f32 %v2983_v17, %v1191_v45  ;;  %vm1401_vm10 = vweird.f32 %v2983_v17 }
 0x445   : > { %2984 = vrsqrt.f32 %v1181_v7  ;;  %vm1402_vm14 = vmor %vm1400_vm13, %vm1401_vm10  ;;  %vm1300_vm0 = vweird.f32 %v1181_v7 }
 0x446   : > { %v1363_v5 = vsel %vm1362_vm8, %v2981_v3, %v1359_v19  ;;  %v1396_v8 = vmul.f32 %v2983_v17, %v1395_v41 }
 0x447   : > { %v1539_v49 = vmul.f32 %v1363_v5, %v4094_v51  ;;  %v4289_v5 = vpop.f32.mrf.mxu0 }
 0x448   : > { %v1397_v63 = vmul.f32 0.5, %v1396_v8  ;;  %v1109_v4 = vpop.xlane.xlu1 %1108 }
 0x449   : > { %v1156_v25 = vmul.f32 0.02, %v1109_v4  ;;  %v1574_v61 = vmul.f32 %v4182_v18, %v1539_v49 }
 0x44a   : > { %v1398_v56 = vsub.f32 1.5, %v1397_v63 }
 0x44b   : > { %v2985_v44 = vpop.eup %2984  ;;  %v1188_v48 = vadd.f32 1e-05, %v1156_v25  ;;  %v1609_v40 = vadd.f32 %v4194_v21, %v1574_v61 }
 0x44c   : > { %v1399_v31 = vmul.f32 %v2983_v17, %v1398_v56  ;;  %v1295_v28 = vmul.f32 %v2985_v44, %v1181_v7  ;;  %vm1301_vm15 = vweird.f32 %v2985_v44 }
 0x44d   : > { %2986 = vrsqrt.f32 %v1188_v48  ;;  %vm1302_vm1 = vmor %vm1300_vm0, %vm1301_vm15  ;;  %vm1370_vm3 = vweird.f32 %v1188_v48 }
 0x44e   : > { %v1403_v51 = vsel %vm1402_vm14, %v2983_v17, %v1399_v31  ;;  %v1296_v9 = vmul.f32 %v2985_v44, %v1295_v28  ;;  %2988 = vtanh.f32 %v1609_v40 }
 0x44f   : > { %v1543_v36 = vmul.f32 %v1403_v51, %v4099_v60  ;;  %v4294_v31 = vpop.f32.mrf.mxu0 }
 0x450   : > { %v1297_v32 = vmul.f32 0.5, %v1296_v9  ;;  %v1097_v2 = vpop.xlane.xlu2 %1096 }
 0x451   : > { %v1150_v1 = vmul.f32 0.02, %v1097_v2  ;;  %v1578_v34 = vmul.f32 %v4182_v18, %v1543_v36 }
 0x452   : > { %v1298_v6 = vsub.f32 1.5, %v1297_v32 }
 0x453   : > { %v2987_v12 = vpop.eup %2986  ;;  %v1182_v62 = vadd.f32 1e-05, %v1150_v1  ;;  %v1613_v55 = vadd.f32 %v4194_v21, %v1578_v34 }
 0x454   : > { %v2989_v3 = vpop.eup %2988  ;;  %v1299_v45 = vmul.f32 %v2985_v44, %v1298_v6  ;;  %v1365_v14 = vmul.f32 %v2987_v12, %v1188_v48  ;;  %vm1371_vm2 = vweird.f32 %v2987_v12 }
 0x455   : > { %2990 = vrsqrt.f32 %v1182_v62  ;;  %1739 = vmatmul.f32.gmra.mxu1 %v2989_v3  ;;  %vm1372_vm4 = vmor %vm1370_vm3, %vm1371_vm2  ;;  %vm1310_vm6 = vweird.f32 %v1182_v62 }
 0x456   : > { %v1303_v13 = vsel %vm1302_vm1, %v2985_v44, %v1299_v45  ;;  %v1366_v60 = vmul.f32 %v2987_v12, %v1365_v14  ;;  %2992 = vtanh.f32 %v1613_v55 }
 0x457   : > { %v1533_v26 = vmul.f32 %v1303_v13, %v4109_v20  ;;  %2994 = vtanh.f32 %v1614_v38 }
 0x458   : > { %v1367_v57 = vmul.f32 0.5, %v1366_v60  ;;  %v1119_v33 = vpop.xlane.xlu0 %1118 }
 0x459   : > { %v1161_v29 = vmul.f32 0.02, %v1119_v33  ;;  %v1568_v58 = vmul.f32 %v4182_v18, %v1533_v26 }
 0x45a   : > { %v1368_v17 = vsub.f32 1.5, %v1367_v57 }
 0x45b   : > { %v2991_v7 = vpop.eup %2990  ;;  %v1193_v19 = vadd.f32 1e-05, %v1161_v29  ;;  %v1603_v41 = vadd.f32 %v4194_v21, %v1568_v58 }
 0x45c   : > { %v2993_v22 = vpop.eup %2992  ;;  %v1369_v8 = vmul.f32 %v2987_v12, %v1368_v17  ;;  %v1305_v49 = vmul.f32 %v2991_v7, %v1182_v62  ;;  %vm1311_vm5 = vweird.f32 %v2991_v7  ;;  %v4299_v62 = vpop.f32.mrf.mxu0 }
 0x45d   : > { %2996 = vrsqrt.f32 %v1193_v19  ;;  %1751 = vmatmul.f32.vlgmr.msra.gmra.mxu2 %v2993_v22  ;;  %v2995_v61 = vpop.eup %2994  ;;  %vm1312_vm7 = vmor %vm1310_vm6, %vm1311_vm5  ;;  %vm1420_vm9 = vweird.f32 %v1193_v19 }
 0x45e   : > { %v1373_v20 = vsel %vm1372_vm4, %v2987_v12, %v1369_v8  ;;  %v1306_v63 = vmul.f32 %v2991_v7, %v1305_v49  ;;  %2998 = vtanh.f32 %v1603_v41 }
 0x45f   : > { %v1540_v4 = vmul.f32 %v1373_v20, %v4123_v59 }
 0x460   : > { %v1307_v15 = vmul.f32 0.5, %v1306_v63 }
 0x461   : > { %v1575_v25 = vmul.f32 %v4182_v18, %v1540_v4 }
 0x462   : > { %v1308_v56 = vsub.f32 1.5, %v1307_v15 }
 0x463   : > { %v2997_v44 = vpop.eup %2996  ;;  %v1610_v40 = vadd.f32 %v4194_v21, %v1575_v25 }
 0x464   : > { %v2999_v48 = vpop.eup %2998  ;;  %v1309_v28 = vmul.f32 %v2991_v7, %v1308_v56  ;;  %v1415_v16 = vmul.f32 %v2997_v44, %v1193_v19  ;;  %vm1421_vm8 = vweird.f32 %v2997_v44  ;;  %v4306_v38 = vpop.f32.mrf.mxu0 }
 0x465   : > { %1721 = vmatmul.f32.gmra.mxu0 %v2999_v48  ;;  %1754 = vmatmul.f32.gmra.mxu2 %v2995_v61  ;;  %3000 = vtanh.f32 %v1610_v40  ;;  %vm1422_vm10 = vmor %vm1420_vm9, %vm1421_vm8  ;;  %v4321_v48 = vadd.f32 %v4235_v37, %v4211_v24 }
 0x466   : > { %v1313_v59 = vsel %vm1312_vm7, %v2991_v7, %v1309_v28  ;;  %v1416_v51 = vmul.f32 %v2997_v44, %v1415_v16 }
 0x467   : > { %v1534_v9 = vmul.f32 %v1313_v59, %v4135_v30 }
 0x468   : > { %v1417_v36 = vmul.f32 0.5, %v1416_v51  ;;  %v1111_v11 = vpop.xlane.xlu2 %1110 }
 0x469   : > { %v1157_v32 = vmul.f32 0.02, %v1111_v11  ;;  %v1569_v2 = vmul.f32 %v4182_v18, %v1534_v9 }
 0x46a   : > { %v1418_v1 = vsub.f32 1.5, %v1417_v36  ;;  %v1822_v36 = vmul.f32 %v3408_v35, %v4321_v48 }
 0x46b   : > { %v3001_v34 = vpop.eup %3000  ;;  %v1189_v6 = vadd.f32 1e-05, %v1157_v32  ;;  %v1604_v12 = vadd.f32 %v4194_v21, %v1569_v2 }
 0x46c   : > { %v1419_v55 = vmul.f32 %v2997_v44, %v1418_v1  ;;  %1742 = vmatmul.f32.gmra.mxu1 %v3001_v34  ;;  %v4313_v63 = vpop.f32.mrf.mxu0 }
 0x46d   : > { %3002 = vrsqrt.f32 %v1189_v6  ;;  %vm1380_vm12 = vweird.f32 %v1189_v6 }
 0x46e   : > { %v1423_v3 = vsel %vm1422_vm10, %v2997_v44, %v1419_v55  ;;  %v4301_v30 = vpop.f32.mrf.mxu1  ;;  %3004 = vtanh.f32 %v1604_v12 }
 0x46f   : > { %v1545_v45 = vmul.f32 %v1423_v3, %v4152_v43  ;;  %v4349_v3 = vadd.f32 %v4235_v37, %v4130_v47  ;;  %v4361_v47 = vadd.f32 %v4235_v37, %v4101_v42 }
 0x470   : > { %v1113_v14 = vpop.xlane.xlu0 %1112 }
 0x471   : > { %v1158_v46 = vmul.f32 0.02, %v1113_v14  ;;  %v1580_v13 = vmul.f32 %v4182_v18, %v1545_v45 }
 0x473   : > { %v3003_v60 = vpop.eup %3002  ;;  %v1190_v26 = vadd.f32 1e-05, %v1158_v46  ;;  %v1615_v57 = vadd.f32 %v4194_v21, %v1580_v13  ;;  %v1817_v13 = vmul.f32 %v3408_v35, %v4361_v47 }
 0x474   : > { %v3005_v33 = vpop.eup %3004  ;;  %v1375_v29 = vmul.f32 %v3003_v60, %v1189_v6  ;;  %vm1381_vm11 = vweird.f32 %v3003_v60 }
 0x475   : > { %3006 = vrsqrt.f32 %v1190_v26  ;;  %1724 = vmatmul.f32.gmra.mxu0 %v3005_v33  ;;  %vm1382_vm13 = vmor %vm1380_vm12, %vm1381_vm11  ;;  %vm1390_vm15 = vweird.f32 %v1190_v26 }
 0x476   : > { %v1376_v58 = vmul.f32 %v3003_v60, %v1375_v29  ;;  %v4308_v17 = vpop.f32.mrf.mxu1  ;;  %3008 = vtanh.f32 %v1615_v57  ;;  %v4377_v29 = vadd.f32 %v4235_v37, %v4171_v10 }
 0x478   : > { %v1377_v7 = vmul.f32 0.5, %v1376_v58  ;;  %v1821_v58 = vmul.f32 %v3408_v35, %v4377_v29 }
 0x47a   : > { %v1378_v43 = vsub.f32 1.5, %v1377_v7  ;;  %v4383_v7 = vadd.f32 %v4235_v37, %v4308_v17 }
 0x47b   : > { %v3007_v19 = vpop.eup %3006  ;;  %v1788_v41 = vpop.f32.mrf.mxu3 }
 0x47c   : > { %v3009_v22 = vpop.eup %3008  ;;  %v1379_v8 = vmul.f32 %v3003_v60, %v1378_v43  ;;  %v1385_v49 = vmul.f32 %v3007_v19, %v1190_v26  ;;  %v4311_v20 = vadd.f32 %v4235_v37, %v1788_v41  ;;  %vm1391_vm14 = vweird.f32 %v3007_v19 }
 0x47d   : > { %1757 = vmatmul.f32.gmra.mxu2 %v3009_v22  ;;  %vm1392_vm0 = vmor %vm1390_vm15, %vm1391_vm14  ;;  %v1805_v43 = vmul.f32 %v3408_v35, %v4383_v7 }
 0x47e   : > { %v1383_v4 = vsel %vm1382_vm13, %v3003_v60, %v1379_v8  ;;  %v1386_v15 = vmul.f32 %v3007_v19, %v1385_v49  ;;  %v1734_v25 = vpop.f32.mrf.mxu1  ;;  %v1824_v61 = vmul.f32 %v3408_v35, %v4311_v20 }
 0x47f   : > { %v1541_v56 = vmul.f32 %v1383_v4, %v4222_v39  ;;  %v4336_v1 = vadd.f32 %v4235_v37, %v1734_v25  ;;  %v4405_v25 = vadd.f32 %v4235_v37, %v4089_v54 }
 0x480   : > { %v1387_v44 = vmul.f32 0.5, %v1386_v15  ;;  %1887 = vadd.xlane.f32.xlu1 %v1824_v61  ;;  %v4409_v61 = vadd.f32 %v4235_v37, %v4091_v53 }
 0x481   : > { %v1576_v40 = vmul.f32 %v4182_v18, %v1541_v56  ;;  %v1806_v55 = vmul.f32 %v3408_v35, %v4336_v1 }
 0x482   : > { %v1388_v28 = vsub.f32 1.5, %v1387_v44  ;;  %v1816_v56 = vmul.f32 %v3408_v35, %v4409_v61  ;;  %v1815_v44 = vmul.f32 %v3408_v35, %v4405_v25 }
 0x483   : > { %v1611_v16 = vadd.f32 %v4194_v21, %v1576_v40 }
 0x484   : > { %v1389_v59 = vmul.f32 %v3007_v19, %v1388_v28 }
 0x485   : > { %3010 = vtanh.f32 %v1611_v16 }
 0x486   : > { %v1393_v51 = vsel %vm1392_vm0, %v3007_v19, %v1389_v59  ;;  %v4324_v9 = vpop.f32.mrf.mxu0  ;;  %v1737_v39 = vpop.f32.mrf.mxu1  ;;  %v4389_v19 = vadd.f32 %v4235_v37, %v4113_v27 }
 0x487   : > { %v1542_v11 = vmul.f32 %v1393_v51, %v4245_v0  ;;  %v4330_v24 = vadd.f32 %v4235_v37, %v1737_v39  ;;  %v4341_v0 = vadd.f32 %v4235_v37, %v4145_v52  ;;  %v4353_v52 = vadd.f32 %v4235_v37, %v4301_v30 }
 0x488   : > { %1883 = vadd.xlane.f32.xlu1 %v1822_v36  ;;  %v1818_v10 = vmul.f32 %v3408_v35, %v4389_v19 }
 0x489   : > { %v1807_v32 = vmul.f32 %v3408_v35, %v4330_v24  ;;  %v1577_v2 = vmul.f32 %v4182_v18, %v1542_v11  ;;  %v1820_v18 = vmul.f32 %v3408_v35, %v4341_v0  ;;  %v1804_v46 = vmul.f32 %v3408_v35, %v4353_v52 }
 0x48a   : > { %v4434_v11 = vadd.f32 %v4235_v37, %v4324_v9 }
 0x48b   : > { %v3011_v34 = vpop.eup %3010  ;;  %1853 = vadd.xlane.f32.xlu2 %v1807_v32  ;;  %v1612_v6 = vadd.f32 %v4194_v21, %v1577_v2  ;;  %v1819_v21 = vmul.f32 %v3408_v35, %v4349_v3 }
 0x48c   : > { %1745 = vmatmul.f32.gmra.mxu1 %v3011_v34 }
 0x48d   : > { %3012 = vtanh.f32 %v1612_v6 }
 0x48e   : > { %v1713_v12 = vpop.f32.mrf.mxu0 }
 0x48f   : > { %v4416_v28 = vadd.f32 %v4235_v37, %v1713_v12  ;;  %v1798_v12 = vmul.f32 %v3408_v35, %v4434_v11 }
 0x490   : > { %1851 = vadd.xlane.f32.xlu1 %v1806_v55 }
 0x491   : > { %v1799_v39 = vmul.f32 %v3408_v35, %v4416_v28 }
 0x493   : > { %v3013_v45 = vpop.eup %3012  ;;  %1879 = vadd.xlane.f32.xlu2 %v1820_v18 }
 0x494   : > { %1748 = vmatmul.f32.gmra.mxu1 %v3013_v45  ;;  %v1886_v45 = vpop.xlane.xlu2 %1885 }
 0x496   : > { %v1716_v14 = vpop.f32.mrf.mxu0 }
 0x497   : > { %v4419_v16 = vadd.f32 %v4235_v37, %v1716_v14  ;;  %v1919_v14 = vmul.f32 0.02, %v1886_v45 }
 0x498   : > { %1877 = vadd.xlane.f32.xlu1 %v1819_v21  ;;  %v4453_v21 = vadd.f32 %v4235_v37, %v4313_v63 }
 0x499   : > { %v1800_v51 = vmul.f32 %v3408_v35, %v4419_v16  ;;  %v4465_v63 = vsub.f32 %v4242_v50, %v1919_v14 }
 0x49b   : > { %1847 = vadd.xlane.f32.xlu2 %v1804_v46 }
 0x49e   : > { %v1719_v60 = vpop.f32.mrf.mxu0 }
 0x49f   : > { %v4366_v30 = vadd.f32 %v4235_v37, %v1719_v60 }
 0x4a1   : > { %v1801_v26 = vmul.f32 %v3408_v35, %v4366_v30 }
 0x4a3   : > { %1873 = vadd.xlane.f32.xlu2 %v1817_v13 }
 0x4ab   : > { %1841 = vadd.xlane.f32.xlu2 %v1801_v26 }
 0x4d2   : > { %v1740_v57 = vpop.f32.mrf.mxu1 }
 0x4d3   : > { %v4371_v33 = vadd.f32 %v4235_v37, %v1740_v57 }
 0x4d5   : > { %v1808_v42 = vmul.f32 %v3408_v35, %v4371_v33 }
 0x4d7   : > { %1855 = vadd.xlane.f32.xlu0 %v1808_v42 }
 0x4df   : > { %1881 = vadd.xlane.f32.xlu0 %v1821_v58  ;;  %v4469_v58 = vadd.f32 %v4235_v37, %v4306_v38 }
 0x4e0   : > { %v1752_v22 = vpop.f32.mrf.mxu2 }
 0x4e1   : > { %v4437_v32 = vadd.f32 %v4235_v37, %v1752_v22  ;;  %v1796_v22 = vmul.f32 %v3408_v35, %v4469_v58 }
 0x4e2   : > { %v1722_v41 = vpop.f32.mrf.mxu0 }
 0x4e3   : > { %v4394_v8 = vadd.f32 %v4235_v37, %v1722_v41  ;;  %v1812_v55 = vmul.f32 %v3408_v35, %v4437_v32 }
 0x4e5   : > { %v1802_v27 = vmul.f32 %v3408_v35, %v4394_v8 }
 0x4e7   : > { %1849 = vadd.xlane.f32.xlu0 %v1805_v43 }
 0x4e8   : > { %v1755_v15 = vpop.f32.mrf.mxu2 }
 0x4e9   : > { %v4421_v54 = vpop.f32.mrf.mxu1  ;;  %v4440_v2 = vadd.f32 %v4235_v37, %v1755_v15 }
 0x4eb   : > { %v1813_v9 = vmul.f32 %v3408_v35, %v4440_v2 }
 0x4ef   : > { %1875 = vadd.xlane.f32.xlu0 %v1818_v10  ;;  %v1983_v10 = vmul.f32 %v3408_v35, %v4465_v63 }
 0x4f2   : > { %v1725_v49 = vpop.f32.mrf.mxu0 }
 0x4f3   : > { %v4397_v17 = vadd.f32 %v4235_v37, %v1725_v49  ;;  %v1888_v36 = vpop.xlane.xlu1 %1887 }
 0x4f4   : > { %v1920_v34 = vmul.f32 0.02, %v1888_v36 }
 0x4f5   : > { %v1803_v4 = vmul.f32 %v3408_v35, %v4397_v17 }
 0x4f6   : > { %v4449_v18 = vsub.f32 %v4311_v20, %v1920_v34  ;;  %v1797_v20 = vmul.f32 %v3408_v35, %v4453_v21 }
 0x4f7   : > { %1845 = vadd.xlane.f32.xlu1 %v1803_v4  ;;  %1843 = vadd.xlane.f32.xlu0 %v1802_v27  ;;  %v2015_v4 = vmul.f32 %v1983_v10, %v1983_v10 }
 0x4f8   : > { %v1984_v13 = vmul.f32 %v3408_v35, %v4449_v18 }
 0x4fa   : > { %v2016_v42 = vmul.f32 %v1984_v13, %v1984_v13  ;;  %v4508_v13 = vadd.f32 %v4235_v37, %v4421_v54 }
 0x4fb   : > { %v1884_v26 = vpop.xlane.xlu1 %1883 }
 0x4fc   : > { %v1918_v43 = vmul.f32 0.02, %v1884_v26 }
 0x4fe   : > { %v4479_v50 = vsub.f32 %v4321_v48, %v1918_v43  ;;  %v1854_v49 = vpop.xlane.xlu2 %1853 }
 0x4ff   : > { %1871 = vadd.xlane.f32.xlu1 %v1816_v56  ;;  %1869 = vadd.xlane.f32.xlu0 %v1815_v44  ;;  %v1903_v27 = vmul.f32 0.02, %v1854_v49  ;;  %v4487_v56 = vadd.f32 %v4235_v37, %v4299_v62 }
 0x500   : > { %v1758_v40 = vpop.f32.mrf.mxu2  ;;  %v1982_v15 = vmul.f32 %v3408_v35, %v4479_v50 }
 0x501   : > { %v4424_v53 = vadd.f32 %v4235_v37, %v1758_v40  ;;  %v4490_v44 = vsub.f32 %v4330_v24, %v1903_v27 }
 0x502   : > { %v2014_v48 = vmul.f32 %v1982_v15, %v1982_v15 }
 0x503   : > { %v1814_v59 = vmul.f32 %v3408_v35, %v4424_v53  ;;  %v1852_v40 = vpop.xlane.xlu1 %1851 }
 0x505   : > { %1867 = vadd.xlane.f32.xlu2 %v1814_v59  ;;  %v1795_v59 = vmul.f32 %v3408_v35, %v4487_v56 }
 0x506   : > { %v1880_v14 = vpop.xlane.xlu2 %1879 }
 0x507   : > { %1839 = vadd.xlane.f32.xlu1 %v1800_v51  ;;  %1837 = vadd.xlane.f32.xlu0 %v1799_v39  ;;  %v1902_v51 = vmul.f32 0.02, %v1852_v40  ;;  %v1967_v39 = vmul.f32 %v3408_v35, %v4490_v44 }
 0x509   : > { %v1746_v6 = vpop.f32.mrf.mxu1  ;;  %v4497_v36 = vsub.f32 %v4336_v1, %v1902_v51  ;;  %v1999_v34 = vmul.f32 %v1967_v39, %v1967_v39 }
 0x50a   : > { %v4472_v41 = vadd.f32 %v4235_v37, %v1746_v6 }
 0x50b   : > { %v1966_v62 = vmul.f32 %v3408_v35, %v4497_v36  ;;  %v1878_v10 = vpop.xlane.xlu1 %1877 }
 0x50c   : > { %v1810_v38 = vmul.f32 %v3408_v35, %v4472_v41 }
 0x50d   : > { %1835 = vadd.xlane.f32.xlu2 %v1798_v12  ;;  %v1998_v24 = vmul.f32 %v1966_v62, %v1966_v62 }
 0x50e   : > { %v1848_v54 = vpop.xlane.xlu2 %1847 }
 0x50f   : > { %1865 = vadd.xlane.f32.xlu1 %v1813_v9  ;;  %1863 = vadd.xlane.f32.xlu0 %v1812_v55  ;;  %v1900_v39 = vmul.f32 0.02, %v1848_v54 }
 0x511   : > { %v1749_v46 = vpop.f32.mrf.mxu1 }
 0x512   : > { %v4458_v60 = vadd.f32 %v4235_v37, %v1749_v46 }
 0x514   : > { %v1811_v57 = vmul.f32 %v3408_v35, %v4458_v60 }
 0x515   : > { %1833 = vadd.xlane.f32.xlu2 %v1797_v20  ;;  %v1916_v20 = vmul.f32 0.02, %v1880_v14 }
 0x517   : > { %2079 = vadd.xlane.f32.xlu1 %v2016_v42  ;;  %1861 = vadd.xlane.f32.xlu0 %v1811_v57  ;;  %v1809_v57 = vmul.f32 %v3408_v35, %v4508_v13  ;;  %v4518_v42 = vsub.f32 %v4341_v0, %v1916_v20 }
 0x519   : > { %v1980_v27 = vmul.f32 %v3408_v35, %v4518_v42 }
 0x51b   : > { %v2012_v40 = vmul.f32 %v1980_v27, %v1980_v27 }
 0x51d   : > { %1831 = vadd.xlane.f32.xlu2 %v1796_v22 }
 0x51f   : > { %2077 = vadd.xlane.f32.xlu1 %v2015_v4  ;;  %1859 = vadd.xlane.f32.xlu0 %v1810_v38  ;;  %v1915_v38 = vmul.f32 0.02, %v1878_v10 }
 0x525   : > { %2075 = vadd.xlane.f32.xlu2 %v2014_v48  ;;  %v4534_v48 = vsub.f32 %v4349_v3, %v1915_v38  ;;  %v1874_v3 = vpop.xlane.xlu2 %1873 }
 0x527   : > { %1829 = vadd.xlane.f32.xlu0 %v1795_v59  ;;  %v1979_v62 = vmul.f32 %v3408_v35, %v4534_v48 }
 0x52d   : > { %2045 = vadd.xlane.f32.xlu2 %v1999_v34 }
 0x535   : > { %2043 = vadd.xlane.f32.xlu2 %v1998_v24 }
 0x54a   : > { %v1856_v6 = vpop.xlane.xlu0 %1855 }
 0x54b   : > { %v1904_v12 = vmul.f32 0.02, %v1856_v6 }
 0x54d   : > { %v4502_v55 = vsub.f32 %v4371_v33, %v1904_v12  ;;  %v4550_v12 = vsub.f32 %v4353_v52, %v1900_v39 }
 0x54f   : > { %v1968_v9 = vmul.f32 %v3408_v35, %v4502_v55  ;;  %v1964_v52 = vmul.f32 %v3408_v35, %v4550_v12 }
 0x551   : > { %v2000_v45 = vmul.f32 %v1968_v9, %v1968_v9  ;;  %v2011_v9 = vmul.f32 %v1979_v62, %v1979_v62 }
 0x552   : > { %v1882_v46 = vpop.xlane.xlu0 %1881 }
 0x553   : > { %v1917_v1 = vmul.f32 0.02, %v1882_v46  ;;  %2047 = vadd.xlane.f32.xlu1 %v2000_v45  ;;  %v1913_v46 = vmul.f32 0.02, %v1874_v3 }
 0x555   : > { %v4511_v26 = vsub.f32 %v4377_v29, %v1917_v1  ;;  %v4522_v29 = vadd.f32 %v4235_v37, %v4294_v31  ;;  %v4565_v10 = vsub.f32 %v4361_v47, %v1913_v46 }
 0x557   : > { %v1981_v33 = vmul.f32 %v3408_v35, %v4511_v26  ;;  %v1794_v15 = vmul.f32 %v3408_v35, %v4522_v29  ;;  %v1977_v47 = vmul.f32 %v3408_v35, %v4565_v10 }
 0x559   : > { %v2013_v43 = vmul.f32 %v1981_v33, %v1981_v33  ;;  %v2009_v62 = vmul.f32 %v1977_v47, %v1977_v47 }
 0x55a   : > { %v1850_v22 = vpop.xlane.xlu0 %1849 }
 0x55b   : > { %v1901_v49 = vmul.f32 0.02, %v1850_v22  ;;  %1857 = vadd.xlane.f32.xlu1 %v1809_v57  ;;  %2073 = vadd.xlane.f32.xlu0 %v2013_v43  ;;  %v1842_v43 = vpop.xlane.xlu2 %1841  ;;  %v1996_v22 = vmul.f32 %v1964_v52, %v1964_v52 }
 0x55d   : > { %v4525_v4 = vsub.f32 %v4383_v7, %v1901_v49  ;;  %v4538_v7 = vadd.f32 %v4235_v37, %v4289_v5 }
 0x55f   : > { %v1965_v0 = vmul.f32 %v3408_v35, %v4525_v4  ;;  %v1793_v6 = vmul.f32 %v3408_v35, %v4538_v7 }
 0x561   : > { %v1997_v59 = vmul.f32 %v1965_v0, %v1965_v0  ;;  %v1897_v0 = vmul.f32 0.02, %v1842_v43 }
 0x562   : > { %v1876_v31 = vpop.xlane.xlu0 %1875 }
 0x563   : > { %v1914_v51 = vmul.f32 0.02, %v1876_v31  ;;  %1827 = vadd.xlane.f32.xlu1 %v1794_v15  ;;  %2071 = vadd.xlane.f32.xlu0 %v2012_v40  ;;  %v4580_v39 = vsub.f32 %v4366_v30, %v1897_v0 }
 0x564   : > { %2041 = vadd.xlane.f32.xlu2 %v1997_v59 }
 0x565   : > { %v4541_v34 = vsub.f32 %v4389_v19, %v1914_v51  ;;  %v1961_v30 = vmul.f32 %v3408_v35, %v4580_v39 }
 0x567   : > { %v1978_v24 = vmul.f32 %v3408_v35, %v4541_v34 }
 0x569   : > { %v2010_v37 = vmul.f32 %v1978_v24, %v1978_v24 }
 0x56a   : > { %v1846_v5 = vpop.xlane.xlu1 %1845  ;;  %v1844_v45 = vpop.xlane.xlu0 %1843 }
 0x56b   : > { %v1899_v14 = vmul.f32 0.02, %v1846_v5  ;;  %v1898_v19 = vmul.f32 0.02, %v1844_v45  ;;  %1825 = vadd.xlane.f32.xlu1 %v1793_v6  ;;  %2069 = vadd.xlane.f32.xlu0 %v2011_v9 }
 0x56c   : > { %2067 = vadd.xlane.f32.xlu2 %v2010_v37 }
 0x56d   : > { %v4553_v1 = vsub.f32 %v4397_v17, %v1899_v14  ;;  %v4556_v20 = vsub.f32 %v4394_v8, %v1898_v19 }
 0x56f   : > { %v1963_v33 = vmul.f32 %v3408_v35, %v4553_v1  ;;  %v1962_v57 = vmul.f32 %v3408_v35, %v4556_v20 }
 0x571   : > { %v1995_v49 = vmul.f32 %v1963_v33, %v1963_v33  ;;  %v1994_v17 = vmul.f32 %v1962_v57, %v1962_v57  ;;  %v1993_v33 = vmul.f32 %v1961_v30, %v1961_v30 }
 0x572   : > { %v1872_v54 = vpop.xlane.xlu1 %1871  ;;  %v1870_v38 = vpop.xlane.xlu0 %1869 }
 0x573   : > { %v1912_v8 = vmul.f32 0.02, %v1872_v54  ;;  %v1911_v27 = vmul.f32 0.02, %v1870_v38  ;;  %2039 = vadd.xlane.f32.xlu1 %v1996_v22  ;;  %2037 = vadd.xlane.f32.xlu0 %v1995_v49 }
 0x574   : > { %2035 = vadd.xlane.f32.xlu2 %v1994_v17 }
 0x575   : > { %v4568_v15 = vsub.f32 %v4409_v61, %v1912_v8  ;;  %v4571_v40 = vsub.f32 %v4405_v25, %v1911_v27 }
 0x577   : > { %v1976_v59 = vmul.f32 %v3408_v35, %v4568_v15  ;;  %v1975_v31 = vmul.f32 %v3408_v35, %v4571_v40 }
 0x578   : > { %v1868_v51 = vpop.xlane.xlu2 %1867 }
 0x579   : > { %v2008_v3 = vmul.f32 %v1976_v59, %v1976_v59  ;;  %v2007_v61 = vmul.f32 %v1975_v31, %v1975_v31  ;;  %v1910_v37 = vmul.f32 0.02, %v1868_v51 }
 0x57a   : > { %v1840_v24 = vpop.xlane.xlu1 %1839  ;;  %v1838_v6 = vpop.xlane.xlu0 %1837 }
 0x57b   : > { %v1896_v25 = vmul.f32 0.02, %v1840_v24  ;;  %v1895_v9 = vmul.f32 0.02, %v1838_v6  ;;  %2065 = vadd.xlane.f32.xlu1 %v2009_v62  ;;  %2063 = vadd.xlane.f32.xlu0 %v2008_v3  ;;  %v4595_v46 = vsub.f32 %v4424_v53, %v1910_v37 }
 0x57c   : > { %2061 = vadd.xlane.f32.xlu2 %v2007_v61 }
 0x57d   : > { %v4583_v5 = vsub.f32 %v4419_v16, %v1896_v25  ;;  %v4586_v45 = vsub.f32 %v4416_v28, %v1895_v9  ;;  %v1974_v17 = vmul.f32 %v3408_v35, %v4595_v46 }
 0x57f   : > { %v1960_v14 = vmul.f32 %v3408_v35, %v4583_v5  ;;  %v1959_v19 = vmul.f32 %v3408_v35, %v4586_v45  ;;  %v2006_v47 = vmul.f32 %v1974_v17, %v1974_v17 }
 0x580   : > { %v1836_v52 = vpop.xlane.xlu2 %1835 }
 0x581   : > { %v1992_v57 = vmul.f32 %v1960_v14, %v1960_v14  ;;  %v1991_v16 = vmul.f32 %v1959_v19, %v1959_v19  ;;  %v1894_v54 = vmul.f32 0.02, %v1836_v52 }
 0x582   : > { %v1866_v43 = vpop.xlane.xlu1 %1865  ;;  %v1864_v22 = vpop.xlane.xlu0 %1863 }
 0x583   : > { %v1909_v28 = vmul.f32 0.02, %v1866_v43  ;;  %v1908_v49 = vmul.f32 0.02, %v1864_v22  ;;  %2033 = vadd.xlane.f32.xlu1 %v1993_v33  ;;  %2031 = vadd.xlane.f32.xlu0 %v1992_v57  ;;  %v4610_v59 = vsub.f32 %v4434_v11, %v1894_v54 }
 0x584   : > { %2029 = vadd.xlane.f32.xlu2 %v1991_v16 }
 0x585   : > { %v4600_v38 = vsub.f32 %v4440_v2, %v1909_v28  ;;  %v4603_v53 = vsub.f32 %v4437_v32, %v1908_v49  ;;  %v1958_v25 = vmul.f32 %v3408_v35, %v4610_v59 }
 0x587   : > { %v1973_v8 = vmul.f32 %v3408_v35, %v4600_v38  ;;  %v1972_v27 = vmul.f32 %v3408_v35, %v4603_v53 }
 0x588   : > { %v1834_v0 = vpop.xlane.xlu2 %1833 }
 0x589   : > { %v1893_v31 = vmul.f32 0.02, %v1834_v0  ;;  %v2005_v51 = vmul.f32 %v1973_v8, %v1973_v8  ;;  %v2004_v62 = vmul.f32 %v1972_v27, %v1972_v27 }
 0x58a   : > { %v2080_v3 = vpop.xlane.xlu1 %2079  ;;  %v1862_v2 = vpop.xlane.xlu0 %1861 }
 0x58b   : > { %v4613_v61 = vsub.f32 %v4453_v21, %v1893_v31  ;;  %v2112_v32 = vmul.f32 0.02, %v2080_v3  ;;  %2059 = vadd.xlane.f32.xlu1 %v2006_v47  ;;  %2057 = vadd.xlane.f32.xlu0 %v2005_v51  ;;  %v1907_v6 = vmul.f32 0.02, %v1862_v2  ;;  %v1990_v21 = vmul.f32 %v1958_v25, %v1958_v25 }
 0x58c   : > { %2055 = vadd.xlane.f32.xlu2 %v2004_v62 }
 0x58d   : > { %v2144_v24 = vadd.f32 1e-05, %v2112_v32  ;;  %v1957_v11 = vmul.f32 %v3408_v35, %v4613_v61  ;;  %v4620_v37 = vsub.f32 %v4458_v60, %v1907_v6 }
 0x58f   : > { %3014 = vrsqrt.f32 %v2144_v24  ;;  %v1989_v14 = vmul.f32 %v1957_v11, %v1957_v11  ;;  %v1971_v49 = vmul.f32 %v3408_v35, %v4620_v37  ;;  %vm2461_vm2 = vweird.f32 %v2144_v24 }
 0x590   : > { %v1832_v9 = vpop.xlane.xlu2 %1831 }
 0x591   : > { %v1892_v30 = vmul.f32 0.02, %v1832_v9  ;;  %v2003_v47 = vmul.f32 %v1971_v49, %v1971_v49 }
 0x592   : > { %v2078_v19 = vpop.xlane.xlu1 %2077  ;;  %v1860_v52 = vpop.xlane.xlu0 %1859 }
 0x593   : > { %v4623_v33 = vsub.f32 %v4469_v58, %v1892_v30  ;;  %v2111_v57 = vmul.f32 0.02, %v2078_v19  ;;  %v1906_v16 = vmul.f32 0.02, %v1860_v52  ;;  %2027 = vadd.xlane.f32.xlu1 %v1990_v21  ;;  %2025 = vadd.xlane.f32.xlu0 %v1989_v14  ;;  %v4642_v30 = vld [vmem:[%s5305_s7] ss:$0 sm:$0xff] }
 0x595   : > { %v3015_v43 = vpop.eup %3014  ;;  %v2143_v22 = vadd.f32 1e-05, %v2111_v57  ;;  %v4626_v28 = vsub.f32 %v4472_v41, %v1906_v16  ;;  %v1956_v60 = vmul.f32 %v3408_v35, %v4623_v33 }
 0x596   : > { %v2456_v17 = vmul.f32 %v3015_v43, %v2144_v24  ;;  %vm2462_vm1 = vweird.f32 %v3015_v43 }
 0x597   : > { %3016 = vrsqrt.f32 %v2143_v22  ;;  %v1988_v54 = vmul.f32 %v1956_v60, %v1956_v60  ;;  %v1970_v58 = vmul.f32 %v3408_v35, %v4626_v28  ;;  %vm2463_vm3 = vmor %vm2461_vm2, %vm2462_vm1  ;;  %vm2451_vm5 = vweird.f32 %v2143_v22 }
 0x598   : > { %v2457_v8 = vmul.f32 %v3015_v43, %v2456_v17  ;;  %v2076_v27 = vpop.xlane.xlu2 %2075 }
 0x599   : > { %v2110_v0 = vmul.f32 0.02, %v2076_v27  ;;  %2023 = vadd.xlane.f32.xlu2 %v1988_v54  ;;  %v2002_v31 = vmul.f32 %v1970_v58, %v1970_v58 }
 0x59a   : > { %v2458_v41 = vmul.f32 0.5, %v2457_v8  ;;  %v1830_v51 = vpop.xlane.xlu0 %1829 }
 0x59b   : > { %v2142_v62 = vadd.f32 1e-05, %v2110_v0  ;;  %v1891_v3 = vmul.f32 0.02, %v1830_v51  ;;  %2053 = vadd.xlane.f32.xlu1 %v2003_v47  ;;  %2051 = vadd.xlane.f32.xlu0 %v2002_v31 }
 0x59c   : > { %v2459_v2 = vsub.f32 1.5, %v2458_v41 }
 0x59d   : > { %v3017_v32 = vpop.eup %3016  ;;  %3018 = vrsqrt.f32 %v2142_v62  ;;  %v4635_v6 = vsub.f32 %v4487_v56, %v1891_v3  ;;  %v4648_v56 = vld [vmem:[%s5306_s8] ss:$0 sm:$0xff]  ;;  %vm2441_vm8 = vweird.f32 %v2142_v62 }
 0x59e   : > { %v2460_v25 = vmul.f32 %v3015_v43, %v2459_v2  ;;  %v2446_v11 = vmul.f32 %v3017_v32, %v2143_v22  ;;  %vm2452_vm4 = vweird.f32 %v3017_v32 }
 0x59f   : > { %v1955_v9 = vmul.f32 %v3408_v35, %v4635_v6  ;;  %vm2453_vm6 = vmor %vm2451_vm5, %vm2452_vm4 }
 0x5a0   : > { %v2464_v21 = vsel %vm2463_vm3, %v3015_v43, %v2460_v25  ;;  %v2447_v14 = vmul.f32 %v3017_v32, %v2446_v11 }
 0x5a1   : > { %v2496_v19 = vmul.f32 %v2464_v21, %v4449_v18  ;;  %v1987_v52 = vmul.f32 %v1955_v9, %v1955_v9  ;;  %v2046_v18 = vpop.xlane.xlu2 %2045 }
 0x5a2   : > { %v2448_v24 = vmul.f32 0.5, %v2447_v14  ;;  %v2095_v25 = vmul.f32 0.02, %v2046_v18 }
 0x5a3   : > { %v3019_v57 = vpop.eup %3018  ;;  %2021 = vadd.xlane.f32.xlu1 %v1987_v52  ;;  %v2531_v16 = vmul.f32 %v4642_v30, %v2496_v19 }
 0x5a4   : > { %v2449_v60 = vsub.f32 1.5, %v2448_v24  ;;  %v2436_v49 = vmul.f32 %v3019_v57, %v2142_v62  ;;  %vm2442_vm7 = vweird.f32 %v3019_v57  ;;  %v2127_v62 = vadd.f32 1e-05, %v2095_v25 }
 0x5a5   : > { %v2566_v17 = vadd.f32 %v4648_v56, %v2531_v16  ;;  %vm2443_vm9 = vmor %vm2441_vm8, %vm2442_vm7 }
 0x5a6   : > { %v2450_v43 = vmul.f32 %v3017_v32, %v2449_v60  ;;  %v2437_v54 = vmul.f32 %v3019_v57, %v2436_v49  ;;  %vm2291_vm12 = vweird.f32 %v2127_v62 }
 0x5a7   : > { %3020 = vtanh.f32 %v2566_v17 }
 0x5a8   : > { %v2454_v58 = vsel %vm2453_vm6, %v3017_v32, %v2450_v43  ;;  %v2438_v8 = vmul.f32 0.5, %v2437_v54 }
 0x5a9   : > { %v2495_v27 = vmul.f32 %v2454_v58, %v4465_v63  ;;  %v2044_v2 = vpop.xlane.xlu2 %2043 }
 0x5aa   : > { %v2439_v0 = vsub.f32 1.5, %v2438_v8  ;;  %v2094_v11 = vmul.f32 0.02, %v2044_v2 }
 0x5ab   : > { %v2530_v47 = vmul.f32 %v4642_v30, %v2495_v27 }
 0x5ac   : > { %v2440_v31 = vmul.f32 %v3019_v57, %v2439_v0  ;;  %v2126_v21 = vadd.f32 1e-05, %v2094_v11 }
 0x5ad   : > { %v3021_v41 = vpop.eup %3020  ;;  %v2565_v51 = vadd.f32 %v4648_v56, %v2530_v47 }
 0x5ae   : > { %v2444_v3 = vsel %vm2443_vm9, %v3019_v57, %v2440_v31  ;;  %2622 = vmatpush.xpose.msrb.mxu2 %v3021_v41  ;;  %vm2281_vm14 = vweird.f32 %v2126_v21 }
 0x5af   : > { %v2494_v22 = vmul.f32 %v2444_v3, %v4479_v50  ;;  %3022 = vtanh.f32 %v2565_v51 }
 0x5b1   : > { %v2529_v32 = vmul.f32 %v4642_v30, %v2494_v22 }
 0x5b3   : > { %v2564_v63 = vadd.f32 %v4648_v56, %v2529_v32 }
 0x5b5   : > { %v3023_v9 = vpop.eup %3022  ;;  %3024 = vtanh.f32 %v2564_v63 }
 0x5b6   : > { %2623 = vmatpush.xpose.msrb.mxu2 %v3023_v9  ;;  %3026 = vrsqrt.f32 %v2127_v62 }
 0x5b7   : > { %3028 = vrsqrt.f32 %v2126_v21 }
 0x5bb   : > { %v3025_v14 = vpop.eup %3024 }
 0x5bc   : > { %2624 = vmatpush.xpose.msrb.mxu2 %v3025_v14  ;;  %v3027_v19 = vpop.eup %3026 }
 0x5bd   : > { %v3029_v52 = vpop.eup %3028  ;;  %v2286_v50 = vmul.f32 %v3027_v19, %v2127_v62  ;;  %vm2292_vm10 = vweird.f32 %v3027_v19 }
 0x5be   : > { %v2276_v24 = vmul.f32 %v3029_v52, %v2126_v21  ;;  %vm2282_vm11 = vweird.f32 %v3029_v52  ;;  %vm4666_vm13 = vmor %vm2291_vm12, %vm2292_vm10 }
 0x5bf   : > { %v2287_v60 = vmul.f32 %v3027_v19, %v2286_v50  ;;  %vm4670_vm15 = vmor %vm2281_vm14, %vm2282_vm11 }
 0x5c0   : > { %v2277_v49 = vmul.f32 %v3029_v52, %v2276_v24 }
 0x5c1   : > { %v2288_v43 = vmul.f32 0.5, %v2287_v60 }
 0x5c2   : > { %v2278_v54 = vmul.f32 0.5, %v2277_v49 }
 0x5c3   : > { %v2289_v47 = vsub.f32 1.5, %v2288_v43 }
 0x5c4   : > { %v2279_v31 = vsub.f32 1.5, %v2278_v54 }
 0x5c5   : > { %v2290_v32 = vmul.f32 %v3027_v19, %v2289_v47 }
 0x5c6   : > { %v2048_v57 = vpop.xlane.xlu1 %2047  ;;  %v2280_v25 = vmul.f32 %v3029_v52, %v2279_v31 }
 0x5c7   : > { %v2096_v16 = vmul.f32 0.02, %v2048_v57  ;;  %v2294_v43 = vsel %vm4666_vm13, %v3027_v19, %v2290_v32 }
 0x5c8   : > { %v2284_v54 = vsel %vm4670_vm15, %v3029_v52, %v2280_v25  ;;  %v2479_v47 = vmul.f32 %v2294_v43, %v4490_v44 }
 0x5c9   : > { %v2128_v17 = vadd.f32 1e-05, %v2096_v16 }
 0x5cb   : > { %3030 = vrsqrt.f32 %v2128_v17  ;;  %vm2301_vm1 = vweird.f32 %v2128_v17 }
 0x5ce   : > { %v1858_v18 = vpop.xlane.xlu1 %1857  ;;  %v2074_v58 = vpop.xlane.xlu0 %2073 }
 0x5cf   : > { %v1905_v8 = vmul.f32 0.02, %v1858_v18  ;;  %v2109_v27 = vmul.f32 0.02, %v2074_v58 }
 0x5d1   : > { %v3031_v0 = vpop.eup %3030  ;;  %v4659_v41 = vsub.f32 %v4508_v13, %v1905_v8  ;;  %v4661_v51 = vadd.f32 1e-05, %v2109_v27 }
 0x5d2   : > { %v2296_v3 = vmul.f32 %v3031_v0, %v2128_v17  ;;  %vm2302_vm0 = vweird.f32 %v3031_v0 }
 0x5d3   : > { %3032 = vrsqrt.f32 %v4661_v51  ;;  %v1969_v22 = vmul.f32 %v3408_v35, %v4659_v41  ;;  %vm2303_vm2 = vmor %vm2301_vm1, %vm2302_vm0  ;;  %vm2431_vm4 = vweird.f32 %v4661_v51 }
 0x5d4   : > { %v2297_v2 = vmul.f32 %v3031_v0, %v2296_v3 }
 0x5d5   : > { %v2001_v63 = vmul.f32 %v1969_v22, %v1969_v22 }
 0x5d6   : > { %v2298_v11 = vmul.f32 0.5, %v2297_v2  ;;  %v1828_v9 = vpop.xlane.xlu1 %1827  ;;  %v2072_v14 = vpop.xlane.xlu0 %2071 }
 0x5d7   : > { %v1890_v50 = vmul.f32 0.02, %v1828_v9  ;;  %v2042_v24 = vpop.xlane.xlu2 %2041  ;;  %v2108_v57 = vmul.f32 0.02, %v2072_v14  ;;  %2049 = vadd.xlane.f32.xlu2 %v2001_v63 }
 0x5d8   : > { %v2299_v60 = vsub.f32 1.5, %v2298_v11  ;;  %v2093_v49 = vmul.f32 0.02, %v2042_v24 }
 0x5d9   : > { %v3033_v62 = vpop.eup %3032  ;;  %v4679_v21 = vsub.f32 %v4522_v29, %v1890_v50  ;;  %v4681_v18 = vadd.f32 1e-05, %v2108_v57  ;;  %v2478_v29 = vmul.f32 %v2284_v54, %v4497_v36 }
 0x5da   : > { %v2300_v58 = vmul.f32 %v3031_v0, %v2299_v60  ;;  %v2426_v8 = vmul.f32 %v3033_v62, %v4661_v51  ;;  %v4684_v27 = vadd.f32 1e-05, %v2093_v49  ;;  %vm2432_vm3 = vweird.f32 %v3033_v62 }
 0x5db   : > { %3034 = vrsqrt.f32 %v4681_v18  ;;  %v1954_v19 = vmul.f32 %v3408_v35, %v4679_v21  ;;  %v2513_v24 = vmul.f32 %v4642_v30, %v2478_v29  ;;  %vm2433_vm5 = vmor %vm2431_vm4, %vm2432_vm3  ;;  %vm2421_vm9 = vweird.f32 %v4681_v18 }
 0x5dc   : > { %v2304_v52 = vsel %vm2303_vm2, %v3031_v0, %v2300_v58  ;;  %v2427_v31 = vmul.f32 %v3033_v62, %v2426_v8  ;;  %3036 = vrsqrt.f32 %v4684_v27  ;;  %v2514_v0 = vmul.f32 %v4642_v30, %v2479_v47 }
 0x5dd   : > { %v2480_v17 = vmul.f32 %v2304_v52, %v4502_v55  ;;  %v1986_v3 = vmul.f32 %v1954_v19, %v1954_v19  ;;  %v2548_v29 = vadd.f32 %v4648_v56, %v2513_v24  ;;  %vm2271_vm8 = vweird.f32 %v4684_v27 }
 0x5de   : > { %v2428_v22 = vmul.f32 0.5, %v2427_v31  ;;  %v1826_v2 = vpop.xlane.xlu1 %1825  ;;  %v2070_v32 = vpop.xlane.xlu0 %2069  ;;  %v2549_v8 = vadd.f32 %v4648_v56, %v2514_v0 }
 0x5df   : > { %v1889_v25 = vmul.f32 0.02, %v1826_v2  ;;  %v2068_v63 = vpop.xlane.xlu2 %2067  ;;  %v2107_v11 = vmul.f32 0.02, %v2070_v32  ;;  %2019 = vadd.xlane.f32.xlu0 %v1986_v3  ;;  %v2515_v9 = vmul.f32 %v4642_v30, %v2480_v17 }
 0x5e0   : > { %v2429_v14 = vsub.f32 1.5, %v2428_v22  ;;  %v2106_v44 = vmul.f32 0.02, %v2068_v63 }
 0x5e1   : > { %v4695_v13 = vpop.eup %3034  ;;  %v4698_v36 = vsub.f32 %v4538_v7, %v1889_v25  ;;  %v4700_v55 = vadd.f32 1e-05, %v2107_v11  ;;  %v2550_v50 = vadd.f32 %v4648_v56, %v2515_v9 }
 0x5e2   : > { %v4704_v57 = vpop.eup %3036  ;;  %v2430_v16 = vmul.f32 %v3033_v62, %v2429_v14  ;;  %v2416_v60 = vmul.f32 %v4695_v13, %v4681_v18  ;;  %v4709_v49 = vadd.f32 1e-05, %v2106_v44  ;;  %vm2422_vm6 = vweird.f32 %v4695_v13 }
 0x5e3   : > { %v2266_v7 = vmul.f32 %v4704_v57, %v4684_v27  ;;  %3038 = vrsqrt.f32 %v4700_v55  ;;  %v1953_v51 = vmul.f32 %v3408_v35, %v4698_v36  ;;  %vm2272_vm7 = vweird.f32 %v4704_v57  ;;  %vm4750_vm10 = vmor %vm2421_vm9, %vm2422_vm6 }
 0x5e4   : > { %v2434_v43 = vsel %vm2433_vm5, %v3033_v62, %v2430_v16  ;;  %v2417_v54 = vmul.f32 %v4695_v13, %v2416_v60  ;;  %3040 = vrsqrt.f32 %v4709_v49  ;;  %vm4757_vm11 = vmor %vm2271_vm8, %vm2272_vm7  ;;  %vm2411_vm14 = vweird.f32 %v4700_v55 }
 0x5e5   : > { %v2267_v58 = vmul.f32 %v4704_v57, %v2266_v7  ;;  %3042 = vtanh.f32 %v2550_v50  ;;  %v2493_v19 = vmul.f32 %v2434_v43, %v4511_v26  ;;  %v1985_v2 = vmul.f32 %v1953_v51, %v1953_v51 }
 0x5e6   : > { %v2418_v47 = vmul.f32 0.5, %v2417_v54  ;;  %v2040_v52 = vpop.xlane.xlu1 %2039  ;;  %v2038_v31 = vpop.xlane.xlu0 %2037  ;;  %3044 = vtanh.f32 %v2549_v8  ;;  %vm2401_vm15 = vweird.f32 %v4709_v49 }
 0x5e7   : > { %v2268_v62 = vmul.f32 0.5, %v2267_v58  ;;  %v2092_v17 = vmul.f32 0.02, %v2040_v52  ;;  %v2036_v3 = vpop.xlane.xlu2 %2035  ;;  %v2091_v22 = vmul.f32 0.02, %v2038_v31  ;;  %2017 = vadd.xlane.f32.xlu1 %v1985_v2  ;;  %3046 = vtanh.f32 %v2548_v29 }
 0x5e8   : > { %v2090_v32 = vmul.f32 0.02, %v2036_v3  ;;  %v2419_v35 = vsub.f32 1.5, %v2418_v47  ;;  %v2528_v24 = vmul.f32 %v4642_v30, %v2493_v19 }
 0x5e9   : > { %v4722_v25 = vpop.eup %3038  ;;  %v2269_v63 = vsub.f32 1.5, %v2268_v62  ;;  %v4724_v11 = vadd.f32 1e-05, %v2092_v17  ;;  %v4732_v44 = vadd.f32 1e-05, %v2091_v22 }
 0x5ea   : > { %v4726_v26 = vpop.eup %3040  ;;  %v2406_v9 = vmul.f32 %v4722_v25, %v4700_v55  ;;  %v4730_v14 = vadd.f32 1e-05, %v2090_v32  ;;  %v2420_v7 = vmul.f32 %v4695_v13, %v2419_v35  ;;  %v2563_v27 = vadd.f32 %v4648_v56, %v2528_v24 }
 0x5eb   : > { %v3043_v0 = vpop.eup %3042  ;;  %v2396_v50 = vmul.f32 %v4726_v26, %v4709_v49  ;;  %3048 = vrsqrt.f32 %v4724_v11  ;;  %v2270_v60 = vmul.f32 %v4704_v57, %v2269_v63  ;;  %vm2412_vm12 = vweird.f32 %v4722_v25 }
 0x5ec   : > { %v2407_v16 = vmul.f32 %v4722_v25, %v2406_v9  ;;  %3050 = vrsqrt.f32 %v4730_v14  ;;  %2602 = vmatpush.xpose.msrb.mxu1 %v3043_v0  ;;  %v3045_v8 = vpop.eup %3044  ;;  %v2424_v2 = vsel %vm4750_vm10, %v4695_v13, %v2420_v7  ;;  %vm2402_vm13 = vweird.f32 %v4726_v26  ;;  %vm4801_vm0 = vmor %vm2411_vm14, %vm2412_vm12 }
 0x5ed   : > { %v2397_v43 = vmul.f32 %v4726_v26, %v2396_v50  ;;  %3052 = vrsqrt.f32 %v4732_v44  ;;  %v3047_v62 = vpop.eup %3046  ;;  %v2274_v22 = vsel %vm4757_vm11, %v4704_v57, %v2270_v60  ;;  %v2492_v7 = vmul.f32 %v2424_v2, %v4518_v42  ;;  %vm4811_vm2 = vmor %vm2401_vm15, %vm2402_vm13 }
 0x5ee   : > { %v2408_v54 = vmul.f32 0.5, %v2407_v16  ;;  %v2066_v58 = vpop.xlane.xlu1 %2065  ;;  %v2064_v51 = vpop.xlane.xlu0 %2063  ;;  %3054 = vtanh.f32 %v2563_v27  ;;  %v2477_v16 = vmul.f32 %v2274_v22, %v4525_v4  ;;  %vm2261_vm1 = vweird.f32 %v4724_v11 }
 0x5ef   : > { %v2398_v47 = vmul.f32 0.5, %v2397_v43  ;;  %v2105_v52 = vmul.f32 0.02, %v2066_v58  ;;  %v2062_v31 = vpop.xlane.xlu2 %2061  ;;  %v2104_v29 = vmul.f32 0.02, %v2064_v51  ;;  %vm2241_vm4 = vweird.f32 %v4730_v14 }
 0x5f0   : > { %2603 = vmatpush.xpose.msrb.mxu1 %v3045_v8  ;;  %v2103_v17 = vmul.f32 0.02, %v2062_v31  ;;  %v2409_v9 = vsub.f32 1.5, %v2408_v54  ;;  %v2512_v55 = vmul.f32 %v4642_v30, %v2477_v16  ;;  %v2527_v22 = vmul.f32 %v4642_v30, %v2492_v7 }
 0x5f1   : > { %v4761_v3 = vpop.eup %3048  ;;  %v4769_v32 = vadd.f32 1e-05, %v2105_v52  ;;  %v2399_v35 = vsub.f32 1.5, %v2398_v47  ;;  %v4780_v57 = vadd.f32 1e-05, %v2104_v29  ;;  %vm2251_vm5 = vweird.f32 %v4732_v44 }
 0x5f2   : > { %v4771_v63 = vpop.eup %3050  ;;  %v2256_v0 = vmul.f32 %v4761_v3, %v4724_v11  ;;  %v4775_v50 = vadd.f32 1e-05, %v2103_v17  ;;  %v2410_v4 = vmul.f32 %v4722_v25, %v2409_v9  ;;  %vm2262_vm3 = vweird.f32 %v4761_v3 }
 0x5f3   : > { %v2236_v24 = vmul.f32 %v4771_v63, %v4730_v14  ;;  %3056 = vrsqrt.f32 %v4769_v32  ;;  %v4782_v13 = vpop.eup %3052  ;;  %v2400_v58 = vmul.f32 %v4726_v26, %v2399_v35  ;;  %vm2242_vm6 = vweird.f32 %v4771_v63  ;;  %vm4858_vm8 = vmor %vm2261_vm1, %vm2262_vm3 }
 0x5f4   : > { %v2257_v60 = vmul.f32 %v4761_v3, %v2256_v0  ;;  %3058 = vrsqrt.f32 %v4775_v50  ;;  %2604 = vmatpush.xpose.msrb.mxu1 %v3047_v62  ;;  %v2246_v54 = vmul.f32 %v4782_v13, %v4732_v44  ;;  %v3055_v47 = vpop.eup %3054  ;;  %v2414_v9 = vsel %vm4801_vm0, %v4722_v25, %v2410_v4  ;;  %vm4876_vm11 = vmor %vm2241_vm4, %vm2242_vm6 }
 0x5f5   : > { %v2237_v43 = vmul.f32 %v4771_v63, %v2236_v24  ;;  %3060 = vrsqrt.f32 %v4780_v57  ;;  %2625 = vmatpush.xpose.msrb.mxu2 %v3055_v47  ;;  %v2404_v35 = vsel %vm4811_vm2, %v4726_v26, %v2400_v58  ;;  %v2547_v25 = vadd.f32 %v4648_v56, %v2512_v55 }
 0x5f6   : > { %v2258_v51 = vmul.f32 0.5, %v2257_v60  ;;  %v2034_v8 = vpop.xlane.xlu1 %2033  ;;  %v2032_v19 = vpop.xlane.xlu0 %2031  ;;  %v2247_v52 = vmul.f32 %v4782_v13, %v2246_v54  ;;  %v2491_v58 = vmul.f32 %v2414_v9, %v4534_v48  ;;  %v4843_v47 = vmul.f32 %v2404_v35, %v4541_v34 }
 0x5f7   : > { %v2238_v42 = vmul.f32 0.5, %v2237_v43  ;;  %v2030_v31 = vpop.xlane.xlu2 %2029  ;;  %v2089_v27 = vmul.f32 0.02, %v2034_v8  ;;  %v2088_v43 = vmul.f32 0.02, %v2032_v19  ;;  %vm2391_vm7 = vweird.f32 %v4769_v32 }
 0x5f8   : > { %v2259_v49 = vsub.f32 1.5, %v2258_v51  ;;  %v2248_v17 = vmul.f32 0.5, %v2247_v52  ;;  %v2087_v7 = vmul.f32 0.02, %v2030_v31  ;;  %v2562_v52 = vadd.f32 %v4648_v56, %v2527_v22 }
 0x5f9   : > { %v4807_v62 = vpop.eup %3056  ;;  %v4828_v24 = vadd.f32 1e-05, %v2089_v27  ;;  %v2239_v16 = vsub.f32 1.5, %v2238_v42  ;;  %v4852_v55 = vadd.f32 1e-05, %v2088_v43  ;;  %vm2252_vm9 = vweird.f32 %v4782_v13 }
 0x5fa   : > { %v4818_v2 = vpop.eup %3058  ;;  %v2386_v0 = vmul.f32 %v4807_v62, %v4769_v32  ;;  %v2260_v4 = vmul.f32 %v4761_v3, %v2259_v49  ;;  %v2249_v51 = vsub.f32 1.5, %v2248_v17  ;;  %v4850_v27 = vadd.f32 1e-05, %v2087_v7  ;;  %vm4895_vm14 = vmor %vm2251_vm5, %vm2252_vm9 }
 0x5fb   : > { %v2366_v60 = vmul.f32 %v4818_v2, %v4775_v50  ;;  %3062 = vrsqrt.f32 %v4828_v24  ;;  %v4837_v54 = vpop.eup %3060  ;;  %v2240_v29 = vmul.f32 %v4771_v63, %v2239_v16  ;;  %vm2371_vm10 = vweird.f32 %v4775_v50 }
 0x5fc   : > { %v2387_v26 = vmul.f32 %v4807_v62, %v2386_v0  ;;  %v2376_v42 = vmul.f32 %v4837_v54, %v4780_v57  ;;  %3064 = vtanh.f32 %v2547_v25  ;;  %v2264_v17 = vsel %vm4858_vm8, %v4761_v3, %v2260_v4 }
 0x5fd   : > { %v2367_v8 = vmul.f32 %v4818_v2, %v2366_v60  ;;  %v2250_v22 = vmul.f32 %v4782_v13, %v2249_v51  ;;  %3066 = vrsqrt.f32 %v4850_v27  ;;  %v2244_v7 = vsel %vm4876_vm11, %v4771_v63, %v2240_v29 }
 0x5fe   : > { %v2388_v19 = vmul.f32 0.5, %v2387_v26  ;;  %v2060_v31 = vpop.xlane.xlu1 %2059  ;;  %v2058_v18 = vpop.xlane.xlu0 %2057  ;;  %v2377_v49 = vmul.f32 %v4837_v54, %v2376_v42  ;;  %3068 = vrsqrt.f32 %v4852_v55  ;;  %vm2392_vm12 = vweird.f32 %v4807_v62 }
 0x5ff   : > { %v2368_v48 = vmul.f32 0.5, %v2367_v8  ;;  %v2056_v11 = vpop.xlane.xlu2 %2055  ;;  %v2102_v3 = vmul.f32 0.02, %v2060_v31  ;;  %vm2381_vm13 = vweird.f32 %v4780_v57  ;;  %3070 = vtanh.f32 %v2562_v52  ;;  %vm4929_vm1 = vmor %vm2391_vm7, %vm2392_vm12 }
 0x600   : > { %v2389_v35 = vsub.f32 1.5, %v2388_v19  ;;  %v2378_v60 = vmul.f32 0.5, %v2377_v49  ;;  %v4889_v43 = vmul.f32 %v2264_v17, %v4550_v12  ;;  %vm2372_vm15 = vweird.f32 %v4818_v2 }
 0x601   : > { %v4870_v9 = vpop.eup %3062  ;;  %v2369_v16 = vsub.f32 1.5, %v2368_v48  ;;  %v4900_v63 = vadd.f32 1e-05, %v2102_v3  ;;  %v2100_v25 = vmul.f32 0.02, %v2056_v11  ;;  %v2254_v4 = vsel %vm4895_vm14, %v4782_v13, %v2250_v22  ;;  %vm4940_vm3 = vmor %vm2371_vm10, %vm2372_vm15 }
 0x602   : > { %v2226_v14 = vmul.f32 %v4870_v9, %v4828_v24  ;;  %v2379_v51 = vsub.f32 1.5, %v2378_v60  ;;  %v2101_v8 = vmul.f32 0.02, %v2058_v18  ;;  %v3065_v19 = vpop.eup %3064  ;;  %v4907_v44 = vmul.f32 %v2244_v7, %v4556_v20 }
 0x603   : > { %v2390_v42 = vmul.f32 %v4807_v62, %v2389_v35  ;;  %v2370_v52 = vmul.f32 %v4818_v2, %v2369_v16  ;;  %vm2231_vm0 = vweird.f32 %v4828_v24  ;;  %3072 = vrsqrt.f32 %v4900_v63  ;;  %v4913_v29 = vpop.eup %3066  ;;  %2605 = vmatpush.xpose.msrb.mxu1 %v3065_v19 }
 0x604   : > { %v2227_v12 = vmul.f32 %v4870_v9, %v2226_v14  ;;  %v4915_v48 = vadd.f32 1e-05, %v2100_v25  ;;  %v4917_v18 = vadd.f32 1e-05, %v2101_v8  ;;  %v2526_v20 = vmul.f32 %v4642_v30, %v2491_v58  ;;  %v4920_v34 = vpop.eup %3068 }
 0x605   : > { %v4923_v49 = vmul.f32 %v2254_v4, %v4553_v1  ;;  %vm2382_vm2 = vweird.f32 %v4837_v54  ;;  %v2206_v22 = vmul.f32 %v4913_v29, %v4850_v27  ;;  %v3071_v58 = vpop.eup %3070  ;;  %v2380_v32 = vmul.f32 %v4837_v54, %v2379_v51 }
 0x606   : > { %v2028_v31 = vpop.xlane.xlu1 %2027  ;;  %v2228_v13 = vmul.f32 0.5, %v2227_v12  ;;  %vm2232_vm4 = vweird.f32 %v4870_v9  ;;  %v2216_v0 = vmul.f32 %v4920_v34, %v4852_v55  ;;  %v2026_v16 = vpop.xlane.xlu0 %2025  ;;  %v2394_v60 = vsel %vm4929_vm1, %v4807_v62, %v2390_v42  ;;  %2626 = vmatpush.xpose.msrb.mxu2 %v3071_v58  ;;  %vm4966_vm5 = vmor %vm2381_vm13, %vm2382_vm2 }
 0x607   : > { %v2086_v35 = vmul.f32 0.02, %v2028_v31  ;;  %v2374_v50 = vsel %vm4940_vm3, %v4818_v2, %v2370_v52  ;;  %v2207_v3 = vmul.f32 %v4913_v29, %v2206_v22  ;;  %3074 = vrsqrt.f32 %v4915_v48  ;;  %vm4991_vm8 = vmor %vm2231_vm0, %vm2232_vm4 }
 0x608   : > { %v2229_v11 = vsub.f32 1.5, %v2228_v13  ;;  %v2217_v14 = vmul.f32 %v4920_v34, %v2216_v0  ;;  %3076 = vrsqrt.f32 %v4917_v18  ;;  %v2561_v26 = vadd.f32 %v4648_v56, %v2526_v20 }
 0x609   : > { %v4960_v25 = vpop.eup %3072  ;;  %v2208_v2 = vmul.f32 0.5, %v2207_v3  ;;  %vm2211_vm6 = vweird.f32 %v4850_v27  ;;  %v4971_v4 = vadd.f32 1e-05, %v2086_v35  ;;  %v2525_v51 = vmul.f32 %v4642_v30, %v4843_v47 }
 0x60a   : > { %v2230_v7 = vmul.f32 %v4870_v9, %v2229_v11  ;;  %v2085_v12 = vmul.f32 0.02, %v2026_v16  ;;  %v2384_v8 = vsel %vm4966_vm5, %v4837_v54, %v2380_v32  ;;  %v2218_v19 = vmul.f32 0.5, %v2217_v14 }
 0x60b   : > { %vm2221_vm7 = vweird.f32 %v4852_v55  ;;  %v2356_v57 = vmul.f32 %v4960_v25, %v4900_v63  ;;  %v4982_v42 = vmul.f32 %v2394_v60, %v4565_v10  ;;  %v4985_v52 = vmul.f32 %v2374_v50, %v4571_v40 }
 0x60c   : > { %v2209_v31 = vsub.f32 1.5, %v2208_v2  ;;  %3078 = vtanh.f32 %v2561_v26  ;;  %v2024_v47 = vpop.xlane.xlu2 %2023  ;;  %v2219_v13 = vsub.f32 1.5, %v2218_v19  ;;  %v2560_v10 = vadd.f32 %v4648_v56, %v2525_v51 }
 0x60d   : > { %v2357_v20 = vmul.f32 %v4960_v25, %v2356_v57  ;;  %3080 = vrsqrt.f32 %v4971_v4  ;;  %v4998_v40 = vpop.eup %3074  ;;  %v5001_v17 = vmul.f32 %v2384_v8, %v4568_v15  ;;  %v2234_v24 = vsel %vm4991_vm8, %v4870_v9, %v2230_v7 }
 0x60e   : > { %vm2212_vm9 = vweird.f32 %v4913_v29  ;;  %v5007_v22 = vadd.f32 1e-05, %v2085_v12  ;;  %v5009_v35 = vpop.eup %3076  ;;  %v2336_v1 = vmul.f32 %v4998_v40, %v4915_v48  ;;  %v2511_v32 = vmul.f32 %v4642_v30, %v4889_v43  ;;  %v2054_v15 = vpop.xlane.xlu1 %2053 }
 0x60f   : > { %v2358_v58 = vmul.f32 0.5, %v2357_v20  ;;  %v2084_v11 = vmul.f32 0.02, %v2024_v47  ;;  %v2210_v0 = vmul.f32 %v4913_v29, %v2209_v31  ;;  %vm2222_vm10 = vweird.f32 %v4920_v34  ;;  %vm5035_vm14 = vmor %vm2211_vm6, %vm2212_vm9  ;;  %v2052_v57 = vpop.xlane.xlu0 %2051 }
 0x610   : > { %vm2361_vm11 = vweird.f32 %v4900_v63  ;;  %v2346_v9 = vmul.f32 %v5009_v35, %v4917_v18  ;;  %3082 = vtanh.f32 %v2560_v10  ;;  %v2220_v16 = vmul.f32 %v4920_v34, %v2219_v13  ;;  %vm5051_vm1 = vmor %vm2221_vm7, %vm2222_vm10 }
 0x611   : > { %vm2362_vm12 = vweird.f32 %v4960_v25  ;;  %v2337_v60 = vmul.f32 %v4998_v40, %v2336_v1  ;;  %vm2341_vm13 = vweird.f32 %v4915_v48  ;;  %v5025_v50 = vmul.f32 %v2234_v24, %v4580_v39 }
 0x612   : > { %v3079_v43 = vpop.eup %3078  ;;  %v2359_v3 = vsub.f32 1.5, %v2358_v58  ;;  %v2347_v7 = vmul.f32 %v5009_v35, %v2346_v9  ;;  %3084 = vrsqrt.f32 %v5007_v22  ;;  %vm2342_vm15 = vweird.f32 %v4998_v40  ;;  %vm5084_vm4 = vmor %vm2361_vm11, %vm2362_vm12 }
 0x613   : > { %v5029_v14 = vpop.eup %3080  ;;  %v2338_v62 = vmul.f32 0.5, %v2337_v60  ;;  %vm2351_vm0 = vweird.f32 %v4917_v18  ;;  %2627 = vmatpush.xpose.msrb.mxu2 %v3079_v43  ;;  %v2546_v39 = vadd.f32 %v4648_v56, %v2511_v32  ;;  %v5042_v2 = vadd.f32 1e-05, %v2084_v11  ;;  %vm5099_vm5 = vmor %vm2341_vm13, %vm2342_vm15 }
 0x614   : > { %v2214_v51 = vsel %vm5035_vm14, %v4913_v29, %v2210_v0  ;;  %v2348_v12 = vmul.f32 0.5, %v2347_v7  ;;  %v2196_v8 = vmul.f32 %v5029_v14, %v4971_v4  ;;  %v2099_v19 = vmul.f32 0.02, %v2054_v15 }
 0x615   : > { %v2224_v31 = vsel %vm5051_vm1, %v4920_v34, %v2220_v16  ;;  %v2339_v47 = vsub.f32 1.5, %v2338_v62  ;;  %vm2352_vm2 = vweird.f32 %v5009_v35  ;;  %3086 = vtanh.f32 %v2546_v39 }
 0x616   : > { %v3083_v29 = vpop.eup %3082  ;;  %v2360_v55 = vmul.f32 %v4960_v25, %v2359_v3  ;;  %v2349_v54 = vsub.f32 1.5, %v2348_v12  ;;  %v2197_v13 = vmul.f32 %v5029_v14, %v2196_v8  ;;  %vm2201_vm3 = vweird.f32 %v4971_v4  ;;  %vm5118_vm8 = vmor %vm2351_vm0, %vm2352_vm2 }
 0x617   : > { %3088 = vrsqrt.f32 %v5042_v2  ;;  %v2340_v20 = vmul.f32 %v4998_v40, %v2339_v47  ;;  %2628 = vmatpush.xpose.msrb.mxu2 %v3083_v29  ;;  %v5066_v10 = vadd.f32 1e-05, %v2099_v19  ;;  %v2510_v34 = vmul.f32 %v4642_v30, %v4923_v49 }
 0x618   : > { %v2098_v24 = vmul.f32 0.02, %v2052_v57  ;;  %v5070_v58 = vpop.eup %3084  ;;  %v5073_v1 = vmul.f32 %v2214_v51, %v4586_v45  ;;  %v2198_v32 = vmul.f32 0.5, %v2197_v13  ;;  %v2509_v11 = vmul.f32 %v4642_v30, %v4907_v44  ;;  %v2022_v44 = vpop.xlane.xlu1 %2021 }
 0x619   : > { %v2524_v15 = vmul.f32 %v4642_v30, %v4982_v42  ;;  %v2472_v0 = vmul.f32 %v2224_v31, %v4583_v5  ;;  %v2350_v45 = vmul.f32 %v5009_v35, %v2349_v54  ;;  %v2186_v9 = vmul.f32 %v5070_v58, %v5007_v22 }
 0x61a   : > { %3090 = vrsqrt.f32 %v5066_v10  ;;  %v2364_v5 = vsel %vm5084_vm4, %v4960_v25, %v2360_v55  ;;  %v2199_v42 = vsub.f32 1.5, %v2198_v32  ;;  %vm2202_vm6 = vweird.f32 %v5029_v14 }
 0x61b   : > { %vm2191_vm7 = vweird.f32 %v5007_v22  ;;  %v3087_v16 = vpop.eup %3086  ;;  %v2344_v60 = vsel %vm5099_vm5, %v4998_v40, %v2340_v20  ;;  %v2187_v25 = vmul.f32 %v5070_v58, %v2186_v9  ;;  %v2545_v43 = vadd.f32 %v4648_v56, %v2510_v34  ;;  %vm5145_vm11 = vmor %vm2201_vm3, %vm2202_vm6 }
 0x61c   : > { %v5110_v3 = vadd.f32 1e-05, %v2098_v24  ;;  %v2200_v26 = vmul.f32 %v5029_v14, %v2199_v42  ;;  %2606 = vmatpush.xpose.msrb.mxu1 %v3087_v16  ;;  %v2544_v40 = vadd.f32 %v4648_v56, %v2509_v11  ;;  %v2559_v62 = vadd.f32 %v4648_v56, %v2524_v15 }
 0x61d   : > { %v5112_v48 = vpop.eup %3088  ;;  %v2083_v39 = vmul.f32 0.02, %v2022_v44  ;;  %v2354_v51 = vsel %vm5118_vm8, %v5009_v35, %v2350_v45  ;;  %v2188_v27 = vmul.f32 0.5, %v2187_v25  ;;  %3092 = vtanh.f32 %v2545_v43 }
 0x61e   : > { %v2176_v18 = vmul.f32 %v5112_v48, %v5042_v2  ;;  %v2486_v12 = vmul.f32 %v2364_v5, %v4595_v46  ;;  %vm2192_vm9 = vweird.f32 %v5070_v58  ;;  %vm2181_vm10 = vweird.f32 %v5042_v2 }
 0x61f   : > { %3094 = vrsqrt.f32 %v5110_v3  ;;  %v5134_v8 = vadd.f32 1e-05, %v2083_v39  ;;  %v5139_v57 = vmul.f32 %v2344_v60, %v4603_v53  ;;  %v2189_v46 = vsub.f32 1.5, %v2188_v27  ;;  %vm5171_vm12 = vmor %vm2191_vm7, %vm2192_vm9 }
 0x620   : > { %v5136_v19 = vpop.eup %3090  ;;  %v2177_v31 = vmul.f32 %v5112_v48, %v2176_v18  ;;  %3096 = vtanh.f32 %v2544_v40  ;;  %v2485_v47 = vmul.f32 %v2354_v51, %v4600_v38  ;;  %v2204_v29 = vsel %vm5145_vm11, %v5029_v14, %v2200_v26 }
 0x621   : > { %v2326_v53 = vmul.f32 %v5136_v19, %v5066_v10  ;;  %3098 = vtanh.f32 %v2559_v62  ;;  %v2190_v4 = vmul.f32 %v5070_v58, %v2189_v46  ;;  %v2523_v54 = vmul.f32 %v4642_v30, %v5001_v17 }
 0x622   : > { %v2178_v55 = vmul.f32 0.5, %v2177_v31  ;;  %3100 = vrsqrt.f32 %v5134_v8  ;;  %v2508_v38 = vmul.f32 %v4642_v30, %v5025_v50  ;;  %v2522_v14 = vmul.f32 %v4642_v30, %v4985_v52 }
 0x623   : > { %v2327_v13 = vmul.f32 %v5136_v19, %v2326_v53  ;;  %v2507_v20 = vmul.f32 %v4642_v30, %v2472_v0  ;;  %v3093_v34 = vpop.eup %3092  ;;  %v2470_v24 = vmul.f32 %v2204_v29, %v4610_v59  ;;  %vm2182_vm13 = vweird.f32 %v5112_v48 }
 0x624   : > { %v2179_v17 = vsub.f32 1.5, %v2178_v55  ;;  %v2558_v50 = vadd.f32 %v4648_v56, %v2523_v54  ;;  %v2194_v52 = vsel %vm5171_vm12, %v5070_v58, %v2190_v4  ;;  %2607 = vmatpush.xpose.msrb.mxu1 %v3093_v34  ;;  %v2543_v15 = vadd.f32 %v4648_v56, %v2508_v38  ;;  %vm5196_vm15 = vmor %vm2181_vm10, %vm2182_vm13 }
 0x625   : > { %v5177_v11 = vpop.eup %3094  ;;  %v2328_v59 = vmul.f32 0.5, %v2327_v13  ;;  %v2506_v22 = vmul.f32 %v4642_v30, %v5073_v1  ;;  %v2557_v9 = vadd.f32 %v4648_v56, %v2522_v14  ;;  %vm2332_vm14 = vweird.f32 %v5136_v19 }
 0x626   : > { %v3097_v0 = vpop.eup %3096  ;;  %v2180_v49 = vmul.f32 %v5112_v48, %v2179_v17  ;;  %v2316_v45 = vmul.f32 %v5177_v11, %v5110_v3  ;;  %3102 = vtanh.f32 %v2558_v50  ;;  %v2542_v58 = vadd.f32 %v4648_v56, %v2507_v20 }
 0x627   : > { %v3099_v44 = vpop.eup %3098  ;;  %v2329_v5 = vsub.f32 1.5, %v2328_v59  ;;  %3104 = vtanh.f32 %v2543_v15  ;;  %v2469_v42 = vmul.f32 %v2194_v52, %v4613_v61  ;;  %vm2331_vm0 = vweird.f32 %v5066_v10 }
 0x628   : > { %v3101_v63 = vpop.eup %3100  ;;  %v2317_v16 = vmul.f32 %v5177_v11, %v2316_v45  ;;  %2629 = vmatpush.xpose.msrb.mxu2 %v3099_v44  ;;  %v2521_v60 = vmul.f32 %v4642_v30, %v2486_v12  ;;  %v2184_v25 = vsel %vm5196_vm15, %v5112_v48, %v2180_v49  ;;  %2608 = vmatpush.xpose.msrb.mxu1 %v3097_v0  ;;  %vm2333_vm1 = vmor %vm2331_vm0, %vm2332_vm14  ;;  %3106 = vtanh.f32 %v2557_v9 }
 0x629   : > { %v2330_v61 = vmul.f32 %v5136_v19, %v2329_v5  ;;  %v2166_v2 = vmul.f32 %v3101_v63, %v5134_v8  ;;  %v2541_v43 = vadd.f32 %v4648_v56, %v2506_v22  ;;  %v2520_v26 = vmul.f32 %v4642_v30, %v2485_v47 }
 0x62a   : > { %v2318_v10 = vmul.f32 0.5, %v2317_v16  ;;  %v2556_v7 = vadd.f32 %v4648_v56, %v2521_v60  ;;  %3108 = vtanh.f32 %v2542_v58  ;;  %v2505_v48 = vmul.f32 %v4642_v30, %v2470_v24  ;;  %v5221_v56 = vld [vmem:[%s5306_s8] ss:$0 sm:$0xff] }
 0x62b   : > { %v2334_v40 = vsel %vm2333_vm1, %v5136_v19, %v2330_v61  ;;  %v2167_v62 = vmul.f32 %v3101_v63, %v2166_v2  ;;  %vm2322_vm2 = vweird.f32 %v5177_v11  ;;  %vm2321_vm3 = vweird.f32 %v5110_v3  ;;  %v5230_v3 = vld [vmem:[%s5305_s7] ss:$0 sm:$0xff] }
 0x62c   : > { %v3103_v39 = vpop.eup %3102  ;;  %v2483_v51 = vmul.f32 %v2334_v40, %v4620_v37  ;;  %v2319_v27 = vsub.f32 1.5, %v2318_v10  ;;  %3110 = vtanh.f32 %v2556_v7  ;;  %v2540_v19 = vadd.f32 %v5221_v56, %v2505_v48  ;;  %vm2323_vm4 = vmor %vm2321_vm3, %vm2322_vm2 }
 0x62d   : > { %v3105_v18 = vpop.eup %3104  ;;  %v2168_v12 = vmul.f32 0.5, %v2167_v62  ;;  %2630 = vmatpush.xpose.msrb.mxu2 %v3103_v39  ;;  %v2468_v30 = vmul.f32 %v2184_v25, %v4623_v33  ;;  %v2555_v35 = vadd.f32 %v5221_v56, %v2520_v26  ;;  %v2519_v46 = vmul.f32 %v5230_v3, %v5139_v57 }
 0x62e   : > { %v2320_v37 = vmul.f32 %v5177_v11, %v2319_v27  ;;  %2609 = vmatpush.xpose.msrb.mxu1 %v3105_v18  ;;  %vm2172_vm5 = vweird.f32 %v3101_v63  ;;  %3112 = vtanh.f32 %v2541_v43  ;;  %v2504_v47 = vmul.f32 %v5230_v3, %v2469_v42  ;;  %v3107_v33 = vpop.eup %3106 }
 0x62f   : > { %v2169_v31 = vsub.f32 1.5, %v2168_v12  ;;  %v2518_v53 = vmul.f32 %v5230_v3, %v2483_v51  ;;  %vm2171_vm6 = vweird.f32 %v5134_v8  ;;  %3114 = vtanh.f32 %v2540_v19 }
 0x630   : > { %v2324_v29 = vsel %vm2323_vm4, %v5177_v11, %v2320_v37  ;;  %v3109_v4 = vpop.eup %3108  ;;  %vm2173_vm7 = vmor %vm2171_vm6, %vm2172_vm5  ;;  %3116 = vtanh.f32 %v2555_v35  ;;  %v2554_v13 = vadd.f32 %v5221_v56, %v2519_v46  ;;  %v2539_v14 = vadd.f32 %v5221_v56, %v2504_v47 }
 0x631   : > { %v2170_v55 = vmul.f32 %v3101_v63, %v2169_v31  ;;  %2631 = vmatpush.xpose.msrb.mxu2 %v3107_v33  ;;  %v2482_v57 = vmul.f32 %v2324_v29, %v4626_v28  ;;  %v2503_v20 = vmul.f32 %v5230_v3, %v2468_v30  ;;  %v2553_v24 = vadd.f32 %v5221_v56, %v2518_v53 }
 0x632   : > { %v3111_v54 = vpop.eup %3110  ;;  %2610 = vmatpush.xpose.msrb.mxu1 %v3109_v4  ;;  %3118 = vtanh.f32 %v2554_v13  ;;  %v2599_v4 = vld [vmem:[%s5307_s9] sm:$0x1]  ;;  %vm2673_vm4 = vcmask 1040384   ;;  %vm2678_vm6 = vcmp.lt.s32.totalorder %v389_v23, 256 }
 0x633   : > { %v2174_v38 = vsel %vm2173_vm7, %v3101_v63, %v2170_v55  ;;  %v2517_v28 = vmul.f32 %v5230_v3, %v2482_v57  ;;  %3120 = vtanh.f32 %v2539_v14  ;;  %v2538_v50 = vadd.f32 %v5221_v56, %v2503_v20 }
 0x634   : > { %v2467_v34 = vmul.f32 %v2174_v38, %v4635_v6  ;;  %v3113_v8 = vpop.eup %3112  ;;  %3122 = vtanh.f32 %v2553_v24  ;;  %v2601_v20 = vstv %s2600_s15  ;;  %s3173_s15 = scalar_lea.hbm %s3172_s17, 2 }
 0x635   : > { %2632 = vmatpush.xpose.msrb.mxu2 %v3111_v54  ;;  %v3115_v17 = vpop.eup %3114  ;;  %v2552_v6 = vadd.f32 %v5221_v56, %v2517_v28  ;;  %3124 = vtanh.f32 %v2538_v50  ;;  %p3174_p11 = scmp.ne.s32.totalorder %s3172_s17, %s3173_s15  ;;  %p3179_p1 = scmp.lt.s32.totalorder %s3177_s26, %s3173_s15 }
 0x636   : > { %2611 = vmatpush.xpose.msrb.mxu1 %v3113_v8  ;;  %v2502_v32 = vmul.f32 %v5230_v3, %v2467_v34  ;;  %v3117_v11 = vpop.eup %3116 }
 0x637   : > { %p3175_p12 = pnand %p3174_p11, %p3325_p5  ;;  %p3180_p2 = por %p3179_p1, %p3178_p0 }
 0x638   : > { %v2537_v52 = vadd.f32 %v5221_v56, %v2502_v32  ;;  %v3119_v59 = vpop.eup %3118 }
 0x639   : > { %2633 = vmatpush.xpose.msrb.mxu2 %v3117_v11  ;;  %v3121_v15 = vpop.eup %3120  ;;  %p3176_p13 = pneg %p3175_p12 }
 0x63a   : > { %2612 = vmatpush.xpose.msrb.mxu1 %v3115_v17  ;;  %3126 = vtanh.f32 %v2537_v52  ;;  %v3123_v22 = vpop.eup %3122 }
 0x63b   : > { %3128 = vtanh.f32 %v2552_v6  ;;  %v3125_v0 = vpop.eup %3124  ;;  %p3181_p3 = pnand %p3180_p2, %p3176_p13 }
 0x63d   : > { %2634 = vmatpush.xpose.msrb.mxu2 %v3119_v59 }
 0x63e   : > { %2613 = vmatpush.xpose.msrb.mxu1 %v3121_v15 }
 0x640   : > { %v3127_v49 = vpop.eup %3126 }
 0x641   : > { %2635 = vmatpush.xpose.msrb.mxu2 %v3123_v22  ;;  %v3129_v45 = vpop.eup %3128 }
 0x642   : > { %2614 = vmatpush.xpose.msrb.mxu1 %v3125_v0 }
 0x645   : > { %2636 = vmatpush.xpose.msrb.mxu2 %v3129_v45 }
 0x646   : > { %2615 = vmatpush.xpose.msrb.mxu1 %v3127_v49 }
 0x64a   : > { %v2050_v9 = vpop.xlane.xlu2 %2049 }
 0x64b   : > { %v2097_v44 = vmul.f32 0.02, %v2050_v9 }
 0x64d   : > { %v2129_v5 = vadd.f32 1e-05, %v2097_v44 }
 0x64f   : > { %3130 = vrsqrt.f32 %v2129_v5  ;;  %vm2311_vm9 = vweird.f32 %v2129_v5 }
 0x652   : > { %v2020_v58 = vpop.xlane.xlu0 %2019 }
 0x653   : > { %v2082_v63 = vmul.f32 0.02, %v2020_v58 }
 0x655   : > { %v3131_v42 = vpop.eup %3130  ;;  %v2114_v1 = vadd.f32 1e-05, %v2082_v63 }
 0x656   : > { %v2306_v16 = vmul.f32 %v3131_v42, %v2129_v5  ;;  %vm2312_vm8 = vweird.f32 %v3131_v42 }
 0x657   : > { %3132 = vrsqrt.f32 %v2114_v1  ;;  %vm2313_vm10 = vmor %vm2311_vm9, %vm2312_vm8  ;;  %vm2161_vm12 = vweird.f32 %v2114_v1 }
 0x658   : > { %v2307_v60 = vmul.f32 %v3131_v42, %v2306_v16 }
 0x65a   : > { %v2308_v25 = vmul.f32 0.5, %v2307_v60  ;;  %v2018_v2 = vpop.xlane.xlu1 %2017 }
 0x65b   : > { %v2081_v10 = vmul.f32 0.02, %v2018_v2 }
 0x65c   : > { %v2309_v61 = vsub.f32 1.5, %v2308_v25 }
 0x65d   : > { %v3133_v43 = vpop.eup %3132  ;;  %v2113_v40 = vadd.f32 1e-05, %v2081_v10 }
 0x65e   : > { %v2310_v7 = vmul.f32 %v3131_v42, %v2309_v61  ;;  %v2156_v26 = vmul.f32 %v3133_v43, %v2114_v1  ;;  %vm2162_vm11 = vweird.f32 %v3133_v43 }
 0x65f   : > { %3134 = vrsqrt.f32 %v2113_v40  ;;  %vm2163_vm13 = vmor %vm2161_vm12, %vm2162_vm11  ;;  %vm2151_vm15 = vweird.f32 %v2113_v40 }
 0x660   : > { %v2314_v62 = vsel %vm2313_vm10, %v3131_v42, %v2310_v7  ;;  %v2157_v48 = vmul.f32 %v3133_v43, %v2156_v26 }
 0x661   : > { %v2481_v39 = vmul.f32 %v2314_v62, %v4659_v41 }
 0x662   : > { %v2158_v51 = vmul.f32 0.5, %v2157_v48 }
 0x663   : > { %v2516_v27 = vmul.f32 %v5230_v3, %v2481_v39 }
 0x664   : > { %v2159_v18 = vsub.f32 1.5, %v2158_v51 }
 0x665   : > { %v2551_v12 = vadd.f32 %v5221_v56, %v2516_v27  ;;  %v3135_v30 = vpop.eup %3134 }
 0x666   : > { %v2160_v19 = vmul.f32 %v3133_v43, %v2159_v18  ;;  %v2146_v35 = vmul.f32 %v3135_v30, %v2113_v40  ;;  %vm2152_vm14 = vweird.f32 %v3135_v30 }
 0x667   : > { %3136 = vtanh.f32 %v2551_v12  ;;  %vm2153_vm0 = vmor %vm2151_vm15, %vm2152_vm14 }
 0x668   : > { %v2164_v37 = vsel %vm2163_vm13, %v3133_v43, %v2160_v19  ;;  %v2147_v31 = vmul.f32 %v3135_v30, %v2146_v35 }
 0x669   : > { %v2466_v46 = vmul.f32 %v2164_v37, %v4679_v21 }
 0x66a   : > { %v2148_v47 = vmul.f32 0.5, %v2147_v31 }
 0x66b   : > { %v2501_v41 = vmul.f32 %v5230_v3, %v2466_v46 }
 0x66c   : > { %v2149_v53 = vsub.f32 1.5, %v2148_v47 }
 0x66d   : > { %v3137_v33 = vpop.eup %3136  ;;  %v2536_v29 = vadd.f32 %v5221_v56, %v2501_v41 }
 0x66e   : > { %2637 = vmatpush.xpose.msrb.mxu2 %v3137_v33  ;;  %v2150_v55 = vmul.f32 %v3135_v30, %v2149_v53 }
 0x66f   : > { %3138 = vtanh.f32 %v2536_v29 }
 0x670   : > { %v2154_v21 = vsel %vm2153_vm0, %v3135_v30, %v2150_v55 }
 0x671   : > { %2638 = vmatmul.f32.vlgmr.msrb.gmra.mxu2 %v2599_v4  ;;  %v2465_v54 = vmul.f32 %v2154_v21, %v4698_v36 }
 0x673   : > { %v2500_v13 = vmul.f32 %v5230_v3, %v2465_v54 }
 0x675   : > { %v3139_v57 = vpop.eup %3138  ;;  %v2535_v38 = vadd.f32 %v5221_v56, %v2500_v13 }
 0x676   : > { %2616 = vmatpush.xpose.msrb.mxu1 %v3139_v57 }
 0x677   : > { %3140 = vtanh.f32 %v2535_v38 }
 0x67d   : > { %v3141_v14 = vpop.eup %3140 }
 0x67e   : > { %2617 = vmatpush.xpose.msrb.mxu1 %v3141_v14 }
 0x681   : > { %2618 = vmatmul.f32.vlgmr.msrb.gmra.mxu1 %v2599_v4 }
 0x6f4   : > { %v2639_v34 = vpop.f32.mrf.mxu2 }
 0x6f5   : > { %v2640_v24 = vadd.f32 %v2639_v34, %v2601_v20 }
 0x6f7   : > { %v2645_v8 = vmin.f32 %v2640_v24, 20.0  ;;  %vm2643_vm2 = vcmp.gt.f32.partialorder %v2640_v24, 20.0 }
 0x6f9   : > { %v2648_v28 = vmul.f32 1.442695, %v2645_v8 }
 0x6fb   : > { %3142 = vpow2.f32 %v2648_v28 }
 0x6fe   : > { %v2619_v32 = vpop.f32.mrf.mxu1 }
 0x6ff   : > { %v2620_v17 = vadd.f32 %v2619_v32, %v2601_v20 }
 0x701   : > { %v3143_v36 = vpop.eup %3142  ;;  %v2644_v3 = vmin.f32 %v2620_v17, 20.0  ;;  %vm2642_vm5 = vcmp.gt.f32.partialorder %v2620_v17, 20.0 }
 0x702   : > { %v2659_v50 = vadd.f32 1.0, %v3143_v36  ;;  %v2662_v56 = vmul.f32 -0.5, %v3143_v36  ;;  %v2665_v59 = vand.u32 2147483647, %v3143_v36 }
 0x703   : > { %v2646_v11 = vmul.f32 1.442695, %v2644_v3 }
 0x704   : > { %3144 = vlog2.f32 %v2659_v50  ;;  %v2663_v52 = vadd.f32 1.0, %v2662_v56  ;;  %vm2666_vm1 = vcmp.lt.f32.partialorder %v2665_v59, 0.0004427343 }
 0x705   : > { %3146 = vpow2.f32 %v2646_v11 }
 0x706   : > { %v2664_v49 = vmul.f32 %v3143_v36, %v2663_v52 }
 0x70a   : > { %v3145_v6 = vpop.eup %3144 }
 0x70b   : > { %v3147_v15 = vpop.eup %3146  ;;  %v2661_v0 = vmul.f32 0.6931472, %v3145_v6 }
 0x70c   : > { %v2650_v22 = vadd.f32 1.0, %v3147_v15  ;;  %v2653_v45 = vmul.f32 -0.5, %v3147_v15  ;;  %v2656_v5 = vand.u32 2147483647, %v3147_v15 }
 0x70d   : > { %v2667_v9 = vsel %vm2666_vm1, %v2664_v49, %v2661_v0 }
 0x70e   : > { %3148 = vlog2.f32 %v2650_v22  ;;  %v2654_v44 = vadd.f32 1.0, %v2653_v45  ;;  %v2669_v63 = vsel %vm2643_vm2, %v2640_v24, %v2667_v9  ;;  %vm2657_vm3 = vcmp.lt.f32.partialorder %v2656_v5, 0.0004427343 }
 0x70f   : > { %v2672_v16 = vrot.slane %v2669_v63, 7 }
 0x710   : > { %v2655_v1 = vmul.f32 %v3147_v15, %v2654_v44 }
 0x714   : > { %v3149_v58 = vpop.eup %3148 }
 0x715   : > { %v2652_v42 = vmul.f32 0.6931472, %v3149_v58 }
 0x717   : > { %v2658_v60 = vsel %vm2657_vm3, %v2655_v1, %v2652_v42 }
 0x718   : > { %v2668_v25 = vsel %vm2642_vm5, %v2620_v17, %v2658_v60 }
 0x719   : > { %v2674_v61 = vsel %vm2673_vm4, %v2668_v25, %v2672_v16 }
 0x71a   : > { %2680 = vst.msk [vmem:[%s381_s13] sm:$0x3] %vm2678_vm6, %v2674_v61 }
 0x71b   : > { %3184 = shalt.err (!%p3181_p3)
}
 0x71c   : > { %2816 = dma.vmem_to_hbm [thread:$0]  (%p3325_p5), %s2695_s14, 32, %s2697_s16, %s2682_s10  }
 0x71d PF: > { %p2822_p4 = scmp.ge.s32.totalorder %s3219_s22, 2  ;;  %s2708_s18 = sand.u32 1, %s3207_s19  }
 0x71e   : > { %s2709_s13 = scalar_lea.sflag [#allocation4], %s2708_s18 }
 0x71f   : > { %p2819_p7 = pnand %p2822_p4, %p3329_p6 }
 0x721   : > { %p2820_p8 = pneg %p2819_p7 }
 0x723   : > { %3202 = dma.done.wait (%p2820_p8), %s2709_s13, 32  }
 0x724   : > { %3204 = vsyncadd (%p2820_p8), %s2709_s13, 4294967264  ;;  %p22_p9 = scmp.ge.s32.totalorder %s3312_s24, 4   ;;  %s5362_s19 = smov %s3211_s20 }
 0x725   : > { %s5363_s20 = smov %s3215_s21  ;;  %s5364_s21 = smov %s3323_s27 }
 0x726   : > { %s5365_s22 = smov %s3312_s24  ;;  %24 = sbr.rel (!%p22_p9) target bundleno = 5 (0x5), region = 99 }
 0x72b   :  { %2715 = vsyncpa [#allocation4], 1 }
 0x72c   :  { %2717 = vsyncpa [#allocation4 + $0x1], 1 }

</bundles_post_ra>
